<compile_context>
chip_gen: v7x
topology: tpu7x:2x2x1
jax: 0.10.0
libtpu: 0.0.40
codegen_flags: <defaults>
</compile_context>

<pallas_src>
import functools
import math

import jax
import jax.numpy as jnp
from jax import lax
from jax.experimental import pallas as pl
from jax.experimental.pallas import tpu as pltpu

PAD_ID, BOS_ID, EOS_ID = 1, 0, 2
NEG_BIG = -1e30
_VMEM_LIMIT = 48 * 1024 * 1024   # explicit budget; < v7x 64 MiB physical


# ------------------------------ tiling helpers ------------------------------

def _round_up(x, m):
    return (x + m - 1) // m * m


def _row_tiling(M, max_tile=512):
    """Row (sublane) tiling: (tile, padded M)."""
    m8 = _round_up(M, 8)
    if m8 <= max_tile:
        return m8, m8
    return max_tile, _round_up(M, max_tile)


def _col_tiling(N, max_tile=512):
    """Column (lane) tiling: (tile multiple of 128, N padded to that tile)."""
    n128 = _round_up(N, 128)
    if n128 <= max_tile:
        return n128, n128
    return max_tile, _round_up(N, max_tile)


def _attn_tiles(L):
    """Sequence tiling for attention: (tile, padded length)."""
    l8 = _round_up(L, 8)
    if l8 <= 256:
        return l8, l8
    return 256, _round_up(L, 256)


def _pad2(a, rows, cols):
    if a.shape == (rows, cols):
        return a
    return jnp.pad(a, ((0, rows - a.shape[0]), (0, cols - a.shape[1])))


# ------------------------------- linear kernel ------------------------------

def _linear_kernel(x_ref, w_ref, b_ref, o_ref, *, activation):
    acc = jnp.dot(x_ref[...], w_ref[...], preferred_element_type=jnp.float32)
    acc = acc + b_ref[...]                            # fp32 bias / activation
    if activation == "tanh":
        acc = jnp.tanh(acc)
    elif activation == "relu":
        acc = jnp.maximum(acc, 0.0)
    o_ref[...] = acc.astype(o_ref.dtype)


def pallas_linear(x, w, b, activation=None):
    """y = act(x @ w + b).  x:[M,K] bf16, w:[K,N] bf16, b:[N] f32 -> bf16."""
    M, K = x.shape
    N = w.shape[1]
    tm, m_pad = _row_tiling(M)
    tn, n_pad = _col_tiling(N)
    x_p = _pad2(x, m_pad, K)
    w_p = _pad2(w, K, n_pad)
    b_p = b if n_pad == N else jnp.pad(b, (0, n_pad - N))

    kern = functools.partial(_linear_kernel, activation=activation)
    out = pl.pallas_call(
        kern,
        out_shape=jax.ShapeDtypeStruct((m_pad, n_pad), jnp.bfloat16),
        grid=(m_pad // tm, n_pad // tn),
        in_specs=[
            pl.BlockSpec((tm, K), lambda i, j: (i, 0)),
            pl.BlockSpec((K, tn), lambda i, j: (0, j)),
            pl.BlockSpec((1, tn), lambda i, j: (0, j)),
        ],
        out_specs=pl.BlockSpec((tm, tn), lambda i, j: (i, j)),
        compiler_params=pltpu.CompilerParams(
            dimension_semantics=("parallel", "parallel"),
            vmem_limit_bytes=_VMEM_LIMIT),
    )(x_p, w_p, b_p.reshape(1, n_pad))
    if (m_pad, n_pad) != (M, N):
        out = out[:M, :N]
    return out


# ---------------------------- layer-norm kernels ----------------------------

def _ln_kernel(x_ref, g_ref, b_ref, o_ref):
    x = x_ref[...].astype(jnp.float32)
    mu = jnp.mean(x, axis=-1, keepdims=True)
    var = jnp.mean(jnp.square(x - mu), axis=-1, keepdims=True)
    y = (x - mu) * lax.rsqrt(var + 1e-5) * g_ref[...] + b_ref[...]
    o_ref[...] = y.astype(o_ref.dtype)


def _add_ln_kernel(a_ref, r_ref, g_ref, b_ref, o_ref):
    x = a_ref[...].astype(jnp.float32) + r_ref[...].astype(jnp.float32)
    mu = jnp.mean(x, axis=-1, keepdims=True)
    var = jnp.mean(jnp.square(x - mu), axis=-1, keepdims=True)
    y = (x - mu) * lax.rsqrt(var + 1e-5) * g_ref[...] + b_ref[...]
    o_ref[...] = y.astype(o_ref.dtype)


def _ln_call(kernel, inputs, gamma, beta):
    M, H = inputs[0].shape
    tm, m_pad = _row_tiling(M)
    padded = [_pad2(a, m_pad, H) for a in inputs]
    n_in = len(padded)
    out = pl.pallas_call(
        kernel,
        out_shape=jax.ShapeDtypeStruct((m_pad, H), jnp.bfloat16),
        grid=(m_pad // tm,),
        in_specs=[pl.BlockSpec((tm, H), lambda i: (i, 0))] * n_in
                 + [pl.BlockSpec((1, H), lambda i: (0, 0))] * 2,
        out_specs=pl.BlockSpec((tm, H), lambda i: (i, 0)),
        compiler_params=pltpu.CompilerParams(
            dimension_semantics=("parallel",),
            vmem_limit_bytes=_VMEM_LIMIT),
    )(*padded, gamma.reshape(1, H), beta.reshape(1, H))
    return out[:M] if m_pad != M else out


def pallas_layernorm(x2d, gamma, beta):
    return _ln_call(_ln_kernel, [x2d], gamma, beta)


def pallas_add_layernorm(a2d, r2d, gamma, beta):
    return _ln_call(_add_ln_kernel, [a2d, r2d], gamma, beta)


# --------------------------- flash attention kernel -------------------------

def _flash_attn_kernel(*refs, nh, dh, scale, causal, s_valid):
    if causal:
        q_ref, k_ref, v_ref, o_ref, m_sc, l_sc, acc_sc = refs
    else:
        q_ref, k_ref, v_ref, kpm_ref, o_ref, m_sc, l_sc, acc_sc = refs

    qi = pl.program_id(1)
    ki = pl.program_id(2)

    @pl.when(ki == 0)
    def _():
        m_sc[...] = jnp.full_like(m_sc, NEG_BIG)
        l_sc[...] = jnp.zeros_like(l_sc)
        acc_sc[...] = jnp.zeros_like(acc_sc)

    q = q_ref[0]                                      # [tq, H] bf16
    k = k_ref[0]                                      # [tkv, H] bf16
    v = v_ref[0]                                      # [tkv, H] bf16
    tq, tkv = q.shape[0], k.shape[0]

    # mask bias generated in-kernel (no [B*nh,T,S] bias arrays in HBM)
    col = lax.broadcasted_iota(jnp.int32, (tq, tkv), 1) + ki * tkv
    if causal:
        row = lax.broadcasted_iota(jnp.int32, (tq, tkv), 0) + qi * tq
        keep = jnp.logical_and(col <= row, col < s_valid)
    else:
        keep = jnp.logical_and(kpm_ref[0] > 0, col < s_valid)   # [1,tkv] bcast
    bias = jnp.where(keep, 0.0, -10000.0).astype(jnp.float32)

    def compute_tile():
        # TODO(synk): heads are processed one-by-one (dh-wide MXU matmuls);
        # head-batching to fill the 256-wide MXU needs a head-major HBM layout.
        for h in range(nh):                           # unrolled, static slices
            sl = slice(h * dh, (h + 1) * dh)
            s = lax.dot_general(q[:, sl], k[:, sl],
                                (((1,), (1,)), ((), ())),      # q @ k^T, no .T
                                preferred_element_type=jnp.float32)
            s = s * scale + bias
            m_old = m_sc[h]
            m_new = jnp.maximum(m_old, jnp.max(s, axis=-1, keepdims=True))
            p = jnp.exp(s - m_new)
            a = jnp.exp(m_old - m_new)
            l_sc[h] = a * l_sc[h] + jnp.sum(p, axis=-1, keepdims=True)
            acc_sc[h] = a * acc_sc[h] + jnp.dot(
                p.astype(jnp.bfloat16), v[:, sl],
                preferred_element_type=jnp.float32)
            m_sc[h] = m_new

    if causal:
        # skip kv tiles that are entirely above the diagonal (fully masked)
        pl.when(ki * tkv <= qi * tq + (tq - 1))(compute_tile)
    else:
        compute_tile()

    @pl.when(ki == pl.num_programs(2) - 1)
    def _():
        for h in range(nh):                           # static lane offsets
            inv_l = pl.reciprocal(l_sc[h], approx=True)
            o_ref[0, :, h * dh:(h + 1) * dh] = (acc_sc[h] * inv_l).astype(
                o_ref.dtype)


def pallas_self_attention(qkv, nh, t_valid):
    """qkv: [B, T, 3H] bf16 (fused projection). Returns [B, T, H] bf16."""
    B, T, H3 = qkv.shape
    H = H3 // 3
    dh = H // nh
    tile, T_pad = _attn_tiles(T)
    if T_pad != T:
        qkv = jnp.pad(qkv, ((0, 0), (0, T_pad - T), (0, 0)))

    kern = functools.partial(_flash_attn_kernel, nh=nh, dh=dh,
                             scale=1.0 / math.sqrt(dh), causal=True,
                             s_valid=t_valid)
    out = pl.pallas_call(
        kern,
        out_shape=jax.ShapeDtypeStruct((B, T_pad, H), jnp.bfloat16),
        grid=(B, T_pad // tile, T_pad // tile),
        in_specs=[  # same array three times; DMA does the q/k/v split
            pl.BlockSpec((1, tile, H), lambda b, qi, ki: (b, qi, 0)),
            pl.BlockSpec((1, tile, H), lambda b, qi, ki: (b, ki, 1)),
            pl.BlockSpec((1, tile, H), lambda b, qi, ki: (b, ki, 2)),
        ],
        out_specs=pl.BlockSpec((1, tile, H), lambda b, qi, ki: (b, qi, 0)),
        scratch_shapes=[pltpu.VMEM((nh, tile, 1), jnp.float32),
                        pltpu.VMEM((nh, tile, 1), jnp.float32),
                        pltpu.VMEM((nh, tile, dh), jnp.float32)],
        compiler_params=pltpu.CompilerParams(
            dimension_semantics=("parallel", "parallel", "arbitrary"),
            vmem_limit_bytes=_VMEM_LIMIT),
    )(qkv, qkv, qkv)
    return out[:, :T] if T_pad != T else out


def pallas_cross_attention(q, kv, source_mask, nh):
    """q: [B,T,H] bf16, kv: [B,S,2H] bf16 (fused), source_mask: [B,S]."""
    B, T, H = q.shape
    S = kv.shape[1]
    dh = H // nh
    tq, T_pad = _attn_tiles(T)
    tkv, S_pad = _attn_tiles(S)
    if T_pad != T:
        q = jnp.pad(q, ((0, 0), (0, T_pad - T), (0, 0)))
    if S_pad != S:
        kv = jnp.pad(kv, ((0, 0), (0, S_pad - S), (0, 0)))
    kpm = source_mask.astype(jnp.int32)
    if S_pad != S:
        kpm = jnp.pad(kpm, ((0, 0), (0, S_pad - S)))
    kpm = kpm.reshape(B, 1, S_pad)

    kern = functools.partial(_flash_attn_kernel, nh=nh, dh=dh,
                             scale=1.0 / math.sqrt(dh), causal=False,
                             s_valid=S)
    out = pl.pallas_call(
        kern,
        out_shape=jax.ShapeDtypeStruct((B, T_pad, H), jnp.bfloat16),
        grid=(B, T_pad // tq, S_pad // tkv),
        in_specs=[
            pl.BlockSpec((1, tq, H), lambda b, qi, ki: (b, qi, 0)),
            pl.BlockSpec((1, tkv, H), lambda b, qi, ki: (b, ki, 0)),
            pl.BlockSpec((1, tkv, H), lambda b, qi, ki: (b, ki, 1)),
            pl.BlockSpec((1, 1, tkv), lambda b, qi, ki: (b, 0, ki)),
        ],
        out_specs=pl.BlockSpec((1, tq, H), lambda b, qi, ki: (b, qi, 0)),
        scratch_shapes=[pltpu.VMEM((nh, tq, 1), jnp.float32),
                        pltpu.VMEM((nh, tq, 1), jnp.float32),
                        pltpu.VMEM((nh, tq, dh), jnp.float32)],
        compiler_params=pltpu.CompilerParams(
            dimension_semantics=("parallel", "parallel", "arbitrary"),
            vmem_limit_bytes=_VMEM_LIMIT),
    )(q, kv, kv, kpm)
    return out[:, :T] if T_pad != T else out


# ---------------- fused tied lm_head + cross-entropy (vocab-tiled) ----------

def _lm_ce_kernel(x_ref, emb_ref, tgt_ref, msk_ref, loss_ref,
                  m_sc, l_sc, t_sc, *, tv, vocab):
    vblk = pl.program_id(1)

    @pl.when(vblk == 0)
    def _():
        m_sc[...] = jnp.full_like(m_sc, NEG_BIG)
        l_sc[...] = jnp.zeros_like(l_sc)
        t_sc[...] = jnp.zeros_like(t_sc)

    # contract over H of the [V,H] table -> no transpose of the embedding
    logits = lax.dot_general(x_ref[...], emb_ref[...],
                             (((1,), (1,)), ((), ())),
                             preferred_element_type=jnp.float32)   # [tr, tv]
    col = lax.broadcasted_iota(jnp.int32, logits.shape, 1) + vblk * tv
    logits = jnp.where(col < vocab, logits, NEG_BIG)   # mask padded vocab cols

    # online logsumexp over vocab tiles (state stays f32)
    m_old = m_sc[...]
    m_new = jnp.maximum(m_old, jnp.max(logits, axis=-1, keepdims=True))
    l_sc[...] = (jnp.exp(m_old - m_new) * l_sc[...]
                 + jnp.sum(jnp.exp(logits - m_new), axis=-1, keepdims=True))
    m_sc[...] = m_new
    tgt = tgt_ref[...]                                 # [tr, 1] int32
    t_sc[...] += jnp.sum(jnp.where(col == tgt, logits, 0.0),
                         axis=-1, keepdims=True)

    @pl.when(vblk == pl.num_programs(1) - 1)
    def _():
        lse = m_sc[...] + jnp.log(l_sc[...])
        loss_ref[...] = (lse - t_sc[...]) * msk_ref[...]


def pallas_lm_head_ce(x, emb_bf16, targets, mask, vocab):
    """sum over rows of masked CE( x @ emb.T , targets ).  x:[M,H] bf16."""
    M, H = x.shape
    V = emb_bf16.shape[0]
    tr, m_pad = _row_tiling(M, max_tile=512)
    tv, v_pad = _col_tiling(V, max_tile=512)

    x_p = _pad2(x, m_pad, H)
    emb_p = _pad2(emb_bf16, v_pad, H)
    tgt_p = _pad2(targets.reshape(M, 1).astype(jnp.int32), m_pad, 1)
    msk_p = _pad2(mask.reshape(M, 1).astype(jnp.float32), m_pad, 1)

    kern = functools.partial(_lm_ce_kernel, tv=tv, vocab=vocab)
    per_row = pl.pallas_call(
        kern,
        out_shape=jax.ShapeDtypeStruct((m_pad, 1), jnp.float32),
        grid=(m_pad // tr, v_pad // tv),               # vocab (reduction) last
        in_specs=[
            pl.BlockSpec((tr, H), lambda r, v: (r, 0)),
            pl.BlockSpec((tv, H), lambda r, v: (v, 0)),
            pl.BlockSpec((tr, 1), lambda r, v: (r, 0)),
            pl.BlockSpec((tr, 1), lambda r, v: (r, 0)),
        ],
        out_specs=pl.BlockSpec((tr, 1), lambda r, v: (r, 0)),
        scratch_shapes=[pltpu.VMEM((tr, 1), jnp.float32)] * 3,
        compiler_params=pltpu.CompilerParams(
            dimension_semantics=("parallel", "arbitrary"),
            vmem_limit_bytes=_VMEM_LIMIT),
    )(x_p, emb_p, tgt_p, msk_p)
    return jnp.sum(per_row[:M, 0])


# ------------------------------- model wrapper ------------------------------

def codebert_get_loss(params, memory, source_mask, target_ids, target_mask,
                      *, nh):
    """Mirrors CodeBert.forward(..., target_mask=...) with memory supplied."""
    B, T = target_ids.shape
    S = memory.shape[1]
    H = memory.shape[2]
    V = params["embed_tokens"].shape[0]

    # --- embeddings (gather is glue; LayerNorm is a Pallas kernel) ---
    # TODO(synk): RoBERTa embeddings also add token-type embeddings and offset
    # position ids by padding_idx+1; simplified here.
    tok = jnp.take(params["embed_tokens"], target_ids, axis=0)       # bf16
    pos = params["embed_pos"][:T][None, :, :]                        # f32
    emb_in = (tok.astype(jnp.float32) + pos).astype(jnp.bfloat16)
    x2 = pallas_layernorm(emb_in.reshape(B * T, H),
                          params["emb_ln_g"], params["emb_ln_b"])    # [B*T,H]

    # --- single post-LN transformer decoder layer ---
    # TODO(synk): TransformerDecoder(hidden_size) config (num layers / heads /
    # ffn dim) is not defined in the reference source; one standard layer used.
    qkv = pallas_linear(x2, params["sa_qkv_w"], params["sa_qkv_b"])  # [B*T,3H]
    sa = pallas_self_attention(qkv.reshape(B, T, 3 * H), nh, T)
    sa = pallas_linear(sa.reshape(B * T, H), params["sa_o_w"], params["sa_o_b"])
    x2 = pallas_add_layernorm(x2, sa, params["ln1_g"], params["ln1_b"])

    q = pallas_linear(x2, params["ca_q_w"], params["ca_q_b"]).reshape(B, T, H)
    kv = pallas_linear(memory.astype(jnp.bfloat16).reshape(B * S, H),
                       params["ca_kv_w"], params["ca_kv_b"]).reshape(B, S, 2 * H)
    ca = pallas_cross_attention(q, kv, source_mask, nh)
    ca = pallas_linear(ca.reshape(B * T, H), params["ca_o_w"], params["ca_o_b"])
    x2 = pallas_add_layernorm(x2, ca, params["ln2_g"], params["ln2_b"])

    h1 = pallas_linear(x2, params["ffn1_w"], params["ffn1_b"], activation="relu")
    h2 = pallas_linear(h1, params["ffn2_w"], params["ffn2_b"])
    x2 = pallas_add_layernorm(x2, h2, params["ln3_g"], params["ln3_b"])

    # --- head: tanh(dense(.)) then fused tied lm_head + shifted CE(sum) ---
    dense_out = pallas_linear(x2, params["dense_w"], params["dense_b"],
                              activation="tanh")                     # [B*T,H]

    # Fold the [:, :-1] shift into the target/mask indexing (no hidden-stream
    # slice/copy): row (b,t) predicts target_ids[b,t+1]; last row masked out.
    tgt_shift = jnp.concatenate(
        [target_ids[:, 1:], jnp.full((B, 1), PAD_ID, target_ids.dtype)], axis=1)
    act_shift = jnp.concatenate(
        [target_mask[:, 1:], jnp.zeros((B, 1), target_mask.dtype)], axis=1)
    active = (act_shift != 0)
    ce_mask = jnp.logical_and(active, tgt_shift != PAD_ID)

    loss = pallas_lm_head_ce(dense_out, params["embed_tokens"],
                             tgt_shift.reshape(-1), ce_mask.reshape(-1), V)
    n_active = jnp.sum((target_mask[:, 1:] != 0).astype(jnp.int32))
    return loss, n_active


# -------------------------------- param init --------------------------------

def init_params(key, H, V, nh, F, max_pos):
    shapes = {
        "embed_tokens": (V, H), "embed_pos": (max_pos, H),
        "sa_qkv_w": (H, 3 * H), "sa_o_w": (H, H),
        "ca_q_w": (H, H), "ca_kv_w": (H, 2 * H), "ca_o_w": (H, H),
        "ffn1_w": (H, F), "ffn2_w": (F, H), "dense_w": (H, H),
    }
    names = list(shapes.keys())
    keys = jax.random.split(key, len(names))
    p = {}
    for k_, name in zip(keys, names):
        w = 0.02 * jax.random.normal(k_, shapes[name], jnp.float32)
        # weights (incl. tied embedding table) in bf16 for the MXU;
        # position table stays fp32 (element-wise add path).
        p[name] = w if name == "embed_pos" else w.astype(jnp.bfloat16)

    bias_shapes = {"sa_qkv_b": 3 * H, "sa_o_b": H, "ca_q_b": H,
                   "ca_kv_b": 2 * H, "ca_o_b": H,
                   "ffn1_b": F, "ffn2_b": H, "dense_b": H}
    for name, n in bias_shapes.items():
        p[name] = jnp.zeros((n,), jnp.float32)
    for ln in ("emb_ln", "ln1", "ln2", "ln3"):
        p[f"{ln}_g"] = jnp.ones((H,), jnp.float32)
        p[f"{ln}_b"] = jnp.zeros((H,), jnp.float32)
    return p


# ----------------------------------- main ------------------------------------

if __name__ == "__main__":
    B, S, T = 2, 16, 8
    H, V, NH, FFN, MAX_POS = 128, 512, 4, 512, 64

    key = jax.random.PRNGKey(0)
    k_p, k_mem, k_tgt = jax.random.split(key, 3)
    params = init_params(k_p, H, V, NH, FFN, MAX_POS)

    # Encoder output ("memory") is supplied directly (pretrained RobertaModel
    # is out of scope); source_mask: batch 0 full length, batch 1 padded.
    memory = jax.random.normal(k_mem, (B, S, H), jnp.float32)
    source_mask = jnp.asarray([[1] * S, [1] * 12 + [0] * 4], dtype=jnp.int32)

    # target_ids: [bos, tokens..., eos, pads]; target_mask marks non-pad.
    rand_tok = jax.random.randint(k_tgt, (B, T), 3, V, jnp.int32)
    target_ids = rand_tok.at[:, 0].set(BOS_ID)
    target_ids = target_ids.at[0, T - 1].set(EOS_ID)
    target_ids = target_ids.at[1, 5].set(EOS_ID)
    target_ids = target_ids.at[1, 6:].set(PAD_ID)
    target_mask = (target_ids != PAD_ID).astype(jnp.int32)

    fwd = jax.jit(functools.partial(codebert_get_loss, nh=NH))
    loss, n_active = fwd(params, memory, source_mask, target_ids, target_mask)
    jax.block_until_ready((loss, n_active))

    assert bool(jnp.isfinite(loss))
    assert int(n_active) == int(jnp.sum(target_mask[:, 1:]))
    print("KERNEL_OK")
</pallas_src>

<mosaic_0001>
module attributes {stable_mosaic.version = 11 : i64} {
  func.func @_ln_kernel(%arg0: i32, %arg1: memref<16x128xbf16, #tpu.memory_space<vmem>>, %arg2: memref<1x128xf32, #tpu.memory_space<vmem>>, %arg3: memref<1x128xf32, #tpu.memory_space<vmem>>, %arg4: memref<16x128xbf16, #tpu.memory_space<vmem>>) attributes {dimension_semantics = [#tpu.dimension_semantics<parallel>], iteration_bounds = array<i64: 1>, scalar_prefetch = 0 : i64, scratch_operands = 0 : i64, tpu.core_type = #tpu.core_type<tc>, window_params = [{transform_indices = @transform_0, window_bounds = array<i64: 16, 128>}, {pipeline_mode = #tpu.pipeline_mode<synchronous>, transform_indices = @transform_1, window_bounds = array<i64: 1, 128>}, {pipeline_mode = #tpu.pipeline_mode<synchronous>, transform_indices = @transform_2, window_bounds = array<i64: 1, 128>}, {transform_indices = @transform_3, window_bounds = array<i64: 16, 128>}]} {
    %c0 = arith.constant 0 : index
    %c0_0 = arith.constant 0 : index
    %0 = vector.load %arg1[%c0, %c0_0] : memref<16x128xbf16, #tpu.memory_space<vmem>>, vector<16x128xbf16>
    %1 = arith.extf %0 : vector<16x128xbf16> to vector<16x128xf32>
    %cst = arith.constant dense<0.000000e+00> : vector<16xf32>
    %2 = vector.multi_reduction <add>, %1, %cst [1] : vector<16x128xf32> to vector<16xf32>
    %3 = vector.shape_cast %2 : vector<16xf32> to vector<16x1xf32>
    %cst_1 = arith.constant 1.280000e+02 : f32
    %4 = vector.broadcast %cst_1 : f32 to vector<16x1xf32>
    %5 = arith.divf %3, %4 : vector<16x1xf32>
    %6 = vector.broadcast %5 : vector<16x1xf32> to vector<16x128xf32>
    %7 = arith.subf %1, %6 : vector<16x128xf32>
    %8 = arith.mulf %7, %7 : vector<16x128xf32>
    %cst_2 = arith.constant dense<0.000000e+00> : vector<16xf32>
    %9 = vector.multi_reduction <add>, %8, %cst_2 [1] : vector<16x128xf32> to vector<16xf32>
    %10 = vector.shape_cast %9 : vector<16xf32> to vector<16x1xf32>
    %cst_3 = arith.constant 1.280000e+02 : f32
    %11 = vector.broadcast %cst_3 : f32 to vector<16x1xf32>
    %12 = arith.divf %10, %11 : vector<16x1xf32>
    %13 = vector.broadcast %5 : vector<16x1xf32> to vector<16x128xf32>
    %14 = arith.subf %1, %13 : vector<16x128xf32>
    %cst_4 = arith.constant 9.99999974E-6 : f32
    %15 = vector.broadcast %cst_4 : f32 to vector<16x1xf32>
    %16 = arith.addf %12, %15 : vector<16x1xf32>
    %17 = math.rsqrt %16 : vector<16x1xf32>
    %18 = vector.broadcast %17 : vector<16x1xf32> to vector<16x128xf32>
    %19 = arith.mulf %14, %18 : vector<16x128xf32>
    %c0_5 = arith.constant 0 : index
    %c0_6 = arith.constant 0 : index
    %20 = vector.load %arg2[%c0_5, %c0_6] : memref<1x128xf32, #tpu.memory_space<vmem>>, vector<1x128xf32>
    %21 = vector.broadcast %20 : vector<1x128xf32> to vector<16x128xf32>
    %22 = arith.mulf %19, %21 : vector<16x128xf32>
    %c0_7 = arith.constant 0 : index
    %c0_8 = arith.constant 0 : index
    %23 = vector.load %arg3[%c0_7, %c0_8] : memref<1x128xf32, #tpu.memory_space<vmem>>, vector<1x128xf32>
    %24 = vector.broadcast %23 : vector<1x128xf32> to vector<16x128xf32>
    %25 = arith.addf %22, %24 : vector<16x128xf32>
    %26 = arith.truncf %25 : vector<16x128xf32> to vector<16x128xbf16>
    %c0_9 = arith.constant 0 : index
    %c0_10 = arith.constant 0 : index
    %27 = vector.load %arg4[%c0_9, %c0_10] : memref<16x128xbf16, #tpu.memory_space<vmem>>, vector<16x128xbf16>
    tpu.vector_store %arg4[%c0_9, %c0_10], %26 {strides = array<i32>} : memref<16x128xbf16, #tpu.memory_space<vmem>>, vector<16x128xbf16>,
    return
  }
  func.func @transform_0(%arg0: i32) -> (i32, i32) {
    %c0_i32 = arith.constant 0 : i32
    %c0_i32_0 = arith.constant 0 : i32
    return %arg0, %c0_i32 : i32, i32
  }
  func.func @transform_1(%arg0: i32) -> (i32, i32) {
    %c0_i32 = arith.constant 0 : i32
    %c0_i32_0 = arith.constant 0 : i32
    %c0_i32_1 = arith.constant 0 : i32
    return %c0_i32, %c0_i32_0 : i32, i32
  }
  func.func @transform_2(%arg0: i32) -> (i32, i32) {
    %c0_i32 = arith.constant 0 : i32
    %c0_i32_0 = arith.constant 0 : i32
    %c0_i32_1 = arith.constant 0 : i32
    return %c0_i32, %c0_i32_0 : i32, i32
  }
  func.func @transform_3(%arg0: i32) -> (i32, i32) {
    %c0_i32 = arith.constant 0 : i32
    %c0_i32_0 = arith.constant 0 : i32
    return %arg0, %c0_i32 : i32, i32
  }
}

module attributes {stable_mosaic.version = 11 : i64} {
  func.func @_linear_kernel(%arg0: i32, %arg1: i32, %arg2: memref<16x128xbf16, #tpu.memory_space<vmem>>, %arg3: memref<128x128xbf16, #tpu.memory_space<vmem>>, %arg4: memref<1x128xf32, #tpu.memory_space<vmem>>, %arg5: memref<16x128xbf16, #tpu.memory_space<vmem>>) attributes {dimension_semantics = [#tpu.dimension_semantics<parallel>, #tpu.dimension_semantics<parallel>], iteration_bounds = array<i64: 1, 1>, scalar_prefetch = 0 : i64, scratch_operands = 0 : i64, tpu.core_type = #tpu.core_type<tc>, window_params = [{transform_indices = @transform_0, window_bounds = array<i64: 16, 128>}, {transform_indices = @transform_1, window_bounds = array<i64: 128, 128>}, {transform_indices = @transform_2, window_bounds = array<i64: 1, 128>}, {transform_indices = @transform_3, window_bounds = array<i64: 16, 128>}]} {
    %c0 = arith.constant 0 : index
    %c0_0 = arith.constant 0 : index
    %0 = vector.load %arg2[%c0, %c0_0] : memref<16x128xbf16, #tpu.memory_space<vmem>>, vector<16x128xbf16>
    %c0_1 = arith.constant 0 : index
    %c0_2 = arith.constant 0 : index
    %1 = vector.load %arg3[%c0_1, %c0_2] : memref<128x128xbf16, #tpu.memory_space<vmem>>, vector<128x128xbf16>
    %cst = arith.constant dense<0.000000e+00> : vector<16x128xf32>
    %2 = tpu.matmul %0, %1, %cst {dimension_numbers = #tpu.dot_dimension_numbers<[1], [0], [0], [1], [0, 0, 1, 1], [], []>} : vector<16x128xbf16>, vector<128x128xbf16>, vector<16x128xf32> -> vector<16x128xf32>
    %c0_3 = arith.constant 0 : index
    %c0_4 = arith.constant 0 : index
    %3 = vector.load %arg4[%c0_3, %c0_4] : memref<1x128xf32, #tpu.memory_space<vmem>>, vector<1x128xf32>
    %4 = vector.broadcast %3 : vector<1x128xf32> to vector<16x128xf32>
    %5 = arith.addf %2, %4 : vector<16x128xf32>
    %6 = arith.truncf %5 : vector<16x128xf32> to vector<16x128xbf16>
    %c0_5 = arith.constant 0 : index
    %c0_6 = arith.constant 0 : index
    %7 = vector.load %arg5[%c0_5, %c0_6] : memref<16x128xbf16, #tpu.memory_space<vmem>>, vector<16x128xbf16>
    tpu.vector_store %arg5[%c0_5, %c0_6], %6 {strides = array<i32>} : memref<16x128xbf16, #tpu.memory_space<vmem>>, vector<16x128xbf16>,
    return
  }
  func.func @transform_0(%arg0: i32, %arg1: i32) -> (i32, i32) {
    %c0_i32 = arith.constant 0 : i32
    %c0_i32_0 = arith.constant 0 : i32
    return %arg0, %c0_i32 : i32, i32
  }
  func.func @transform_1(%arg0: i32, %arg1: i32) -> (i32, i32) {
    %c0_i32 = arith.constant 0 : i32
    %c0_i32_0 = arith.constant 0 : i32
    return %c0_i32, %arg1 : i32, i32
  }
  func.func @transform_2(%arg0: i32, %arg1: i32) -> (i32, i32) {
    %c0_i32 = arith.constant 0 : i32
    %c0_i32_0 = arith.constant 0 : i32
    return %c0_i32, %arg1 : i32, i32
  }
  func.func @transform_3(%arg0: i32, %arg1: i32) -> (i32, i32) {
    %c0_i32 = arith.constant 0 : i32
    return %arg0, %arg1 : i32, i32
  }
}

module attributes {stable_mosaic.version = 11 : i64} {
  func.func @_linear_kernel(%arg0: i32, %arg1: i32, %arg2: memref<16x128xbf16, #tpu.memory_space<vmem>>, %arg3: memref<128x384xbf16, #tpu.memory_space<vmem>>, %arg4: memref<1x384xf32, #tpu.memory_space<vmem>>, %arg5: memref<16x384xbf16, #tpu.memory_space<vmem>>) attributes {dimension_semantics = [#tpu.dimension_semantics<parallel>, #tpu.dimension_semantics<parallel>], iteration_bounds = array<i64: 1, 1>, scalar_prefetch = 0 : i64, scratch_operands = 0 : i64, tpu.core_type = #tpu.core_type<tc>, window_params = [{transform_indices = @transform_0, window_bounds = array<i64: 16, 128>}, {transform_indices = @transform_1, window_bounds = array<i64: 128, 384>}, {transform_indices = @transform_2, window_bounds = array<i64: 1, 384>}, {transform_indices = @transform_3, window_bounds = array<i64: 16, 384>}]} {
    %c0 = arith.constant 0 : index
    %c0_0 = arith.constant 0 : index
    %0 = vector.load %arg2[%c0, %c0_0] : memref<16x128xbf16, #tpu.memory_space<vmem>>, vector<16x128xbf16>
    %c0_1 = arith.constant 0 : index
    %c0_2 = arith.constant 0 : index
    %1 = vector.load %arg3[%c0_1, %c0_2] : memref<128x384xbf16, #tpu.memory_space<vmem>>, vector<128x384xbf16>
    %cst = arith.constant dense<0.000000e+00> : vector<16x384xf32>
    %2 = tpu.matmul %0, %1, %cst {dimension_numbers = #tpu.dot_dimension_numbers<[1], [0], [0], [1], [0, 0, 1, 1], [], []>} : vector<16x128xbf16>, vector<128x384xbf16>, vector<16x384xf32> -> vector<16x384xf32>
    %c0_3 = arith.constant 0 : index
    %c0_4 = arith.constant 0 : index
    %3 = vector.load %arg4[%c0_3, %c0_4] : memref<1x384xf32, #tpu.memory_space<vmem>>, vector<1x384xf32>
    %4 = vector.broadcast %3 : vector<1x384xf32> to vector<16x384xf32>
    %5 = arith.addf %2, %4 : vector<16x384xf32>
    %6 = arith.truncf %5 : vector<16x384xf32> to vector<16x384xbf16>
    %c0_5 = arith.constant 0 : index
    %c0_6 = arith.constant 0 : index
    %7 = vector.load %arg5[%c0_5, %c0_6] : memref<16x384xbf16, #tpu.memory_space<vmem>>, vector<16x384xbf16>
    tpu.vector_store %arg5[%c0_5, %c0_6], %6 {strides = array<i32>} : memref<16x384xbf16, #tpu.memory_space<vmem>>, vector<16x384xbf16>,
    return
  }
  func.func @transform_0(%arg0: i32, %arg1: i32) -> (i32, i32) {
    %c0_i32 = arith.constant 0 : i32
    %c0_i32_0 = arith.constant 0 : i32
    return %arg0, %c0_i32 : i32, i32
  }
  func.func @transform_1(%arg0: i32, %arg1: i32) -> (i32, i32) {
    %c0_i32 = arith.constant 0 : i32
    %c0_i32_0 = arith.constant 0 : i32
    return %c0_i32, %arg1 : i32, i32
  }
  func.func @transform_2(%arg0: i32, %arg1: i32) -> (i32, i32) {
    %c0_i32 = arith.constant 0 : i32
    %c0_i32_0 = arith.constant 0 : i32
    return %c0_i32, %arg1 : i32, i32
  }
  func.func @transform_3(%arg0: i32, %arg1: i32) -> (i32, i32) {
    %c0_i32 = arith.constant 0 : i32
    return %arg0, %arg1 : i32, i32
  }
}

module attributes {stable_mosaic.version = 11 : i64} {
  func.func @_flash_attn_kernel(%arg0: i32, %arg1: i32, %arg2: i32, %arg3: memref<1x8x128xbf16, #tpu.memory_space<vmem>>, %arg4: memref<1x8x128xbf16, #tpu.memory_space<vmem>>, %arg5: memref<1x8x128xbf16, #tpu.memory_space<vmem>>, %arg6: memref<1x8x128xbf16, #tpu.memory_space<vmem>>, %arg7: memref<4x8x1xf32, #tpu.memory_space<vmem>>, %arg8: memref<4x8x1xf32, #tpu.memory_space<vmem>>, %arg9: memref<4x8x32xf32, #tpu.memory_space<vmem>>) attributes {dimension_semantics = [#tpu.dimension_semantics<parallel>, #tpu.dimension_semantics<parallel>, #tpu.dimension_semantics<arbitrary>], iteration_bounds = array<i64: 2, 1, 1>, scalar_prefetch = 0 : i64, scratch_operands = 3 : i64, tpu.core_type = #tpu.core_type<tc>, window_params = [{transform_indices = @transform_0, window_bounds = array<i64: 1, 8, 128>}, {transform_indices = @transform_1, window_bounds = array<i64: 1, 8, 128>}, {transform_indices = @transform_2, window_bounds = array<i64: 1, 8, 128>}, {transform_indices = @transform_3, window_bounds = array<i64: 1, 8, 128>}]} {
    %c0_i32 = arith.constant 0 : i32
    %0 = arith.cmpi eq, %arg2, %c0_i32 : i32
    %1 = arith.extui %0 : i1 to i32
    %c0_i32_0 = arith.constant 0 : i32
    %2 = arith.cmpi ne, %1, %c0_i32_0 : i32
    scf.if %2 {
      %cst_17 = arith.constant -1.000000e+30 : f32
      %33 = vector.broadcast %cst_17 : f32 to vector<4x8x1xf32>
      %c0_18 = arith.constant 0 : index
      %c0_19 = arith.constant 0 : index
      %c0_20 = arith.constant 0 : index
      %34 = vector.load %arg7[%c0_18, %c0_19, %c0_20] : memref<4x8x1xf32, #tpu.memory_space<vmem>>, vector<4x8x1xf32>
      tpu.vector_store %arg7[%c0_18, %c0_19, %c0_20], %33 {strides = array<i32>} : memref<4x8x1xf32, #tpu.memory_space<vmem>>, vector<4x8x1xf32>,
      %cst_21 = arith.constant 0.000000e+00 : f32
      %35 = vector.broadcast %cst_21 : f32 to vector<4x8x1xf32>
      %c0_22 = arith.constant 0 : index
      %c0_23 = arith.constant 0 : index
      %c0_24 = arith.constant 0 : index
      %36 = vector.load %arg8[%c0_22, %c0_23, %c0_24] : memref<4x8x1xf32, #tpu.memory_space<vmem>>, vector<4x8x1xf32>
      tpu.vector_store %arg8[%c0_22, %c0_23, %c0_24], %35 {strides = array<i32>} : memref<4x8x1xf32, #tpu.memory_space<vmem>>, vector<4x8x1xf32>,
      %cst_25 = arith.constant 0.000000e+00 : f32
      %37 = vector.broadcast %cst_25 : f32 to vector<4x8x32xf32>
      %c0_26 = arith.constant 0 : index
      %c0_27 = arith.constant 0 : index
      %c0_28 = arith.constant 0 : index
      %38 = vector.load %arg9[%c0_26, %c0_27, %c0_28] : memref<4x8x32xf32, #tpu.memory_space<vmem>>, vector<4x8x32xf32>
      tpu.vector_store %arg9[%c0_26, %c0_27, %c0_28], %37 {strides = array<i32>} : memref<4x8x32xf32, #tpu.memory_space<vmem>>, vector<4x8x32xf32>,
    } else {
    }
    %c0 = arith.constant 0 : index
    %c0_1 = arith.constant 0 : index
    %c0_2 = arith.constant 0 : index
    %3 = vector.load %arg3[%c0, %c0_1, %c0_2] : memref<1x8x128xbf16, #tpu.memory_space<vmem>>, vector<1x8x128xbf16>
    %4 = vector.shape_cast %3 : vector<1x8x128xbf16> to vector<8x128xbf16>
    %c0_3 = arith.constant 0 : index
    %c0_4 = arith.constant 0 : index
    %c0_5 = arith.constant 0 : index
    %5 = vector.load %arg4[%c0_3, %c0_4, %c0_5] : memref<1x8x128xbf16, #tpu.memory_space<vmem>>, vector<1x8x128xbf16>
    %6 = vector.shape_cast %5 : vector<1x8x128xbf16> to vector<8x128xbf16>
    %c0_6 = arith.constant 0 : index
    %c0_7 = arith.constant 0 : index
    %c0_8 = arith.constant 0 : index
    %7 = vector.load %arg5[%c0_6, %c0_7, %c0_8] : memref<1x8x128xbf16, #tpu.memory_space<vmem>>, vector<1x8x128xbf16>
    %8 = vector.shape_cast %7 : vector<1x8x128xbf16> to vector<8x128xbf16>
    %9 = tpu.iota {dimensions = array<i32: 1>} : vector<8x8xi32>
    %c8_i32 = arith.constant 8 : i32
    %10 = arith.muli %arg2, %c8_i32 : i32
    %11 = vector.broadcast %10 : i32 to vector<8x8xi32>
    %12 = arith.addi %9, %11 : vector<8x8xi32>
    %13 = tpu.iota {dimensions = array<i32: 0>} : vector<8x8xi32>
    %c8_i32_9 = arith.constant 8 : i32
    %14 = arith.muli %arg1, %c8_i32_9 : i32
    %15 = vector.broadcast %14 : i32 to vector<8x8xi32>
    %16 = arith.addi %13, %15 : vector<8x8xi32>
    %17 = arith.cmpi sle, %12, %16 : vector<8x8xi32>
    %c8_i32_10 = arith.constant 8 : i32
    %18 = vector.broadcast %c8_i32_10 : i32 to vector<8x8xi32>
    %19 = arith.cmpi slt, %12, %18 : vector<8x8xi32>
    %20 = arith.andi %17, %19 : vector<8x8xi1>
    %cst = arith.constant 0.000000e+00 : f32
    %cst_11 = arith.constant -1.000000e+04 : f32
    %21 = vector.broadcast %cst : f32 to vector<8x8xf32>
    %22 = vector.broadcast %cst_11 : f32 to vector<8x8xf32>
    %23 = arith.select %20, %21, %22 : vector<8x8xi1>, vector<8x8xf32>
    %c8_i32_12 = arith.constant 8 : i32
    %24 = arith.muli %arg2, %c8_i32_12 : i32
    %c8_i32_13 = arith.constant 8 : i32
    %25 = arith.muli %arg1, %c8_i32_13 : i32
    %c7_i32 = arith.constant 7 : i32
    %26 = arith.addi %25, %c7_i32 : i32
    %27 = arith.cmpi sle, %24, %26 : i32
    %28 = arith.extui %27 : i1 to i32
    %c0_i32_14 = arith.constant 0 : i32
    %29 = arith.cmpi ne, %28, %c0_i32_14 : i32
    scf.if %29 {
      %33 = vector.extract_strided_slice %4 {offsets = [0, 0], sizes = [8, 32], strides = [1, 1]} : vector<8x128xbf16> to vector<8x32xbf16>
      %34 = vector.extract_strided_slice %6 {offsets = [0, 0], sizes = [8, 32], strides = [1, 1]} : vector<8x128xbf16> to vector<8x32xbf16>
      %cst_17 = arith.constant dense<0.000000e+00> : vector<8x8xf32>
      %35 = tpu.matmul %33, %34, %cst_17 {dimension_numbers = #tpu.dot_dimension_numbers<[1], [1], [0], [0], [0, 0, 1, 0], [], []>} : vector<8x32xbf16>, vector<8x32xbf16>, vector<8x8xf32> -> vector<8x8xf32>
      %cst_18 = arith.constant 0.176776692 : f32
      %36 = vector.broadcast %cst_18 : f32 to vector<8x8xf32>
      %37 = arith.mulf %35, %36 : vector<8x8xf32>
      %38 = arith.addf %37, %23 : vector<8x8xf32>
      %c0_19 = arith.constant 0 : index
      %c0_20 = arith.constant 0 : index
      %c0_21 = arith.constant 0 : index
      %39 = vector.load %arg7[%c0_19, %c0_20, %c0_21] : memref<4x8x1xf32, #tpu.memory_space<vmem>>, vector<1x8x1xf32>
      %40 = vector.shape_cast %39 : vector<1x8x1xf32> to vector<8x1xf32>
      %cst_22 = arith.constant dense<0xFF800000> : vector<8xf32>
      %41 = vector.multi_reduction <maximumf>, %38, %cst_22 [1] : vector<8x8xf32> to vector<8xf32>
      %42 = vector.shape_cast %41 : vector<8xf32> to vector<8x1xf32>
      %43 = arith.maximumf %40, %42 : vector<8x1xf32>
      %44 = vector.broadcast %43 : vector<8x1xf32> to vector<8x8xf32>
      %45 = arith.subf %38, %44 : vector<8x8xf32>
      %46 = math.exp %45 : vector<8x8xf32>
      %47 = arith.subf %40, %43 : vector<8x1xf32>
      %48 = math.exp %47 : vector<8x1xf32>
      %c0_23 = arith.constant 0 : index
      %c0_24 = arith.constant 0 : index
      %c0_25 = arith.constant 0 : index
      %49 = vector.load %arg8[%c0_23, %c0_24, %c0_25] : memref<4x8x1xf32, #tpu.memory_space<vmem>>, vector<1x8x1xf32>
      %50 = vector.shape_cast %49 : vector<1x8x1xf32> to vector<8x1xf32>
      %51 = arith.mulf %48, %50 : vector<8x1xf32>
      %cst_26 = arith.constant dense<0.000000e+00> : vector<8xf32>
      %52 = vector.multi_reduction <add>, %46, %cst_26 [1] : vector<8x8xf32> to vector<8xf32>
      %53 = vector.shape_cast %52 : vector<8xf32> to vector<8x1xf32>
      %54 = arith.addf %51, %53 : vector<8x1xf32>
      %c0_27 = arith.constant 0 : index
      %c0_28 = arith.constant 0 : index
      %c0_29 = arith.constant 0 : index
      %55 = vector.load %arg8[%c0_27, %c0_28, %c0_29] : memref<4x8x1xf32, #tpu.memory_space<vmem>>, vector<1x8x1xf32>
      %56 = vector.shape_cast %55 : vector<1x8x1xf32> to vector<8x1xf32>
      %57 = vector.shape_cast %54 : vector<8x1xf32> to vector<1x8x1xf32>
      tpu.vector_store %arg8[%c0_27, %c0_28, %c0_29], %57 {strides = array<i32>} : memref<4x8x1xf32, #tpu.memory_space<vmem>>, vector<1x8x1xf32>,
      %c0_30 = arith.constant 0 : index
      %c0_31 = arith.constant 0 : index
      %c0_32 = arith.constant 0 : index
      %58 = vector.load %arg9[%c0_30, %c0_31, %c0_32] : memref<4x8x32xf32, #tpu.memory_space<vmem>>, vector<1x8x32xf32>
      %59 = vector.shape_cast %58 : vector<1x8x32xf32> to vector<8x32xf32>
      %60 = vector.broadcast %48 : vector<8x1xf32> to vector<8x32xf32>
      %61 = arith.mulf %60, %59 : vector<8x32xf32>
      %62 = arith.truncf %46 : vector<8x8xf32> to vector<8x8xbf16>
      %63 = vector.extract_strided_slice %8 {offsets = [0, 0], sizes = [8, 32], strides = [1, 1]} : vector<8x128xbf16> to vector<8x32xbf16>
      %cst_33 = arith.constant dense<0.000000e+00> : vector<8x32xf32>
      %64 = tpu.matmul %62, %63, %cst_33 {dimension_numbers = #tpu.dot_dimension_numbers<[1], [0], [0], [1], [0, 0, 1, 1], [], []>} : vector<8x8xbf16>, vector<8x32xbf16>, vector<8x32xf32> -> vector<8x32xf32>
      %65 = arith.addf %61, %64 : vector<8x32xf32>
      %c0_34 = arith.constant 0 : index
      %c0_35 = arith.constant 0 : index
      %c0_36 = arith.constant 0 : index
      %66 = vector.load %arg9[%c0_34, %c0_35, %c0_36] : memref<4x8x32xf32, #tpu.memory_space<vmem>>, vector<1x8x32xf32>
      %67 = vector.shape_cast %66 : vector<1x8x32xf32> to vector<8x32xf32>
      %68 = vector.shape_cast %65 : vector<8x32xf32> to vector<1x8x32xf32>
      tpu.vector_store %arg9[%c0_34, %c0_35, %c0_36], %68 {strides = array<i32>} : memref<4x8x32xf32, #tpu.memory_space<vmem>>, vector<1x8x32xf32>,
      %c0_37 = arith.constant 0 : index
      %c0_38 = arith.constant 0 : index
      %c0_39 = arith.constant 0 : index
      %69 = vector.load %arg7[%c0_37, %c0_38, %c0_39] : memref<4x8x1xf32, #tpu.memory_space<vmem>>, vector<1x8x1xf32>
      %70 = vector.shape_cast %69 : vector<1x8x1xf32> to vector<8x1xf32>
      %71 = vector.shape_cast %43 : vector<8x1xf32> to vector<1x8x1xf32>
      tpu.vector_store %arg7[%c0_37, %c0_38, %c0_39], %71 {strides = array<i32>} : memref<4x8x1xf32, #tpu.memory_space<vmem>>, vector<1x8x1xf32>,
      %72 = vector.extract_strided_slice %4 {offsets = [0, 32], sizes = [8, 32], strides = [1, 1]} : vector<8x128xbf16> to vector<8x32xbf16>
      %73 = vector.extract_strided_slice %6 {offsets = [0, 32], sizes = [8, 32], strides = [1, 1]} : vector<8x128xbf16> to vector<8x32xbf16>
      %cst_40 = arith.constant dense<0.000000e+00> : vector<8x8xf32>
      %74 = tpu.matmul %72, %73, %cst_40 {dimension_numbers = #tpu.dot_dimension_numbers<[1], [1], [0], [0], [0, 0, 1, 0], [], []>} : vector<8x32xbf16>, vector<8x32xbf16>, vector<8x8xf32> -> vector<8x8xf32>
      %cst_41 = arith.constant 0.176776692 : f32
      %75 = vector.broadcast %cst_41 : f32 to vector<8x8xf32>
      %76 = arith.mulf %74, %75 : vector<8x8xf32>
      %77 = arith.addf %76, %23 : vector<8x8xf32>
      %c1 = arith.constant 1 : index
      %c0_42 = arith.constant 0 : index
      %c0_43 = arith.constant 0 : index
      %78 = vector.load %arg7[%c1, %c0_42, %c0_43] : memref<4x8x1xf32, #tpu.memory_space<vmem>>, vector<1x8x1xf32>
      %79 = vector.shape_cast %78 : vector<1x8x1xf32> to vector<8x1xf32>
      %cst_44 = arith.constant dense<0xFF800000> : vector<8xf32>
      %80 = vector.multi_reduction <maximumf>, %77, %cst_44 [1] : vector<8x8xf32> to vector<8xf32>
      %81 = vector.shape_cast %80 : vector<8xf32> to vector<8x1xf32>
      %82 = arith.maximumf %79, %81 : vector<8x1xf32>
      %83 = vector.broadcast %82 : vector<8x1xf32> to vector<8x8xf32>
      %84 = arith.subf %77, %83 : vector<8x8xf32>
      %85 = math.exp %84 : vector<8x8xf32>
      %86 = arith.subf %79, %82 : vector<8x1xf32>
      %87 = math.exp %86 : vector<8x1xf32>
      %c1_45 = arith.constant 1 : index
      %c0_46 = arith.constant 0 : index
      %c0_47 = arith.constant 0 : index
      %88 = vector.load %arg8[%c1_45, %c0_46, %c0_47] : memref<4x8x1xf32, #tpu.memory_space<vmem>>, vector<1x8x1xf32>
      %89 = vector.shape_cast %88 : vector<1x8x1xf32> to vector<8x1xf32>
      %90 = arith.mulf %87, %89 : vector<8x1xf32>
      %cst_48 = arith.constant dense<0.000000e+00> : vector<8xf32>
      %91 = vector.multi_reduction <add>, %85, %cst_48 [1] : vector<8x8xf32> to vector<8xf32>
      %92 = vector.shape_cast %91 : vector<8xf32> to vector<8x1xf32>
      %93 = arith.addf %90, %92 : vector<8x1xf32>
      %c1_49 = arith.constant 1 : index
      %c0_50 = arith.constant 0 : index
      %c0_51 = arith.constant 0 : index
      %94 = vector.load %arg8[%c1_49, %c0_50, %c0_51] : memref<4x8x1xf32, #tpu.memory_space<vmem>>, vector<1x8x1xf32>
      %95 = vector.shape_cast %94 : vector<1x8x1xf32> to vector<8x1xf32>
      %96 = vector.shape_cast %93 : vector<8x1xf32> to vector<1x8x1xf32>
      tpu.vector_store %arg8[%c1_49, %c0_50, %c0_51], %96 {strides = array<i32>} : memref<4x8x1xf32, #tpu.memory_space<vmem>>, vector<1x8x1xf32>,
      %c1_52 = arith.constant 1 : index
      %c0_53 = arith.constant 0 : index
      %c0_54 = arith.constant 0 : index
      %97 = vector.load %arg9[%c1_52, %c0_53, %c0_54] : memref<4x8x32xf32, #tpu.memory_space<vmem>>, vector<1x8x32xf32>
      %98 = vector.shape_cast %97 : vector<1x8x32xf32> to vector<8x32xf32>
      %99 = vector.broadcast %87 : vector<8x1xf32> to vector<8x32xf32>
      %100 = arith.mulf %99, %98 : vector<8x32xf32>
      %101 = arith.truncf %85 : vector<8x8xf32> to vector<8x8xbf16>
      %102 = vector.extract_strided_slice %8 {offsets = [0, 32], sizes = [8, 32], strides = [1, 1]} : vector<8x128xbf16> to vector<8x32xbf16>
      %cst_55 = arith.constant dense<0.000000e+00> : vector<8x32xf32>
      %103 = tpu.matmul %101, %102, %cst_55 {dimension_numbers = #tpu.dot_dimension_numbers<[1], [0], [0], [1], [0, 0, 1, 1], [], []>} : vector<8x8xbf16>, vector<8x32xbf16>, vector<8x32xf32> -> vector<8x32xf32>
      %104 = arith.addf %100, %103 : vector<8x32xf32>
      %c1_56 = arith.constant 1 : index
      %c0_57 = arith.constant 0 : index
      %c0_58 = arith.constant 0 : index
      %105 = vector.load %arg9[%c1_56, %c0_57, %c0_58] : memref<4x8x32xf32, #tpu.memory_space<vmem>>, vector<1x8x32xf32>
      %106 = vector.shape_cast %105 : vector<1x8x32xf32> to vector<8x32xf32>
      %107 = vector.shape_cast %104 : vector<8x32xf32> to vector<1x8x32xf32>
      tpu.vector_store %arg9[%c1_56, %c0_57, %c0_58], %107 {strides = array<i32>} : memref<4x8x32xf32, #tpu.memory_space<vmem>>, vector<1x8x32xf32>,
      %c1_59 = arith.constant 1 : index
      %c0_60 = arith.constant 0 : index
      %c0_61 = arith.constant 0 : index
      %108 = vector.load %arg7[%c1_59, %c0_60, %c0_61] : memref<4x8x1xf32, #tpu.memory_space<vmem>>, vector<1x8x1xf32>
      %109 = vector.shape_cast %108 : vector<1x8x1xf32> to vector<8x1xf32>
      %110 = vector.shape_cast %82 : vector<8x1xf32> to vector<1x8x1xf32>
      tpu.vector_store %arg7[%c1_59, %c0_60, %c0_61], %110 {strides = array<i32>} : memref<4x8x1xf32, #tpu.memory_space<vmem>>, vector<1x8x1xf32>,
      %111 = vector.extract_strided_slice %4 {offsets = [0, 64], sizes = [8, 32], strides = [1, 1]} : vector<8x128xbf16> to vector<8x32xbf16>
      %112 = vector.extract_strided_slice %6 {offsets = [0, 64], sizes = [8, 32], strides = [1, 1]} : vector<8x128xbf16> to vector<8x32xbf16>
      %cst_62 = arith.constant dense<0.000000e+00> : vector<8x8xf32>
      %113 = tpu.matmul %111, %112, %cst_62 {dimension_numbers = #tpu.dot_dimension_numbers<[1], [1], [0], [0], [0, 0, 1, 0], [], []>} : vector<8x32xbf16>, vector<8x32xbf16>, vector<8x8xf32> -> vector<8x8xf32>
      %cst_63 = arith.constant 0.176776692 : f32
      %114 = vector.broadcast %cst_63 : f32 to vector<8x8xf32>
      %115 = arith.mulf %113, %114 : vector<8x8xf32>
      %116 = arith.addf %115, %23 : vector<8x8xf32>
      %c2 = arith.constant 2 : index
      %c0_64 = arith.constant 0 : index
      %c0_65 = arith.constant 0 : index
      %117 = vector.load %arg7[%c2, %c0_64, %c0_65] : memref<4x8x1xf32, #tpu.memory_space<vmem>>, vector<1x8x1xf32>
      %118 = vector.shape_cast %117 : vector<1x8x1xf32> to vector<8x1xf32>
      %cst_66 = arith.constant dense<0xFF800000> : vector<8xf32>
      %119 = vector.multi_reduction <maximumf>, %116, %cst_66 [1] : vector<8x8xf32> to vector<8xf32>
      %120 = vector.shape_cast %119 : vector<8xf32> to vector<8x1xf32>
      %121 = arith.maximumf %118, %120 : vector<8x1xf32>
      %122 = vector.broadcast %121 : vector<8x1xf32> to vector<8x8xf32>
      %123 = arith.subf %116, %122 : vector<8x8xf32>
      %124 = math.exp %123 : vector<8x8xf32>
      %125 = arith.subf %118, %121 : vector<8x1xf32>
      %126 = math.exp %125 : vector<8x1xf32>
      %c2_67 = arith.constant 2 : index
      %c0_68 = arith.constant 0 : index
      %c0_69 = arith.constant 0 : index
      %127 = vector.load %arg8[%c2_67, %c0_68, %c0_69] : memref<4x8x1xf32, #tpu.memory_space<vmem>>, vector<1x8x1xf32>
      %128 = vector.shape_cast %127 : vector<1x8x1xf32> to vector<8x1xf32>
      %129 = arith.mulf %126, %128 : vector<8x1xf32>
      %cst_70 = arith.constant dense<0.000000e+00> : vector<8xf32>
      %130 = vector.multi_reduction <add>, %124, %cst_70 [1] : vector<8x8xf32> to vector<8xf32>
      %131 = vector.shape_cast %130 : vector<8xf32> to vector<8x1xf32>
      %132 = arith.addf %129, %131 : vector<8x1xf32>
      %c2_71 = arith.constant 2 : index
      %c0_72 = arith.constant 0 : index
      %c0_73 = arith.constant 0 : index
      %133 = vector.load %arg8[%c2_71, %c0_72, %c0_73] : memref<4x8x1xf32, #tpu.memory_space<vmem>>, vector<1x8x1xf32>
      %134 = vector.shape_cast %133 : vector<1x8x1xf32> to vector<8x1xf32>
      %135 = vector.shape_cast %132 : vector<8x1xf32> to vector<1x8x1xf32>
      tpu.vector_store %arg8[%c2_71, %c0_72, %c0_73], %135 {strides = array<i32>} : memref<4x8x1xf32, #tpu.memory_space<vmem>>, vector<1x8x1xf32>,
      %c2_74 = arith.constant 2 : index
      %c0_75 = arith.constant 0 : index
      %c0_76 = arith.constant 0 : index
      %136 = vector.load %arg9[%c2_74, %c0_75, %c0_76] : memref<4x8x32xf32, #tpu.memory_space<vmem>>, vector<1x8x32xf32>
      %137 = vector.shape_cast %136 : vector<1x8x32xf32> to vector<8x32xf32>
      %138 = vector.broadcast %126 : vector<8x1xf32> to vector<8x32xf32>
      %139 = arith.mulf %138, %137 : vector<8x32xf32>
      %140 = arith.truncf %124 : vector<8x8xf32> to vector<8x8xbf16>
      %141 = vector.extract_strided_slice %8 {offsets = [0, 64], sizes = [8, 32], strides = [1, 1]} : vector<8x128xbf16> to vector<8x32xbf16>
      %cst_77 = arith.constant dense<0.000000e+00> : vector<8x32xf32>
      %142 = tpu.matmul %140, %141, %cst_77 {dimension_numbers = #tpu.dot_dimension_numbers<[1], [0], [0], [1], [0, 0, 1, 1], [], []>} : vector<8x8xbf16>, vector<8x32xbf16>, vector<8x32xf32> -> vector<8x32xf32>
      %143 = arith.addf %139, %142 : vector<8x32xf32>
      %c2_78 = arith.constant 2 : index
      %c0_79 = arith.constant 0 : index
      %c0_80 = arith.constant 0 : index
      %144 = vector.load %arg9[%c2_78, %c0_79, %c0_80] : memref<4x8x32xf32, #tpu.memory_space<vmem>>, vector<1x8x32xf32>
      %145 = vector.shape_cast %144 : vector<1x8x32xf32> to vector<8x32xf32>
      %146 = vector.shape_cast %143 : vector<8x32xf32> to vector<1x8x32xf32>
      tpu.vector_store %arg9[%c2_78, %c0_79, %c0_80], %146 {strides = array<i32>} : memref<4x8x32xf32, #tpu.memory_space<vmem>>, vector<1x8x32xf32>,
      %c2_81 = arith.constant 2 : index
      %c0_82 = arith.constant 0 : index
      %c0_83 = arith.constant 0 : index
      %147 = vector.load %arg7[%c2_81, %c0_82, %c0_83] : memref<4x8x1xf32, #tpu.memory_space<vmem>>, vector<1x8x1xf32>
      %148 = vector.shape_cast %147 : vector<1x8x1xf32> to vector<8x1xf32>
      %149 = vector.shape_cast %121 : vector<8x1xf32> to vector<1x8x1xf32>
      tpu.vector_store %arg7[%c2_81, %c0_82, %c0_83], %149 {strides = array<i32>} : memref<4x8x1xf32, #tpu.memory_space<vmem>>, vector<1x8x1xf32>,
      %150 = vector.extract_strided_slice %4 {offsets = [0, 96], sizes = [8, 32], strides = [1, 1]} : vector<8x128xbf16> to vector<8x32xbf16>
      %151 = vector.extract_strided_slice %6 {offsets = [0, 96], sizes = [8, 32], strides = [1, 1]} : vector<8x128xbf16> to vector<8x32xbf16>
      %cst_84 = arith.constant dense<0.000000e+00> : vector<8x8xf32>
      %152 = tpu.matmul %150, %151, %cst_84 {dimension_numbers = #tpu.dot_dimension_numbers<[1], [1], [0], [0], [0, 0, 1, 0], [], []>} : vector<8x32xbf16>, vector<8x32xbf16>, vector<8x8xf32> -> vector<8x8xf32>
      %cst_85 = arith.constant 0.176776692 : f32
      %153 = vector.broadcast %cst_85 : f32 to vector<8x8xf32>
      %154 = arith.mulf %152, %153 : vector<8x8xf32>
      %155 = arith.addf %154, %23 : vector<8x8xf32>
      %c3 = arith.constant 3 : index
      %c0_86 = arith.constant 0 : index
      %c0_87 = arith.constant 0 : index
      %156 = vector.load %arg7[%c3, %c0_86, %c0_87] : memref<4x8x1xf32, #tpu.memory_space<vmem>>, vector<1x8x1xf32>
      %157 = vector.shape_cast %156 : vector<1x8x1xf32> to vector<8x1xf32>
      %cst_88 = arith.constant dense<0xFF800000> : vector<8xf32>
      %158 = vector.multi_reduction <maximumf>, %155, %cst_88 [1] : vector<8x8xf32> to vector<8xf32>
      %159 = vector.shape_cast %158 : vector<8xf32> to vector<8x1xf32>
      %160 = arith.maximumf %157, %159 : vector<8x1xf32>
      %161 = vector.broadcast %160 : vector<8x1xf32> to vector<8x8xf32>
      %162 = arith.subf %155, %161 : vector<8x8xf32>
      %163 = math.exp %162 : vector<8x8xf32>
      %164 = arith.subf %157, %160 : vector<8x1xf32>
      %165 = math.exp %164 : vector<8x1xf32>
      %c3_89 = arith.constant 3 : index
      %c0_90 = arith.constant 0 : index
      %c0_91 = arith.constant 0 : index
      %166 = vector.load %arg8[%c3_89, %c0_90, %c0_91] : memref<4x8x1xf32, #tpu.memory_space<vmem>>, vector<1x8x1xf32>
      %167 = vector.shape_cast %166 : vector<1x8x1xf32> to vector<8x1xf32>
      %168 = arith.mulf %165, %167 : vector<8x1xf32>
      %cst_92 = arith.constant dense<0.000000e+00> : vector<8xf32>
      %169 = vector.multi_reduction <add>, %163, %cst_92 [1] : vector<8x8xf32> to vector<8xf32>
      %170 = vector.shape_cast %169 : vector<8xf32> to vector<8x1xf32>
      %171 = arith.addf %168, %170 : vector<8x1xf32>
      %c3_93 = arith.constant 3 : index
      %c0_94 = arith.constant 0 : index
      %c0_95 = arith.constant 0 : index
      %172 = vector.load %arg8[%c3_93, %c0_94, %c0_95] : memref<4x8x1xf32, #tpu.memory_space<vmem>>, vector<1x8x1xf32>
      %173 = vector.shape_cast %172 : vector<1x8x1xf32> to vector<8x1xf32>
      %174 = vector.shape_cast %171 : vector<8x1xf32> to vector<1x8x1xf32>
      tpu.vector_store %arg8[%c3_93, %c0_94, %c0_95], %174 {strides = array<i32>} : memref<4x8x1xf32, #tpu.memory_space<vmem>>, vector<1x8x1xf32>,
      %c3_96 = arith.constant 3 : index
      %c0_97 = arith.constant 0 : index
      %c0_98 = arith.constant 0 : index
      %175 = vector.load %arg9[%c3_96, %c0_97, %c0_98] : memref<4x8x32xf32, #tpu.memory_space<vmem>>, vector<1x8x32xf32>
      %176 = vector.shape_cast %175 : vector<1x8x32xf32> to vector<8x32xf32>
      %177 = vector.broadcast %165 : vector<8x1xf32> to vector<8x32xf32>
      %178 = arith.mulf %177, %176 : vector<8x32xf32>
      %179 = arith.truncf %163 : vector<8x8xf32> to vector<8x8xbf16>
      %180 = vector.extract_strided_slice %8 {offsets = [0, 96], sizes = [8, 32], strides = [1, 1]} : vector<8x128xbf16> to vector<8x32xbf16>
      %cst_99 = arith.constant dense<0.000000e+00> : vector<8x32xf32>
      %181 = tpu.matmul %179, %180, %cst_99 {dimension_numbers = #tpu.dot_dimension_numbers<[1], [0], [0], [1], [0, 0, 1, 1], [], []>} : vector<8x8xbf16>, vector<8x32xbf16>, vector<8x32xf32> -> vector<8x32xf32>
      %182 = arith.addf %178, %181 : vector<8x32xf32>
      %c3_100 = arith.constant 3 : index
      %c0_101 = arith.constant 0 : index
      %c0_102 = arith.constant 0 : index
      %183 = vector.load %arg9[%c3_100, %c0_101, %c0_102] : memref<4x8x32xf32, #tpu.memory_space<vmem>>, vector<1x8x32xf32>
      %184 = vector.shape_cast %183 : vector<1x8x32xf32> to vector<8x32xf32>
      %185 = vector.shape_cast %182 : vector<8x32xf32> to vector<1x8x32xf32>
      tpu.vector_store %arg9[%c3_100, %c0_101, %c0_102], %185 {strides = array<i32>} : memref<4x8x32xf32, #tpu.memory_space<vmem>>, vector<1x8x32xf32>,
      %c3_103 = arith.constant 3 : index
      %c0_104 = arith.constant 0 : index
      %c0_105 = arith.constant 0 : index
      %186 = vector.load %arg7[%c3_103, %c0_104, %c0_105] : memref<4x8x1xf32, #tpu.memory_space<vmem>>, vector<1x8x1xf32>
      %187 = vector.shape_cast %186 : vector<1x8x1xf32> to vector<8x1xf32>
      %188 = vector.shape_cast %160 : vector<8x1xf32> to vector<1x8x1xf32>
      tpu.vector_store %arg7[%c3_103, %c0_104, %c0_105], %188 {strides = array<i32>} : memref<4x8x1xf32, #tpu.memory_space<vmem>>, vector<1x8x1xf32>,
    } else {
    }
    %c0_i32_15 = arith.constant 0 : i32
    %30 = arith.cmpi eq, %arg2, %c0_i32_15 : i32
    %31 = arith.extui %30 : i1 to i32
    %c0_i32_16 = arith.constant 0 : i32
    %32 = arith.cmpi ne, %31, %c0_i32_16 : i32
    scf.if %32 {
      %c0_17 = arith.constant 0 : index
      %c0_18 = arith.constant 0 : index
      %c0_19 = arith.constant 0 : index
      %33 = vector.load %arg8[%c0_17, %c0_18, %c0_19] : memref<4x8x1xf32, #tpu.memory_space<vmem>>, vector<1x8x1xf32>
      %34 = vector.shape_cast %33 : vector<1x8x1xf32> to vector<8x1xf32>
      %35 = tpu.reciprocal %34 {approx = true} : vector<8x1xf32> -> vector<8x1xf32>
      %c0_20 = arith.constant 0 : index
      %c0_21 = arith.constant 0 : index
      %c0_22 = arith.constant 0 : index
      %36 = vector.load %arg9[%c0_20, %c0_21, %c0_22] : memref<4x8x32xf32, #tpu.memory_space<vmem>>, vector<1x8x32xf32>
      %37 = vector.shape_cast %36 : vector<1x8x32xf32> to vector<8x32xf32>
      %38 = vector.broadcast %35 : vector<8x1xf32> to vector<8x32xf32>
      %39 = arith.mulf %37, %38 : vector<8x32xf32>
      %40 = arith.truncf %39 : vector<8x32xf32> to vector<8x32xbf16>
      %c0_23 = arith.constant 0 : index
      %c0_24 = arith.constant 0 : index
      %c0_25 = arith.constant 0 : index
      %41 = vector.load %arg6[%c0_23, %c0_24, %c0_25] : memref<1x8x128xbf16, #tpu.memory_space<vmem>>, vector<1x8x32xbf16>
      %42 = vector.shape_cast %41 : vector<1x8x32xbf16> to vector<8x32xbf16>
      %43 = vector.shape_cast %40 : vector<8x32xbf16> to vector<1x8x32xbf16>
      tpu.vector_store %arg6[%c0_23, %c0_24, %c0_25], %43 {strides = array<i32>} : memref<1x8x128xbf16, #tpu.memory_space<vmem>>, vector<1x8x32xbf16>,
      %c1 = arith.constant 1 : index
      %c0_26 = arith.constant 0 : index
      %c0_27 = arith.constant 0 : index
      %44 = vector.load %arg8[%c1, %c0_26, %c0_27] : memref<4x8x1xf32, #tpu.memory_space<vmem>>, vector<1x8x1xf32>
      %45 = vector.shape_cast %44 : vector<1x8x1xf32> to vector<8x1xf32>
      %46 = tpu.reciprocal %45 {approx = true} : vector<8x1xf32> -> vector<8x1xf32>
      %c1_28 = arith.constant 1 : index
      %c0_29 = arith.constant 0 : index
      %c0_30 = arith.constant 0 : index
      %47 = vector.load %arg9[%c1_28, %c0_29, %c0_30] : memref<4x8x32xf32, #tpu.memory_space<vmem>>, vector<1x8x32xf32>
      %48 = vector.shape_cast %47 : vector<1x8x32xf32> to vector<8x32xf32>
      %49 = vector.broadcast %46 : vector<8x1xf32> to vector<8x32xf32>
      %50 = arith.mulf %48, %49 : vector<8x32xf32>
      %51 = arith.truncf %50 : vector<8x32xf32> to vector<8x32xbf16>
      %c0_31 = arith.constant 0 : index
      %c0_32 = arith.constant 0 : index
      %c32 = arith.constant 32 : index
      %52 = vector.load %arg6[%c0_31, %c0_32, %c32] : memref<1x8x128xbf16, #tpu.memory_space<vmem>>, vector<1x8x32xbf16>
      %53 = vector.shape_cast %52 : vector<1x8x32xbf16> to vector<8x32xbf16>
      %54 = vector.shape_cast %51 : vector<8x32xbf16> to vector<1x8x32xbf16>
      tpu.vector_store %arg6[%c0_31, %c0_32, %c32], %54 {strides = array<i32>} : memref<1x8x128xbf16, #tpu.memory_space<vmem>>, vector<1x8x32xbf16>,
      %c2 = arith.constant 2 : index
      %c0_33 = arith.constant 0 : index
      %c0_34 = arith.constant 0 : index
      %55 = vector.load %arg8[%c2, %c0_33, %c0_34] : memref<4x8x1xf32, #tpu.memory_space<vmem>>, vector<1x8x1xf32>
      %56 = vector.shape_cast %55 : vector<1x8x1xf32> to vector<8x1xf32>
      %57 = tpu.reciprocal %56 {approx = true} : vector<8x1xf32> -> vector<8x1xf32>
      %c2_35 = arith.constant 2 : index
      %c0_36 = arith.constant 0 : index
      %c0_37 = arith.constant 0 : index
      %58 = vector.load %arg9[%c2_35, %c0_36, %c0_37] : memref<4x8x32xf32, #tpu.memory_space<vmem>>, vector<1x8x32xf32>
      %59 = vector.shape_cast %58 : vector<1x8x32xf32> to vector<8x32xf32>
      %60 = vector.broadcast %57 : vector<8x1xf32> to vector<8x32xf32>
      %61 = arith.mulf %59, %60 : vector<8x32xf32>
      %62 = arith.truncf %61 : vector<8x32xf32> to vector<8x32xbf16>
      %c0_38 = arith.constant 0 : index
      %c0_39 = arith.constant 0 : index
      %c64 = arith.constant 64 : index
      %63 = vector.load %arg6[%c0_38, %c0_39, %c64] : memref<1x8x128xbf16, #tpu.memory_space<vmem>>, vector<1x8x32xbf16>
      %64 = vector.shape_cast %63 : vector<1x8x32xbf16> to vector<8x32xbf16>
      %65 = vector.shape_cast %62 : vector<8x32xbf16> to vector<1x8x32xbf16>
      tpu.vector_store %arg6[%c0_38, %c0_39, %c64], %65 {strides = array<i32>} : memref<1x8x128xbf16, #tpu.memory_space<vmem>>, vector<1x8x32xbf16>,
      %c3 = arith.constant 3 : index
      %c0_40 = arith.constant 0 : index
      %c0_41 = arith.constant 0 : index
      %66 = vector.load %arg8[%c3, %c0_40, %c0_41] : memref<4x8x1xf32, #tpu.memory_space<vmem>>, vector<1x8x1xf32>
      %67 = vector.shape_cast %66 : vector<1x8x1xf32> to vector<8x1xf32>
      %68 = tpu.reciprocal %67 {approx = true} : vector<8x1xf32> -> vector<8x1xf32>
      %c3_42 = arith.constant 3 : index
      %c0_43 = arith.constant 0 : index
      %c0_44 = arith.constant 0 : index
      %69 = vector.load %arg9[%c3_42, %c0_43, %c0_44] : memref<4x8x32xf32, #tpu.memory_space<vmem>>, vector<1x8x32xf32>
      %70 = vector.shape_cast %69 : vector<1x8x32xf32> to vector<8x32xf32>
      %71 = vector.broadcast %68 : vector<8x1xf32> to vector<8x32xf32>
      %72 = arith.mulf %70, %71 : vector<8x32xf32>
      %73 = arith.truncf %72 : vector<8x32xf32> to vector<8x32xbf16>
      %c0_45 = arith.constant 0 : index
      %c0_46 = arith.constant 0 : index
      %c96 = arith.constant 96 : index
      %74 = vector.load %arg6[%c0_45, %c0_46, %c96] : memref<1x8x128xbf16, #tpu.memory_space<vmem>>, vector<1x8x32xbf16>
      %75 = vector.shape_cast %74 : vector<1x8x32xbf16> to vector<8x32xbf16>
      %76 = vector.shape_cast %73 : vector<8x32xbf16> to vector<1x8x32xbf16>
      tpu.vector_store %arg6[%c0_45, %c0_46, %c96], %76 {strides = array<i32>} : memref<1x8x128xbf16, #tpu.memory_space<vmem>>, vector<1x8x32xbf16>,
    } else {
    }
    return
  }
  func.func @transform_0(%arg0: i32, %arg1: i32, %arg2: i32) -> (i32, i32, i32) {
    %c0_i32 = arith.constant 0 : i32
    %c0_i32_0 = arith.constant 0 : i32
    return %arg0, %arg1, %c0_i32 : i32, i32, i32
  }
  func.func @transform_1(%arg0: i32, %arg1: i32, %arg2: i32) -> (i32, i32, i32) {
    %c1_i32 = arith.constant 1 : i32
    %c0_i32 = arith.constant 0 : i32
    return %arg0, %arg2, %c1_i32 : i32, i32, i32
  }
  func.func @transform_2(%arg0: i32, %arg1: i32, %arg2: i32) -> (i32, i32, i32) {
    %c2_i32 = arith.constant 2 : i32
    %c0_i32 = arith.constant 0 : i32
    return %arg0, %arg2, %c2_i32 : i32, i32, i32
  }
  func.func @transform_3(%arg0: i32, %arg1: i32, %arg2: i32) -> (i32, i32, i32) {
    %c0_i32 = arith.constant 0 : i32
    %c0_i32_0 = arith.constant 0 : i32
    return %arg0, %arg1, %c0_i32 : i32, i32, i32
  }
}

module attributes {stable_mosaic.version = 11 : i64} {
  func.func @_add_ln_kernel(%arg0: i32, %arg1: memref<16x128xbf16, #tpu.memory_space<vmem>>, %arg2: memref<16x128xbf16, #tpu.memory_space<vmem>>, %arg3: memref<1x128xf32, #tpu.memory_space<vmem>>, %arg4: memref<1x128xf32, #tpu.memory_space<vmem>>, %arg5: memref<16x128xbf16, #tpu.memory_space<vmem>>) attributes {dimension_semantics = [#tpu.dimension_semantics<parallel>], iteration_bounds = array<i64: 1>, scalar_prefetch = 0 : i64, scratch_operands = 0 : i64, tpu.core_type = #tpu.core_type<tc>, window_params = [{transform_indices = @transform_0, window_bounds = array<i64: 16, 128>}, {transform_indices = @transform_1, window_bounds = array<i64: 16, 128>}, {pipeline_mode = #tpu.pipeline_mode<synchronous>, transform_indices = @transform_2, window_bounds = array<i64: 1, 128>}, {pipeline_mode = #tpu.pipeline_mode<synchronous>, transform_indices = @transform_3, window_bounds = array<i64: 1, 128>}, {transform_indices = @transform_4, window_bounds = array<i64: 16, 128>}]} {
    %c0 = arith.constant 0 : index
    %c0_0 = arith.constant 0 : index
    %0 = vector.load %arg1[%c0, %c0_0] : memref<16x128xbf16, #tpu.memory_space<vmem>>, vector<16x128xbf16>
    %1 = arith.extf %0 : vector<16x128xbf16> to vector<16x128xf32>
    %c0_1 = arith.constant 0 : index
    %c0_2 = arith.constant 0 : index
    %2 = vector.load %arg2[%c0_1, %c0_2] : memref<16x128xbf16, #tpu.memory_space<vmem>>, vector<16x128xbf16>
    %3 = arith.extf %2 : vector<16x128xbf16> to vector<16x128xf32>
    %4 = arith.addf %1, %3 : vector<16x128xf32>
    %cst = arith.constant dense<0.000000e+00> : vector<16xf32>
    %5 = vector.multi_reduction <add>, %4, %cst [1] : vector<16x128xf32> to vector<16xf32>
    %6 = vector.shape_cast %5 : vector<16xf32> to vector<16x1xf32>
    %cst_3 = arith.constant 1.280000e+02 : f32
    %7 = vector.broadcast %cst_3 : f32 to vector<16x1xf32>
    %8 = arith.divf %6, %7 : vector<16x1xf32>
    %9 = vector.broadcast %8 : vector<16x1xf32> to vector<16x128xf32>
    %10 = arith.subf %4, %9 : vector<16x128xf32>
    %11 = arith.mulf %10, %10 : vector<16x128xf32>
    %cst_4 = arith.constant dense<0.000000e+00> : vector<16xf32>
    %12 = vector.multi_reduction <add>, %11, %cst_4 [1] : vector<16x128xf32> to vector<16xf32>
    %13 = vector.shape_cast %12 : vector<16xf32> to vector<16x1xf32>
    %cst_5 = arith.constant 1.280000e+02 : f32
    %14 = vector.broadcast %cst_5 : f32 to vector<16x1xf32>
    %15 = arith.divf %13, %14 : vector<16x1xf32>
    %16 = vector.broadcast %8 : vector<16x1xf32> to vector<16x128xf32>
    %17 = arith.subf %4, %16 : vector<16x128xf32>
    %cst_6 = arith.constant 9.99999974E-6 : f32
    %18 = vector.broadcast %cst_6 : f32 to vector<16x1xf32>
    %19 = arith.addf %15, %18 : vector<16x1xf32>
    %20 = math.rsqrt %19 : vector<16x1xf32>
    %21 = vector.broadcast %20 : vector<16x1xf32> to vector<16x128xf32>
    %22 = arith.mulf %17, %21 : vector<16x128xf32>
    %c0_7 = arith.constant 0 : index
    %c0_8 = arith.constant 0 : index
    %23 = vector.load %arg3[%c0_7, %c0_8] : memref<1x128xf32, #tpu.memory_space<vmem>>, vector<1x128xf32>
    %24 = vector.broadcast %23 : vector<1x128xf32> to vector<16x128xf32>
    %25 = arith.mulf %22, %24 : vector<16x128xf32>
    %c0_9 = arith.constant 0 : index
    %c0_10 = arith.constant 0 : index
    %26 = vector.load %arg4[%c0_9, %c0_10] : memref<1x128xf32, #tpu.memory_space<vmem>>, vector<1x128xf32>
    %27 = vector.broadcast %26 : vector<1x128xf32> to vector<16x128xf32>
    %28 = arith.addf %25, %27 : vector<16x128xf32>
    %29 = arith.truncf %28 : vector<16x128xf32> to vector<16x128xbf16>
    %c0_11 = arith.constant 0 : index
    %c0_12 = arith.constant 0 : index
    %30 = vector.load %arg5[%c0_11, %c0_12] : memref<16x128xbf16, #tpu.memory_space<vmem>>, vector<16x128xbf16>
    tpu.vector_store %arg5[%c0_11, %c0_12], %29 {strides = array<i32>} : memref<16x128xbf16, #tpu.memory_space<vmem>>, vector<16x128xbf16>,
    return
  }
  func.func @transform_0(%arg0: i32) -> (i32, i32) {
    %c0_i32 = arith.constant 0 : i32
    %c0_i32_0 = arith.constant 0 : i32
    return %arg0, %c0_i32 : i32, i32
  }
  func.func @transform_1(%arg0: i32) -> (i32, i32) {
    %c0_i32 = arith.constant 0 : i32
    %c0_i32_0 = arith.constant 0 : i32
    return %arg0, %c0_i32 : i32, i32
  }
  func.func @transform_2(%arg0: i32) -> (i32, i32) {
    %c0_i32 = arith.constant 0 : i32
    %c0_i32_0 = arith.constant 0 : i32
    %c0_i32_1 = arith.constant 0 : i32
    return %c0_i32, %c0_i32_0 : i32, i32
  }
  func.func @transform_3(%arg0: i32) -> (i32, i32) {
    %c0_i32 = arith.constant 0 : i32
    %c0_i32_0 = arith.constant 0 : i32
    %c0_i32_1 = arith.constant 0 : i32
    return %c0_i32, %c0_i32_0 : i32, i32
  }
  func.func @transform_4(%arg0: i32) -> (i32, i32) {
    %c0_i32 = arith.constant 0 : i32
    %c0_i32_0 = arith.constant 0 : i32
    return %arg0, %c0_i32 : i32, i32
  }
}

module attributes {stable_mosaic.version = 11 : i64} {
  func.func @_flash_attn_kernel(%arg0: i32, %arg1: i32, %arg2: i32, %arg3: memref<1x8x128xbf16, #tpu.memory_space<vmem>>, %arg4: memref<1x16x128xbf16, #tpu.memory_space<vmem>>, %arg5: memref<1x16x128xbf16, #tpu.memory_space<vmem>>, %arg6: memref<1x1x16xi32, #tpu.memory_space<vmem>>, %arg7: memref<1x8x128xbf16, #tpu.memory_space<vmem>>, %arg8: memref<4x8x1xf32, #tpu.memory_space<vmem>>, %arg9: memref<4x8x1xf32, #tpu.memory_space<vmem>>, %arg10: memref<4x8x32xf32, #tpu.memory_space<vmem>>) attributes {dimension_semantics = [#tpu.dimension_semantics<parallel>, #tpu.dimension_semantics<parallel>, #tpu.dimension_semantics<arbitrary>], iteration_bounds = array<i64: 2, 1, 1>, scalar_prefetch = 0 : i64, scratch_operands = 3 : i64, tpu.core_type = #tpu.core_type<tc>, window_params = [{transform_indices = @transform_0, window_bounds = array<i64: 1, 8, 128>}, {transform_indices = @transform_1, window_bounds = array<i64: 1, 16, 128>}, {transform_indices = @transform_2, window_bounds = array<i64: 1, 16, 128>}, {transform_indices = @transform_3, window_bounds = array<i64: 1, 1, 16>}, {transform_indices = @transform_4, window_bounds = array<i64: 1, 8, 128>}]} {
    %c0_i32 = arith.constant 0 : i32
    %0 = arith.cmpi eq, %arg2, %c0_i32 : i32
    %1 = arith.extui %0 : i1 to i32
    %c0_i32_0 = arith.constant 0 : i32
    %2 = arith.cmpi ne, %1, %c0_i32_0 : i32
    scf.if %2 {
      %cst_106 = arith.constant -1.000000e+30 : f32
      %183 = vector.broadcast %cst_106 : f32 to vector<4x8x1xf32>
      %c0_107 = arith.constant 0 : index
      %c0_108 = arith.constant 0 : index
      %c0_109 = arith.constant 0 : index
      %184 = vector.load %arg8[%c0_107, %c0_108, %c0_109] : memref<4x8x1xf32, #tpu.memory_space<vmem>>, vector<4x8x1xf32>
      tpu.vector_store %arg8[%c0_107, %c0_108, %c0_109], %183 {strides = array<i32>} : memref<4x8x1xf32, #tpu.memory_space<vmem>>, vector<4x8x1xf32>,
      %cst_110 = arith.constant 0.000000e+00 : f32
      %185 = vector.broadcast %cst_110 : f32 to vector<4x8x1xf32>
      %c0_111 = arith.constant 0 : index
      %c0_112 = arith.constant 0 : index
      %c0_113 = arith.constant 0 : index
      %186 = vector.load %arg9[%c0_111, %c0_112, %c0_113] : memref<4x8x1xf32, #tpu.memory_space<vmem>>, vector<4x8x1xf32>
      tpu.vector_store %arg9[%c0_111, %c0_112, %c0_113], %185 {strides = array<i32>} : memref<4x8x1xf32, #tpu.memory_space<vmem>>, vector<4x8x1xf32>,
      %cst_114 = arith.constant 0.000000e+00 : f32
      %187 = vector.broadcast %cst_114 : f32 to vector<4x8x32xf32>
      %c0_115 = arith.constant 0 : index
      %c0_116 = arith.constant 0 : index
      %c0_117 = arith.constant 0 : index
      %188 = vector.load %arg10[%c0_115, %c0_116, %c0_117] : memref<4x8x32xf32, #tpu.memory_space<vmem>>, vector<4x8x32xf32>
      tpu.vector_store %arg10[%c0_115, %c0_116, %c0_117], %187 {strides = array<i32>} : memref<4x8x32xf32, #tpu.memory_space<vmem>>, vector<4x8x32xf32>,
    } else {
    }
    %c0 = arith.constant 0 : index
    %c0_1 = arith.constant 0 : index
    %c0_2 = arith.constant 0 : index
    %3 = vector.load %arg3[%c0, %c0_1, %c0_2] : memref<1x8x128xbf16, #tpu.memory_space<vmem>>, vector<1x8x128xbf16>
    %4 = vector.shape_cast %3 : vector<1x8x128xbf16> to vector<8x128xbf16>
    %c0_3 = arith.constant 0 : index
    %c0_4 = arith.constant 0 : index
    %c0_5 = arith.constant 0 : index
    %5 = vector.load %arg4[%c0_3, %c0_4, %c0_5] : memref<1x16x128xbf16, #tpu.memory_space<vmem>>, vector<1x16x128xbf16>
    %6 = vector.shape_cast %5 : vector<1x16x128xbf16> to vector<16x128xbf16>
    %c0_6 = arith.constant 0 : index
    %c0_7 = arith.constant 0 : index
    %c0_8 = arith.constant 0 : index
    %7 = vector.load %arg5[%c0_6, %c0_7, %c0_8] : memref<1x16x128xbf16, #tpu.memory_space<vmem>>, vector<1x16x128xbf16>
    %8 = vector.shape_cast %7 : vector<1x16x128xbf16> to vector<16x128xbf16>
    %9 = tpu.iota {dimensions = array<i32: 1>} : vector<8x16xi32>
    %c16_i32 = arith.constant 16 : i32
    %10 = arith.muli %arg2, %c16_i32 : i32
    %11 = vector.broadcast %10 : i32 to vector<8x16xi32>
    %12 = arith.addi %9, %11 : vector<8x16xi32>
    %c0_9 = arith.constant 0 : index
    %c0_10 = arith.constant 0 : index
    %c0_11 = arith.constant 0 : index
    %13 = vector.load %arg6[%c0_9, %c0_10, %c0_11] : memref<1x1x16xi32, #tpu.memory_space<vmem>>, vector<1x1x16xi32>
    %14 = vector.shape_cast %13 : vector<1x1x16xi32> to vector<1x16xi32>
    %c0_i32_12 = arith.constant 0 : i32
    %15 = vector.broadcast %c0_i32_12 : i32 to vector<1x16xi32>
    %16 = arith.cmpi sgt, %14, %15 : vector<1x16xi32>
    %c16_i32_13 = arith.constant 16 : i32
    %17 = vector.broadcast %c16_i32_13 : i32 to vector<8x16xi32>
    %18 = arith.cmpi slt, %12, %17 : vector<8x16xi32>
    %19 = vector.broadcast %16 : vector<1x16xi1> to vector<8x16xi1>
    %20 = arith.andi %19, %18 : vector<8x16xi1>
    %cst = arith.constant 0.000000e+00 : f32
    %cst_14 = arith.constant -1.000000e+04 : f32
    %21 = vector.broadcast %cst : f32 to vector<8x16xf32>
    %22 = vector.broadcast %cst_14 : f32 to vector<8x16xf32>
    %23 = arith.select %20, %21, %22 : vector<8x16xi1>, vector<8x16xf32>
    %24 = vector.extract_strided_slice %4 {offsets = [0, 0], sizes = [8, 32], strides = [1, 1]} : vector<8x128xbf16> to vector<8x32xbf16>
    %25 = vector.extract_strided_slice %6 {offsets = [0, 0], sizes = [16, 32], strides = [1, 1]} : vector<16x128xbf16> to vector<16x32xbf16>
    %cst_15 = arith.constant dense<0.000000e+00> : vector<8x16xf32>
    %26 = tpu.matmul %24, %25, %cst_15 {dimension_numbers = #tpu.dot_dimension_numbers<[1], [1], [0], [0], [0, 0, 1, 0], [], []>} : vector<8x32xbf16>, vector<16x32xbf16>, vector<8x16xf32> -> vector<8x16xf32>
    %cst_16 = arith.constant 0.176776692 : f32
    %27 = vector.broadcast %cst_16 : f32 to vector<8x16xf32>
    %28 = arith.mulf %26, %27 : vector<8x16xf32>
    %29 = arith.addf %28, %23 : vector<8x16xf32>
    %c0_17 = arith.constant 0 : index
    %c0_18 = arith.constant 0 : index
    %c0_19 = arith.constant 0 : index
    %30 = vector.load %arg8[%c0_17, %c0_18, %c0_19] : memref<4x8x1xf32, #tpu.memory_space<vmem>>, vector<1x8x1xf32>
    %31 = vector.shape_cast %30 : vector<1x8x1xf32> to vector<8x1xf32>
    %cst_20 = arith.constant dense<0xFF800000> : vector<8xf32>
    %32 = vector.multi_reduction <maximumf>, %29, %cst_20 [1] : vector<8x16xf32> to vector<8xf32>
    %33 = vector.shape_cast %32 : vector<8xf32> to vector<8x1xf32>
    %34 = arith.maximumf %31, %33 : vector<8x1xf32>
    %35 = vector.broadcast %34 : vector<8x1xf32> to vector<8x16xf32>
    %36 = arith.subf %29, %35 : vector<8x16xf32>
    %37 = math.exp %36 : vector<8x16xf32>
    %38 = arith.subf %31, %34 : vector<8x1xf32>
    %39 = math.exp %38 : vector<8x1xf32>
    %c0_21 = arith.constant 0 : index
    %c0_22 = arith.constant 0 : index
    %c0_23 = arith.constant 0 : index
    %40 = vector.load %arg9[%c0_21, %c0_22, %c0_23] : memref<4x8x1xf32, #tpu.memory_space<vmem>>, vector<1x8x1xf32>
    %41 = vector.shape_cast %40 : vector<1x8x1xf32> to vector<8x1xf32>
    %42 = arith.mulf %39, %41 : vector<8x1xf32>
    %cst_24 = arith.constant dense<0.000000e+00> : vector<8xf32>
    %43 = vector.multi_reduction <add>, %37, %cst_24 [1] : vector<8x16xf32> to vector<8xf32>
    %44 = vector.shape_cast %43 : vector<8xf32> to vector<8x1xf32>
    %45 = arith.addf %42, %44 : vector<8x1xf32>
    %c0_25 = arith.constant 0 : index
    %c0_26 = arith.constant 0 : index
    %c0_27 = arith.constant 0 : index
    %46 = vector.load %arg9[%c0_25, %c0_26, %c0_27] : memref<4x8x1xf32, #tpu.memory_space<vmem>>, vector<1x8x1xf32>
    %47 = vector.shape_cast %46 : vector<1x8x1xf32> to vector<8x1xf32>
    %48 = vector.shape_cast %45 : vector<8x1xf32> to vector<1x8x1xf32>
    tpu.vector_store %arg9[%c0_25, %c0_26, %c0_27], %48 {strides = array<i32>} : memref<4x8x1xf32, #tpu.memory_space<vmem>>, vector<1x8x1xf32>,
    %c0_28 = arith.constant 0 : index
    %c0_29 = arith.constant 0 : index
    %c0_30 = arith.constant 0 : index
    %49 = vector.load %arg10[%c0_28, %c0_29, %c0_30] : memref<4x8x32xf32, #tpu.memory_space<vmem>>, vector<1x8x32xf32>
    %50 = vector.shape_cast %49 : vector<1x8x32xf32> to vector<8x32xf32>
    %51 = vector.broadcast %39 : vector<8x1xf32> to vector<8x32xf32>
    %52 = arith.mulf %51, %50 : vector<8x32xf32>
    %53 = arith.truncf %37 : vector<8x16xf32> to vector<8x16xbf16>
    %54 = vector.extract_strided_slice %8 {offsets = [0, 0], sizes = [16, 32], strides = [1, 1]} : vector<16x128xbf16> to vector<16x32xbf16>
    %cst_31 = arith.constant dense<0.000000e+00> : vector<8x32xf32>
    %55 = tpu.matmul %53, %54, %cst_31 {dimension_numbers = #tpu.dot_dimension_numbers<[1], [0], [0], [1], [0, 0, 1, 1], [], []>} : vector<8x16xbf16>, vector<16x32xbf16>, vector<8x32xf32> -> vector<8x32xf32>
    %56 = arith.addf %52, %55 : vector<8x32xf32>
    %c0_32 = arith.constant 0 : index
    %c0_33 = arith.constant 0 : index
    %c0_34 = arith.constant 0 : index
    %57 = vector.load %arg10[%c0_32, %c0_33, %c0_34] : memref<4x8x32xf32, #tpu.memory_space<vmem>>, vector<1x8x32xf32>
    %58 = vector.shape_cast %57 : vector<1x8x32xf32> to vector<8x32xf32>
    %59 = vector.shape_cast %56 : vector<8x32xf32> to vector<1x8x32xf32>
    tpu.vector_store %arg10[%c0_32, %c0_33, %c0_34], %59 {strides = array<i32>} : memref<4x8x32xf32, #tpu.memory_space<vmem>>, vector<1x8x32xf32>,
    %c0_35 = arith.constant 0 : index
    %c0_36 = arith.constant 0 : index
    %c0_37 = arith.constant 0 : index
    %60 = vector.load %arg8[%c0_35, %c0_36, %c0_37] : memref<4x8x1xf32, #tpu.memory_space<vmem>>, vector<1x8x1xf32>
    %61 = vector.shape_cast %60 : vector<1x8x1xf32> to vector<8x1xf32>
    %62 = vector.shape_cast %34 : vector<8x1xf32> to vector<1x8x1xf32>
    tpu.vector_store %arg8[%c0_35, %c0_36, %c0_37], %62 {strides = array<i32>} : memref<4x8x1xf32, #tpu.memory_space<vmem>>, vector<1x8x1xf32>,
    %63 = vector.extract_strided_slice %4 {offsets = [0, 32], sizes = [8, 32], strides = [1, 1]} : vector<8x128xbf16> to vector<8x32xbf16>
    %64 = vector.extract_strided_slice %6 {offsets = [0, 32], sizes = [16, 32], strides = [1, 1]} : vector<16x128xbf16> to vector<16x32xbf16>
    %cst_38 = arith.constant dense<0.000000e+00> : vector<8x16xf32>
    %65 = tpu.matmul %63, %64, %cst_38 {dimension_numbers = #tpu.dot_dimension_numbers<[1], [1], [0], [0], [0, 0, 1, 0], [], []>} : vector<8x32xbf16>, vector<16x32xbf16>, vector<8x16xf32> -> vector<8x16xf32>
    %cst_39 = arith.constant 0.176776692 : f32
    %66 = vector.broadcast %cst_39 : f32 to vector<8x16xf32>
    %67 = arith.mulf %65, %66 : vector<8x16xf32>
    %68 = arith.addf %67, %23 : vector<8x16xf32>
    %c1 = arith.constant 1 : index
    %c0_40 = arith.constant 0 : index
    %c0_41 = arith.constant 0 : index
    %69 = vector.load %arg8[%c1, %c0_40, %c0_41] : memref<4x8x1xf32, #tpu.memory_space<vmem>>, vector<1x8x1xf32>
    %70 = vector.shape_cast %69 : vector<1x8x1xf32> to vector<8x1xf32>
    %cst_42 = arith.constant dense<0xFF800000> : vector<8xf32>
    %71 = vector.multi_reduction <maximumf>, %68, %cst_42 [1] : vector<8x16xf32> to vector<8xf32>
    %72 = vector.shape_cast %71 : vector<8xf32> to vector<8x1xf32>
    %73 = arith.maximumf %70, %72 : vector<8x1xf32>
    %74 = vector.broadcast %73 : vector<8x1xf32> to vector<8x16xf32>
    %75 = arith.subf %68, %74 : vector<8x16xf32>
    %76 = math.exp %75 : vector<8x16xf32>
    %77 = arith.subf %70, %73 : vector<8x1xf32>
    %78 = math.exp %77 : vector<8x1xf32>
    %c1_43 = arith.constant 1 : index
    %c0_44 = arith.constant 0 : index
    %c0_45 = arith.constant 0 : index
    %79 = vector.load %arg9[%c1_43, %c0_44, %c0_45] : memref<4x8x1xf32, #tpu.memory_space<vmem>>, vector<1x8x1xf32>
    %80 = vector.shape_cast %79 : vector<1x8x1xf32> to vector<8x1xf32>
    %81 = arith.mulf %78, %80 : vector<8x1xf32>
    %cst_46 = arith.constant dense<0.000000e+00> : vector<8xf32>
    %82 = vector.multi_reduction <add>, %76, %cst_46 [1] : vector<8x16xf32> to vector<8xf32>
    %83 = vector.shape_cast %82 : vector<8xf32> to vector<8x1xf32>
    %84 = arith.addf %81, %83 : vector<8x1xf32>
    %c1_47 = arith.constant 1 : index
    %c0_48 = arith.constant 0 : index
    %c0_49 = arith.constant 0 : index
    %85 = vector.load %arg9[%c1_47, %c0_48, %c0_49] : memref<4x8x1xf32, #tpu.memory_space<vmem>>, vector<1x8x1xf32>
    %86 = vector.shape_cast %85 : vector<1x8x1xf32> to vector<8x1xf32>
    %87 = vector.shape_cast %84 : vector<8x1xf32> to vector<1x8x1xf32>
    tpu.vector_store %arg9[%c1_47, %c0_48, %c0_49], %87 {strides = array<i32>} : memref<4x8x1xf32, #tpu.memory_space<vmem>>, vector<1x8x1xf32>,
    %c1_50 = arith.constant 1 : index
    %c0_51 = arith.constant 0 : index
    %c0_52 = arith.constant 0 : index
    %88 = vector.load %arg10[%c1_50, %c0_51, %c0_52] : memref<4x8x32xf32, #tpu.memory_space<vmem>>, vector<1x8x32xf32>
    %89 = vector.shape_cast %88 : vector<1x8x32xf32> to vector<8x32xf32>
    %90 = vector.broadcast %78 : vector<8x1xf32> to vector<8x32xf32>
    %91 = arith.mulf %90, %89 : vector<8x32xf32>
    %92 = arith.truncf %76 : vector<8x16xf32> to vector<8x16xbf16>
    %93 = vector.extract_strided_slice %8 {offsets = [0, 32], sizes = [16, 32], strides = [1, 1]} : vector<16x128xbf16> to vector<16x32xbf16>
    %cst_53 = arith.constant dense<0.000000e+00> : vector<8x32xf32>
    %94 = tpu.matmul %92, %93, %cst_53 {dimension_numbers = #tpu.dot_dimension_numbers<[1], [0], [0], [1], [0, 0, 1, 1], [], []>} : vector<8x16xbf16>, vector<16x32xbf16>, vector<8x32xf32> -> vector<8x32xf32>
    %95 = arith.addf %91, %94 : vector<8x32xf32>
    %c1_54 = arith.constant 1 : index
    %c0_55 = arith.constant 0 : index
    %c0_56 = arith.constant 0 : index
    %96 = vector.load %arg10[%c1_54, %c0_55, %c0_56] : memref<4x8x32xf32, #tpu.memory_space<vmem>>, vector<1x8x32xf32>
    %97 = vector.shape_cast %96 : vector<1x8x32xf32> to vector<8x32xf32>
    %98 = vector.shape_cast %95 : vector<8x32xf32> to vector<1x8x32xf32>
    tpu.vector_store %arg10[%c1_54, %c0_55, %c0_56], %98 {strides = array<i32>} : memref<4x8x32xf32, #tpu.memory_space<vmem>>, vector<1x8x32xf32>,
    %c1_57 = arith.constant 1 : index
    %c0_58 = arith.constant 0 : index
    %c0_59 = arith.constant 0 : index
    %99 = vector.load %arg8[%c1_57, %c0_58, %c0_59] : memref<4x8x1xf32, #tpu.memory_space<vmem>>, vector<1x8x1xf32>
    %100 = vector.shape_cast %99 : vector<1x8x1xf32> to vector<8x1xf32>
    %101 = vector.shape_cast %73 : vector<8x1xf32> to vector<1x8x1xf32>
    tpu.vector_store %arg8[%c1_57, %c0_58, %c0_59], %101 {strides = array<i32>} : memref<4x8x1xf32, #tpu.memory_space<vmem>>, vector<1x8x1xf32>,
    %102 = vector.extract_strided_slice %4 {offsets = [0, 64], sizes = [8, 32], strides = [1, 1]} : vector<8x128xbf16> to vector<8x32xbf16>
    %103 = vector.extract_strided_slice %6 {offsets = [0, 64], sizes = [16, 32], strides = [1, 1]} : vector<16x128xbf16> to vector<16x32xbf16>
    %cst_60 = arith.constant dense<0.000000e+00> : vector<8x16xf32>
    %104 = tpu.matmul %102, %103, %cst_60 {dimension_numbers = #tpu.dot_dimension_numbers<[1], [1], [0], [0], [0, 0, 1, 0], [], []>} : vector<8x32xbf16>, vector<16x32xbf16>, vector<8x16xf32> -> vector<8x16xf32>
    %cst_61 = arith.constant 0.176776692 : f32
    %105 = vector.broadcast %cst_61 : f32 to vector<8x16xf32>
    %106 = arith.mulf %104, %105 : vector<8x16xf32>
    %107 = arith.addf %106, %23 : vector<8x16xf32>
    %c2 = arith.constant 2 : index
    %c0_62 = arith.constant 0 : index
    %c0_63 = arith.constant 0 : index
    %108 = vector.load %arg8[%c2, %c0_62, %c0_63] : memref<4x8x1xf32, #tpu.memory_space<vmem>>, vector<1x8x1xf32>
    %109 = vector.shape_cast %108 : vector<1x8x1xf32> to vector<8x1xf32>
    %cst_64 = arith.constant dense<0xFF800000> : vector<8xf32>
    %110 = vector.multi_reduction <maximumf>, %107, %cst_64 [1] : vector<8x16xf32> to vector<8xf32>
    %111 = vector.shape_cast %110 : vector<8xf32> to vector<8x1xf32>
    %112 = arith.maximumf %109, %111 : vector<8x1xf32>
    %113 = vector.broadcast %112 : vector<8x1xf32> to vector<8x16xf32>
    %114 = arith.subf %107, %113 : vector<8x16xf32>
    %115 = math.exp %114 : vector<8x16xf32>
    %116 = arith.subf %109, %112 : vector<8x1xf32>
    %117 = math.exp %116 : vector<8x1xf32>
    %c2_65 = arith.constant 2 : index
    %c0_66 = arith.constant 0 : index
    %c0_67 = arith.constant 0 : index
    %118 = vector.load %arg9[%c2_65, %c0_66, %c0_67] : memref<4x8x1xf32, #tpu.memory_space<vmem>>, vector<1x8x1xf32>
    %119 = vector.shape_cast %118 : vector<1x8x1xf32> to vector<8x1xf32>
    %120 = arith.mulf %117, %119 : vector<8x1xf32>
    %cst_68 = arith.constant dense<0.000000e+00> : vector<8xf32>
    %121 = vector.multi_reduction <add>, %115, %cst_68 [1] : vector<8x16xf32> to vector<8xf32>
    %122 = vector.shape_cast %121 : vector<8xf32> to vector<8x1xf32>
    %123 = arith.addf %120, %122 : vector<8x1xf32>
    %c2_69 = arith.constant 2 : index
    %c0_70 = arith.constant 0 : index
    %c0_71 = arith.constant 0 : index
    %124 = vector.load %arg9[%c2_69, %c0_70, %c0_71] : memref<4x8x1xf32, #tpu.memory_space<vmem>>, vector<1x8x1xf32>
    %125 = vector.shape_cast %124 : vector<1x8x1xf32> to vector<8x1xf32>
    %126 = vector.shape_cast %123 : vector<8x1xf32> to vector<1x8x1xf32>
    tpu.vector_store %arg9[%c2_69, %c0_70, %c0_71], %126 {strides = array<i32>} : memref<4x8x1xf32, #tpu.memory_space<vmem>>, vector<1x8x1xf32>,
    %c2_72 = arith.constant 2 : index
    %c0_73 = arith.constant 0 : index
    %c0_74 = arith.constant 0 : index
    %127 = vector.load %arg10[%c2_72, %c0_73, %c0_74] : memref<4x8x32xf32, #tpu.memory_space<vmem>>, vector<1x8x32xf32>
    %128 = vector.shape_cast %127 : vector<1x8x32xf32> to vector<8x32xf32>
    %129 = vector.broadcast %117 : vector<8x1xf32> to vector<8x32xf32>
    %130 = arith.mulf %129, %128 : vector<8x32xf32>
    %131 = arith.truncf %115 : vector<8x16xf32> to vector<8x16xbf16>
    %132 = vector.extract_strided_slice %8 {offsets = [0, 64], sizes = [16, 32], strides = [1, 1]} : vector<16x128xbf16> to vector<16x32xbf16>
    %cst_75 = arith.constant dense<0.000000e+00> : vector<8x32xf32>
    %133 = tpu.matmul %131, %132, %cst_75 {dimension_numbers = #tpu.dot_dimension_numbers<[1], [0], [0], [1], [0, 0, 1, 1], [], []>} : vector<8x16xbf16>, vector<16x32xbf16>, vector<8x32xf32> -> vector<8x32xf32>
    %134 = arith.addf %130, %133 : vector<8x32xf32>
    %c2_76 = arith.constant 2 : index
    %c0_77 = arith.constant 0 : index
    %c0_78 = arith.constant 0 : index
    %135 = vector.load %arg10[%c2_76, %c0_77, %c0_78] : memref<4x8x32xf32, #tpu.memory_space<vmem>>, vector<1x8x32xf32>
    %136 = vector.shape_cast %135 : vector<1x8x32xf32> to vector<8x32xf32>
    %137 = vector.shape_cast %134 : vector<8x32xf32> to vector<1x8x32xf32>
    tpu.vector_store %arg10[%c2_76, %c0_77, %c0_78], %137 {strides = array<i32>} : memref<4x8x32xf32, #tpu.memory_space<vmem>>, vector<1x8x32xf32>,
    %c2_79 = arith.constant 2 : index
    %c0_80 = arith.constant 0 : index
    %c0_81 = arith.constant 0 : index
    %138 = vector.load %arg8[%c2_79, %c0_80, %c0_81] : memref<4x8x1xf32, #tpu.memory_space<vmem>>, vector<1x8x1xf32>
    %139 = vector.shape_cast %138 : vector<1x8x1xf32> to vector<8x1xf32>
    %140 = vector.shape_cast %112 : vector<8x1xf32> to vector<1x8x1xf32>
    tpu.vector_store %arg8[%c2_79, %c0_80, %c0_81], %140 {strides = array<i32>} : memref<4x8x1xf32, #tpu.memory_space<vmem>>, vector<1x8x1xf32>,
    %141 = vector.extract_strided_slice %4 {offsets = [0, 96], sizes = [8, 32], strides = [1, 1]} : vector<8x128xbf16> to vector<8x32xbf16>
    %142 = vector.extract_strided_slice %6 {offsets = [0, 96], sizes = [16, 32], strides = [1, 1]} : vector<16x128xbf16> to vector<16x32xbf16>
    %cst_82 = arith.constant dense<0.000000e+00> : vector<8x16xf32>
    %143 = tpu.matmul %141, %142, %cst_82 {dimension_numbers = #tpu.dot_dimension_numbers<[1], [1], [0], [0], [0, 0, 1, 0], [], []>} : vector<8x32xbf16>, vector<16x32xbf16>, vector<8x16xf32> -> vector<8x16xf32>
    %cst_83 = arith.constant 0.176776692 : f32
    %144 = vector.broadcast %cst_83 : f32 to vector<8x16xf32>
    %145 = arith.mulf %143, %144 : vector<8x16xf32>
    %146 = arith.addf %145, %23 : vector<8x16xf32>
    %c3 = arith.constant 3 : index
    %c0_84 = arith.constant 0 : index
    %c0_85 = arith.constant 0 : index
    %147 = vector.load %arg8[%c3, %c0_84, %c0_85] : memref<4x8x1xf32, #tpu.memory_space<vmem>>, vector<1x8x1xf32>
    %148 = vector.shape_cast %147 : vector<1x8x1xf32> to vector<8x1xf32>
    %cst_86 = arith.constant dense<0xFF800000> : vector<8xf32>
    %149 = vector.multi_reduction <maximumf>, %146, %cst_86 [1] : vector<8x16xf32> to vector<8xf32>
    %150 = vector.shape_cast %149 : vector<8xf32> to vector<8x1xf32>
    %151 = arith.maximumf %148, %150 : vector<8x1xf32>
    %152 = vector.broadcast %151 : vector<8x1xf32> to vector<8x16xf32>
    %153 = arith.subf %146, %152 : vector<8x16xf32>
    %154 = math.exp %153 : vector<8x16xf32>
    %155 = arith.subf %148, %151 : vector<8x1xf32>
    %156 = math.exp %155 : vector<8x1xf32>
    %c3_87 = arith.constant 3 : index
    %c0_88 = arith.constant 0 : index
    %c0_89 = arith.constant 0 : index
    %157 = vector.load %arg9[%c3_87, %c0_88, %c0_89] : memref<4x8x1xf32, #tpu.memory_space<vmem>>, vector<1x8x1xf32>
    %158 = vector.shape_cast %157 : vector<1x8x1xf32> to vector<8x1xf32>
    %159 = arith.mulf %156, %158 : vector<8x1xf32>
    %cst_90 = arith.constant dense<0.000000e+00> : vector<8xf32>
    %160 = vector.multi_reduction <add>, %154, %cst_90 [1] : vector<8x16xf32> to vector<8xf32>
    %161 = vector.shape_cast %160 : vector<8xf32> to vector<8x1xf32>
    %162 = arith.addf %159, %161 : vector<8x1xf32>
    %c3_91 = arith.constant 3 : index
    %c0_92 = arith.constant 0 : index
    %c0_93 = arith.constant 0 : index
    %163 = vector.load %arg9[%c3_91, %c0_92, %c0_93] : memref<4x8x1xf32, #tpu.memory_space<vmem>>, vector<1x8x1xf32>
    %164 = vector.shape_cast %163 : vector<1x8x1xf32> to vector<8x1xf32>
    %165 = vector.shape_cast %162 : vector<8x1xf32> to vector<1x8x1xf32>
    tpu.vector_store %arg9[%c3_91, %c0_92, %c0_93], %165 {strides = array<i32>} : memref<4x8x1xf32, #tpu.memory_space<vmem>>, vector<1x8x1xf32>,
    %c3_94 = arith.constant 3 : index
    %c0_95 = arith.constant 0 : index
    %c0_96 = arith.constant 0 : index
    %166 = vector.load %arg10[%c3_94, %c0_95, %c0_96] : memref<4x8x32xf32, #tpu.memory_space<vmem>>, vector<1x8x32xf32>
    %167 = vector.shape_cast %166 : vector<1x8x32xf32> to vector<8x32xf32>
    %168 = vector.broadcast %156 : vector<8x1xf32> to vector<8x32xf32>
    %169 = arith.mulf %168, %167 : vector<8x32xf32>
    %170 = arith.truncf %154 : vector<8x16xf32> to vector<8x16xbf16>
    %171 = vector.extract_strided_slice %8 {offsets = [0, 96], sizes = [16, 32], strides = [1, 1]} : vector<16x128xbf16> to vector<16x32xbf16>
    %cst_97 = arith.constant dense<0.000000e+00> : vector<8x32xf32>
    %172 = tpu.matmul %170, %171, %cst_97 {dimension_numbers = #tpu.dot_dimension_numbers<[1], [0], [0], [1], [0, 0, 1, 1], [], []>} : vector<8x16xbf16>, vector<16x32xbf16>, vector<8x32xf32> -> vector<8x32xf32>
    %173 = arith.addf %169, %172 : vector<8x32xf32>
    %c3_98 = arith.constant 3 : index
    %c0_99 = arith.constant 0 : index
    %c0_100 = arith.constant 0 : index
    %174 = vector.load %arg10[%c3_98, %c0_99, %c0_100] : memref<4x8x32xf32, #tpu.memory_space<vmem>>, vector<1x8x32xf32>
    %175 = vector.shape_cast %174 : vector<1x8x32xf32> to vector<8x32xf32>
    %176 = vector.shape_cast %173 : vector<8x32xf32> to vector<1x8x32xf32>
    tpu.vector_store %arg10[%c3_98, %c0_99, %c0_100], %176 {strides = array<i32>} : memref<4x8x32xf32, #tpu.memory_space<vmem>>, vector<1x8x32xf32>,
    %c3_101 = arith.constant 3 : index
    %c0_102 = arith.constant 0 : index
    %c0_103 = arith.constant 0 : index
    %177 = vector.load %arg8[%c3_101, %c0_102, %c0_103] : memref<4x8x1xf32, #tpu.memory_space<vmem>>, vector<1x8x1xf32>
    %178 = vector.shape_cast %177 : vector<1x8x1xf32> to vector<8x1xf32>
    %179 = vector.shape_cast %151 : vector<8x1xf32> to vector<1x8x1xf32>
    tpu.vector_store %arg8[%c3_101, %c0_102, %c0_103], %179 {strides = array<i32>} : memref<4x8x1xf32, #tpu.memory_space<vmem>>, vector<1x8x1xf32>,
    %c0_i32_104 = arith.constant 0 : i32
    %180 = arith.cmpi eq, %arg2, %c0_i32_104 : i32
    %181 = arith.extui %180 : i1 to i32
    %c0_i32_105 = arith.constant 0 : i32
    %182 = arith.cmpi ne, %181, %c0_i32_105 : i32
    scf.if %182 {
      %c0_106 = arith.constant 0 : index
      %c0_107 = arith.constant 0 : index
      %c0_108 = arith.constant 0 : index
      %183 = vector.load %arg9[%c0_106, %c0_107, %c0_108] : memref<4x8x1xf32, #tpu.memory_space<vmem>>, vector<1x8x1xf32>
      %184 = vector.shape_cast %183 : vector<1x8x1xf32> to vector<8x1xf32>
      %185 = tpu.reciprocal %184 {approx = true} : vector<8x1xf32> -> vector<8x1xf32>
      %c0_109 = arith.constant 0 : index
      %c0_110 = arith.constant 0 : index
      %c0_111 = arith.constant 0 : index
      %186 = vector.load %arg10[%c0_109, %c0_110, %c0_111] : memref<4x8x32xf32, #tpu.memory_space<vmem>>, vector<1x8x32xf32>
      %187 = vector.shape_cast %186 : vector<1x8x32xf32> to vector<8x32xf32>
      %188 = vector.broadcast %185 : vector<8x1xf32> to vector<8x32xf32>
      %189 = arith.mulf %187, %188 : vector<8x32xf32>
      %190 = arith.truncf %189 : vector<8x32xf32> to vector<8x32xbf16>
      %c0_112 = arith.constant 0 : index
      %c0_113 = arith.constant 0 : index
      %c0_114 = arith.constant 0 : index
      %191 = vector.load %arg7[%c0_112, %c0_113, %c0_114] : memref<1x8x128xbf16, #tpu.memory_space<vmem>>, vector<1x8x32xbf16>
      %192 = vector.shape_cast %191 : vector<1x8x32xbf16> to vector<8x32xbf16>
      %193 = vector.shape_cast %190 : vector<8x32xbf16> to vector<1x8x32xbf16>
      tpu.vector_store %arg7[%c0_112, %c0_113, %c0_114], %193 {strides = array<i32>} : memref<1x8x128xbf16, #tpu.memory_space<vmem>>, vector<1x8x32xbf16>,
      %c1_115 = arith.constant 1 : index
      %c0_116 = arith.constant 0 : index
      %c0_117 = arith.constant 0 : index
      %194 = vector.load %arg9[%c1_115, %c0_116, %c0_117] : memref<4x8x1xf32, #tpu.memory_space<vmem>>, vector<1x8x1xf32>
      %195 = vector.shape_cast %194 : vector<1x8x1xf32> to vector<8x1xf32>
      %196 = tpu.reciprocal %195 {approx = true} : vector<8x1xf32> -> vector<8x1xf32>
      %c1_118 = arith.constant 1 : index
      %c0_119 = arith.constant 0 : index
      %c0_120 = arith.constant 0 : index
      %197 = vector.load %arg10[%c1_118, %c0_119, %c0_120] : memref<4x8x32xf32, #tpu.memory_space<vmem>>, vector<1x8x32xf32>
      %198 = vector.shape_cast %197 : vector<1x8x32xf32> to vector<8x32xf32>
      %199 = vector.broadcast %196 : vector<8x1xf32> to vector<8x32xf32>
      %200 = arith.mulf %198, %199 : vector<8x32xf32>
      %201 = arith.truncf %200 : vector<8x32xf32> to vector<8x32xbf16>
      %c0_121 = arith.constant 0 : index
      %c0_122 = arith.constant 0 : index
      %c32 = arith.constant 32 : index
      %202 = vector.load %arg7[%c0_121, %c0_122, %c32] : memref<1x8x128xbf16, #tpu.memory_space<vmem>>, vector<1x8x32xbf16>
      %203 = vector.shape_cast %202 : vector<1x8x32xbf16> to vector<8x32xbf16>
      %204 = vector.shape_cast %201 : vector<8x32xbf16> to vector<1x8x32xbf16>
      tpu.vector_store %arg7[%c0_121, %c0_122, %c32], %204 {strides = array<i32>} : memref<1x8x128xbf16, #tpu.memory_space<vmem>>, vector<1x8x32xbf16>,
      %c2_123 = arith.constant 2 : index
      %c0_124 = arith.constant 0 : index
      %c0_125 = arith.constant 0 : index
      %205 = vector.load %arg9[%c2_123, %c0_124, %c0_125] : memref<4x8x1xf32, #tpu.memory_space<vmem>>, vector<1x8x1xf32>
      %206 = vector.shape_cast %205 : vector<1x8x1xf32> to vector<8x1xf32>
      %207 = tpu.reciprocal %206 {approx = true} : vector<8x1xf32> -> vector<8x1xf32>
      %c2_126 = arith.constant 2 : index
      %c0_127 = arith.constant 0 : index
      %c0_128 = arith.constant 0 : index
      %208 = vector.load %arg10[%c2_126, %c0_127, %c0_128] : memref<4x8x32xf32, #tpu.memory_space<vmem>>, vector<1x8x32xf32>
      %209 = vector.shape_cast %208 : vector<1x8x32xf32> to vector<8x32xf32>
      %210 = vector.broadcast %207 : vector<8x1xf32> to vector<8x32xf32>
      %211 = arith.mulf %209, %210 : vector<8x32xf32>
      %212 = arith.truncf %211 : vector<8x32xf32> to vector<8x32xbf16>
      %c0_129 = arith.constant 0 : index
      %c0_130 = arith.constant 0 : index
      %c64 = arith.constant 64 : index
      %213 = vector.load %arg7[%c0_129, %c0_130, %c64] : memref<1x8x128xbf16, #tpu.memory_space<vmem>>, vector<1x8x32xbf16>
      %214 = vector.shape_cast %213 : vector<1x8x32xbf16> to vector<8x32xbf16>
      %215 = vector.shape_cast %212 : vector<8x32xbf16> to vector<1x8x32xbf16>
      tpu.vector_store %arg7[%c0_129, %c0_130, %c64], %215 {strides = array<i32>} : memref<1x8x128xbf16, #tpu.memory_space<vmem>>, vector<1x8x32xbf16>,
      %c3_131 = arith.constant 3 : index
      %c0_132 = arith.constant 0 : index
      %c0_133 = arith.constant 0 : index
      %216 = vector.load %arg9[%c3_131, %c0_132, %c0_133] : memref<4x8x1xf32, #tpu.memory_space<vmem>>, vector<1x8x1xf32>
      %217 = vector.shape_cast %216 : vector<1x8x1xf32> to vector<8x1xf32>
      %218 = tpu.reciprocal %217 {approx = true} : vector<8x1xf32> -> vector<8x1xf32>
      %c3_134 = arith.constant 3 : index
      %c0_135 = arith.constant 0 : index
      %c0_136 = arith.constant 0 : index
      %219 = vector.load %arg10[%c3_134, %c0_135, %c0_136] : memref<4x8x32xf32, #tpu.memory_space<vmem>>, vector<1x8x32xf32>
      %220 = vector.shape_cast %219 : vector<1x8x32xf32> to vector<8x32xf32>
      %221 = vector.broadcast %218 : vector<8x1xf32> to vector<8x32xf32>
      %222 = arith.mulf %220, %221 : vector<8x32xf32>
      %223 = arith.truncf %222 : vector<8x32xf32> to vector<8x32xbf16>
      %c0_137 = arith.constant 0 : index
      %c0_138 = arith.constant 0 : index
      %c96 = arith.constant 96 : index
      %224 = vector.load %arg7[%c0_137, %c0_138, %c96] : memref<1x8x128xbf16, #tpu.memory_space<vmem>>, vector<1x8x32xbf16>
      %225 = vector.shape_cast %224 : vector<1x8x32xbf16> to vector<8x32xbf16>
      %226 = vector.shape_cast %223 : vector<8x32xbf16> to vector<1x8x32xbf16>
      tpu.vector_store %arg7[%c0_137, %c0_138, %c96], %226 {strides = array<i32>} : memref<1x8x128xbf16, #tpu.memory_space<vmem>>, vector<1x8x32xbf16>,
    } else {
    }
    return
  }
  func.func @transform_0(%arg0: i32, %arg1: i32, %arg2: i32) -> (i32, i32, i32) {
    %c0_i32 = arith.constant 0 : i32
    %c0_i32_0 = arith.constant 0 : i32
    return %arg0, %arg1, %c0_i32 : i32, i32, i32
  }
  func.func @transform_1(%arg0: i32, %arg1: i32, %arg2: i32) -> (i32, i32, i32) {
    %c0_i32 = arith.constant 0 : i32
    %c0_i32_0 = arith.constant 0 : i32
    return %arg0, %arg2, %c0_i32 : i32, i32, i32
  }
  func.func @transform_2(%arg0: i32, %arg1: i32, %arg2: i32) -> (i32, i32, i32) {
    %c1_i32 = arith.constant 1 : i32
    %c0_i32 = arith.constant 0 : i32
    return %arg0, %arg2, %c1_i32 : i32, i32, i32
  }
  func.func @transform_3(%arg0: i32, %arg1: i32, %arg2: i32) -> (i32, i32, i32) {
    %c0_i32 = arith.constant 0 : i32
    %c0_i32_0 = arith.constant 0 : i32
    return %arg0, %c0_i32, %arg2 : i32, i32, i32
  }
  func.func @transform_4(%arg0: i32, %arg1: i32, %arg2: i32) -> (i32, i32, i32) {
    %c0_i32 = arith.constant 0 : i32
    %c0_i32_0 = arith.constant 0 : i32
    return %arg0, %arg1, %c0_i32 : i32, i32, i32
  }
}

module attributes {stable_mosaic.version = 11 : i64} {
  func.func @_linear_kernel(%arg0: i32, %arg1: i32, %arg2: memref<32x128xbf16, #tpu.memory_space<vmem>>, %arg3: memref<128x256xbf16, #tpu.memory_space<vmem>>, %arg4: memref<1x256xf32, #tpu.memory_space<vmem>>, %arg5: memref<32x256xbf16, #tpu.memory_space<vmem>>) attributes {dimension_semantics = [#tpu.dimension_semantics<parallel>, #tpu.dimension_semantics<parallel>], iteration_bounds = array<i64: 1, 1>, scalar_prefetch = 0 : i64, scratch_operands = 0 : i64, tpu.core_type = #tpu.core_type<tc>, window_params = [{transform_indices = @transform_0, window_bounds = array<i64: 32, 128>}, {transform_indices = @transform_1, window_bounds = array<i64: 128, 256>}, {transform_indices = @transform_2, window_bounds = array<i64: 1, 256>}, {transform_indices = @transform_3, window_bounds = array<i64: 32, 256>}]} {
    %c0 = arith.constant 0 : index
    %c0_0 = arith.constant 0 : index
    %0 = vector.load %arg2[%c0, %c0_0] : memref<32x128xbf16, #tpu.memory_space<vmem>>, vector<32x128xbf16>
    %c0_1 = arith.constant 0 : index
    %c0_2 = arith.constant 0 : index
    %1 = vector.load %arg3[%c0_1, %c0_2] : memref<128x256xbf16, #tpu.memory_space<vmem>>, vector<128x256xbf16>
    %cst = arith.constant dense<0.000000e+00> : vector<32x256xf32>
    %2 = tpu.matmul %0, %1, %cst {dimension_numbers = #tpu.dot_dimension_numbers<[1], [0], [0], [1], [0, 0, 1, 1], [], []>} : vector<32x128xbf16>, vector<128x256xbf16>, vector<32x256xf32> -> vector<32x256xf32>
    %c0_3 = arith.constant 0 : index
    %c0_4 = arith.constant 0 : index
    %3 = vector.load %arg4[%c0_3, %c0_4] : memref<1x256xf32, #tpu.memory_space<vmem>>, vector<1x256xf32>
    %4 = vector.broadcast %3 : vector<1x256xf32> to vector<32x256xf32>
    %5 = arith.addf %2, %4 : vector<32x256xf32>
    %6 = arith.truncf %5 : vector<32x256xf32> to vector<32x256xbf16>
    %c0_5 = arith.constant 0 : index
    %c0_6 = arith.constant 0 : index
    %7 = vector.load %arg5[%c0_5, %c0_6] : memref<32x256xbf16, #tpu.memory_space<vmem>>, vector<32x256xbf16>
    tpu.vector_store %arg5[%c0_5, %c0_6], %6 {strides = array<i32>} : memref<32x256xbf16, #tpu.memory_space<vmem>>, vector<32x256xbf16>,
    return
  }
  func.func @transform_0(%arg0: i32, %arg1: i32) -> (i32, i32) {
    %c0_i32 = arith.constant 0 : i32
    %c0_i32_0 = arith.constant 0 : i32
    return %arg0, %c0_i32 : i32, i32
  }
  func.func @transform_1(%arg0: i32, %arg1: i32) -> (i32, i32) {
    %c0_i32 = arith.constant 0 : i32
    %c0_i32_0 = arith.constant 0 : i32
    return %c0_i32, %arg1 : i32, i32
  }
  func.func @transform_2(%arg0: i32, %arg1: i32) -> (i32, i32) {
    %c0_i32 = arith.constant 0 : i32
    %c0_i32_0 = arith.constant 0 : i32
    return %c0_i32, %arg1 : i32, i32
  }
  func.func @transform_3(%arg0: i32, %arg1: i32) -> (i32, i32) {
    %c0_i32 = arith.constant 0 : i32
    return %arg0, %arg1 : i32, i32
  }
}

module attributes {stable_mosaic.version = 11 : i64} {
  func.func @_linear_kernel(%arg0: i32, %arg1: i32, %arg2: memref<16x128xbf16, #tpu.memory_space<vmem>>, %arg3: memref<128x512xbf16, #tpu.memory_space<vmem>>, %arg4: memref<1x512xf32, #tpu.memory_space<vmem>>, %arg5: memref<16x512xbf16, #tpu.memory_space<vmem>>) attributes {dimension_semantics = [#tpu.dimension_semantics<parallel>, #tpu.dimension_semantics<parallel>], iteration_bounds = array<i64: 1, 1>, scalar_prefetch = 0 : i64, scratch_operands = 0 : i64, tpu.core_type = #tpu.core_type<tc>, window_params = [{transform_indices = @transform_0, window_bounds = array<i64: 16, 128>}, {transform_indices = @transform_1, window_bounds = array<i64: 128, 512>}, {transform_indices = @transform_2, window_bounds = array<i64: 1, 512>}, {transform_indices = @transform_3, window_bounds = array<i64: 16, 512>}]} {
    %c0 = arith.constant 0 : index
    %c0_0 = arith.constant 0 : index
    %0 = vector.load %arg2[%c0, %c0_0] : memref<16x128xbf16, #tpu.memory_space<vmem>>, vector<16x128xbf16>
    %c0_1 = arith.constant 0 : index
    %c0_2 = arith.constant 0 : index
    %1 = vector.load %arg3[%c0_1, %c0_2] : memref<128x512xbf16, #tpu.memory_space<vmem>>, vector<128x512xbf16>
    %cst = arith.constant dense<0.000000e+00> : vector<16x512xf32>
    %2 = tpu.matmul %0, %1, %cst {dimension_numbers = #tpu.dot_dimension_numbers<[1], [0], [0], [1], [0, 0, 1, 1], [], []>} : vector<16x128xbf16>, vector<128x512xbf16>, vector<16x512xf32> -> vector<16x512xf32>
    %c0_3 = arith.constant 0 : index
    %c0_4 = arith.constant 0 : index
    %3 = vector.load %arg4[%c0_3, %c0_4] : memref<1x512xf32, #tpu.memory_space<vmem>>, vector<1x512xf32>
    %4 = vector.broadcast %3 : vector<1x512xf32> to vector<16x512xf32>
    %5 = arith.addf %2, %4 : vector<16x512xf32>
    %cst_5 = arith.constant 0.000000e+00 : f32
    %6 = vector.broadcast %cst_5 : f32 to vector<16x512xf32>
    %7 = arith.maximumf %5, %6 : vector<16x512xf32>
    %8 = arith.truncf %7 : vector<16x512xf32> to vector<16x512xbf16>
    %c0_6 = arith.constant 0 : index
    %c0_7 = arith.constant 0 : index
    %9 = vector.load %arg5[%c0_6, %c0_7] : memref<16x512xbf16, #tpu.memory_space<vmem>>, vector<16x512xbf16>
    tpu.vector_store %arg5[%c0_6, %c0_7], %8 {strides = array<i32>} : memref<16x512xbf16, #tpu.memory_space<vmem>>, vector<16x512xbf16>,
    return
  }
  func.func @transform_0(%arg0: i32, %arg1: i32) -> (i32, i32) {
    %c0_i32 = arith.constant 0 : i32
    %c0_i32_0 = arith.constant 0 : i32
    return %arg0, %c0_i32 : i32, i32
  }
  func.func @transform_1(%arg0: i32, %arg1: i32) -> (i32, i32) {
    %c0_i32 = arith.constant 0 : i32
    %c0_i32_0 = arith.constant 0 : i32
    return %c0_i32, %arg1 : i32, i32
  }
  func.func @transform_2(%arg0: i32, %arg1: i32) -> (i32, i32) {
    %c0_i32 = arith.constant 0 : i32
    %c0_i32_0 = arith.constant 0 : i32
    return %c0_i32, %arg1 : i32, i32
  }
  func.func @transform_3(%arg0: i32, %arg1: i32) -> (i32, i32) {
    %c0_i32 = arith.constant 0 : i32
    return %arg0, %arg1 : i32, i32
  }
}

module attributes {stable_mosaic.version = 11 : i64} {
  func.func @_linear_kernel(%arg0: i32, %arg1: i32, %arg2: memref<16x512xbf16, #tpu.memory_space<vmem>>, %arg3: memref<512x128xbf16, #tpu.memory_space<vmem>>, %arg4: memref<1x128xf32, #tpu.memory_space<vmem>>, %arg5: memref<16x128xbf16, #tpu.memory_space<vmem>>) attributes {dimension_semantics = [#tpu.dimension_semantics<parallel>, #tpu.dimension_semantics<parallel>], iteration_bounds = array<i64: 1, 1>, scalar_prefetch = 0 : i64, scratch_operands = 0 : i64, tpu.core_type = #tpu.core_type<tc>, window_params = [{transform_indices = @transform_0, window_bounds = array<i64: 16, 512>}, {transform_indices = @transform_1, window_bounds = array<i64: 512, 128>}, {transform_indices = @transform_2, window_bounds = array<i64: 1, 128>}, {transform_indices = @transform_3, window_bounds = array<i64: 16, 128>}]} {
    %c0 = arith.constant 0 : index
    %c0_0 = arith.constant 0 : index
    %0 = vector.load %arg2[%c0, %c0_0] : memref<16x512xbf16, #tpu.memory_space<vmem>>, vector<16x512xbf16>
    %c0_1 = arith.constant 0 : index
    %c0_2 = arith.constant 0 : index
    %1 = vector.load %arg3[%c0_1, %c0_2] : memref<512x128xbf16, #tpu.memory_space<vmem>>, vector<512x128xbf16>
    %cst = arith.constant dense<0.000000e+00> : vector<16x128xf32>
    %2 = tpu.matmul %0, %1, %cst {dimension_numbers = #tpu.dot_dimension_numbers<[1], [0], [0], [1], [0, 0, 1, 1], [], []>} : vector<16x512xbf16>, vector<512x128xbf16>, vector<16x128xf32> -> vector<16x128xf32>
    %c0_3 = arith.constant 0 : index
    %c0_4 = arith.constant 0 : index
    %3 = vector.load %arg4[%c0_3, %c0_4] : memref<1x128xf32, #tpu.memory_space<vmem>>, vector<1x128xf32>
    %4 = vector.broadcast %3 : vector<1x128xf32> to vector<16x128xf32>
    %5 = arith.addf %2, %4 : vector<16x128xf32>
    %6 = arith.truncf %5 : vector<16x128xf32> to vector<16x128xbf16>
    %c0_5 = arith.constant 0 : index
    %c0_6 = arith.constant 0 : index
    %7 = vector.load %arg5[%c0_5, %c0_6] : memref<16x128xbf16, #tpu.memory_space<vmem>>, vector<16x128xbf16>
    tpu.vector_store %arg5[%c0_5, %c0_6], %6 {strides = array<i32>} : memref<16x128xbf16, #tpu.memory_space<vmem>>, vector<16x128xbf16>,
    return
  }
  func.func @transform_0(%arg0: i32, %arg1: i32) -> (i32, i32) {
    %c0_i32 = arith.constant 0 : i32
    %c0_i32_0 = arith.constant 0 : i32
    return %arg0, %c0_i32 : i32, i32
  }
  func.func @transform_1(%arg0: i32, %arg1: i32) -> (i32, i32) {
    %c0_i32 = arith.constant 0 : i32
    %c0_i32_0 = arith.constant 0 : i32
    return %c0_i32, %arg1 : i32, i32
  }
  func.func @transform_2(%arg0: i32, %arg1: i32) -> (i32, i32) {
    %c0_i32 = arith.constant 0 : i32
    %c0_i32_0 = arith.constant 0 : i32
    return %c0_i32, %arg1 : i32, i32
  }
  func.func @transform_3(%arg0: i32, %arg1: i32) -> (i32, i32) {
    %c0_i32 = arith.constant 0 : i32
    return %arg0, %arg1 : i32, i32
  }
}

module attributes {stable_mosaic.version = 11 : i64} {
  func.func @_linear_kernel(%arg0: i32, %arg1: i32, %arg2: memref<16x128xbf16, #tpu.memory_space<vmem>>, %arg3: memref<128x128xbf16, #tpu.memory_space<vmem>>, %arg4: memref<1x128xf32, #tpu.memory_space<vmem>>, %arg5: memref<16x128xbf16, #tpu.memory_space<vmem>>) attributes {dimension_semantics = [#tpu.dimension_semantics<parallel>, #tpu.dimension_semantics<parallel>], iteration_bounds = array<i64: 1, 1>, scalar_prefetch = 0 : i64, scratch_operands = 0 : i64, tpu.core_type = #tpu.core_type<tc>, window_params = [{transform_indices = @transform_0, window_bounds = array<i64: 16, 128>}, {transform_indices = @transform_1, window_bounds = array<i64: 128, 128>}, {transform_indices = @transform_2, window_bounds = array<i64: 1, 128>}, {transform_indices = @transform_3, window_bounds = array<i64: 16, 128>}]} {
    %c0 = arith.constant 0 : index
    %c0_0 = arith.constant 0 : index
    %0 = vector.load %arg2[%c0, %c0_0] : memref<16x128xbf16, #tpu.memory_space<vmem>>, vector<16x128xbf16>
    %c0_1 = arith.constant 0 : index
    %c0_2 = arith.constant 0 : index
    %1 = vector.load %arg3[%c0_1, %c0_2] : memref<128x128xbf16, #tpu.memory_space<vmem>>, vector<128x128xbf16>
    %cst = arith.constant dense<0.000000e+00> : vector<16x128xf32>
    %2 = tpu.matmul %0, %1, %cst {dimension_numbers = #tpu.dot_dimension_numbers<[1], [0], [0], [1], [0, 0, 1, 1], [], []>} : vector<16x128xbf16>, vector<128x128xbf16>, vector<16x128xf32> -> vector<16x128xf32>
    %c0_3 = arith.constant 0 : index
    %c0_4 = arith.constant 0 : index
    %3 = vector.load %arg4[%c0_3, %c0_4] : memref<1x128xf32, #tpu.memory_space<vmem>>, vector<1x128xf32>
    %4 = vector.broadcast %3 : vector<1x128xf32> to vector<16x128xf32>
    %5 = arith.addf %2, %4 : vector<16x128xf32>
    %6 = math.tanh %5 : vector<16x128xf32>
    %7 = arith.truncf %6 : vector<16x128xf32> to vector<16x128xbf16>
    %c0_5 = arith.constant 0 : index
    %c0_6 = arith.constant 0 : index
    %8 = vector.load %arg5[%c0_5, %c0_6] : memref<16x128xbf16, #tpu.memory_space<vmem>>, vector<16x128xbf16>
    tpu.vector_store %arg5[%c0_5, %c0_6], %7 {strides = array<i32>} : memref<16x128xbf16, #tpu.memory_space<vmem>>, vector<16x128xbf16>,
    return
  }
  func.func @transform_0(%arg0: i32, %arg1: i32) -> (i32, i32) {
    %c0_i32 = arith.constant 0 : i32
    %c0_i32_0 = arith.constant 0 : i32
    return %arg0, %c0_i32 : i32, i32
  }
  func.func @transform_1(%arg0: i32, %arg1: i32) -> (i32, i32) {
    %c0_i32 = arith.constant 0 : i32
    %c0_i32_0 = arith.constant 0 : i32
    return %c0_i32, %arg1 : i32, i32
  }
  func.func @transform_2(%arg0: i32, %arg1: i32) -> (i32, i32) {
    %c0_i32 = arith.constant 0 : i32
    %c0_i32_0 = arith.constant 0 : i32
    return %c0_i32, %arg1 : i32, i32
  }
  func.func @transform_3(%arg0: i32, %arg1: i32) -> (i32, i32) {
    %c0_i32 = arith.constant 0 : i32
    return %arg0, %arg1 : i32, i32
  }
}

module attributes {stable_mosaic.version = 11 : i64} {
  func.func @_lm_ce_kernel(%arg0: i32, %arg1: i32, %arg2: memref<16x128xbf16, #tpu.memory_space<vmem>>, %arg3: memref<512x128xbf16, #tpu.memory_space<vmem>>, %arg4: memref<16x1xi32, #tpu.memory_space<vmem>>, %arg5: memref<16x1xf32, #tpu.memory_space<vmem>>, %arg6: memref<16x1xf32, #tpu.memory_space<vmem>>, %arg7: memref<16x1xf32, #tpu.memory_space<vmem>>, %arg8: memref<16x1xf32, #tpu.memory_space<vmem>>, %arg9: memref<16x1xf32, #tpu.memory_space<vmem>>) attributes {dimension_semantics = [#tpu.dimension_semantics<parallel>, #tpu.dimension_semantics<arbitrary>], iteration_bounds = array<i64: 1, 1>, scalar_prefetch = 0 : i64, scratch_operands = 3 : i64, tpu.core_type = #tpu.core_type<tc>, window_params = [{transform_indices = @transform_0, window_bounds = array<i64: 16, 128>}, {transform_indices = @transform_1, window_bounds = array<i64: 512, 128>}, {transform_indices = @transform_2, window_bounds = array<i64: 16, 1>}, {transform_indices = @transform_3, window_bounds = array<i64: 16, 1>}, {transform_indices = @transform_4, window_bounds = array<i64: 16, 1>}]} {
    %c0_i32 = arith.constant 0 : i32
    %0 = arith.cmpi eq, %arg1, %c0_i32 : i32
    %1 = arith.extui %0 : i1 to i32
    %c0_i32_0 = arith.constant 0 : i32
    %2 = arith.cmpi ne, %1, %c0_i32_0 : i32
    scf.if %2 {
      %cst_26 = arith.constant -1.000000e+30 : f32
      %43 = vector.broadcast %cst_26 : f32 to vector<16x1xf32>
      %c0_27 = arith.constant 0 : index
      %c0_28 = arith.constant 0 : index
      %44 = vector.load %arg7[%c0_27, %c0_28] : memref<16x1xf32, #tpu.memory_space<vmem>>, vector<16x1xf32>
      tpu.vector_store %arg7[%c0_27, %c0_28], %43 {strides = array<i32>} : memref<16x1xf32, #tpu.memory_space<vmem>>, vector<16x1xf32>,
      %cst_29 = arith.constant 0.000000e+00 : f32
      %45 = vector.broadcast %cst_29 : f32 to vector<16x1xf32>
      %c0_30 = arith.constant 0 : index
      %c0_31 = arith.constant 0 : index
      %46 = vector.load %arg8[%c0_30, %c0_31] : memref<16x1xf32, #tpu.memory_space<vmem>>, vector<16x1xf32>
      tpu.vector_store %arg8[%c0_30, %c0_31], %45 {strides = array<i32>} : memref<16x1xf32, #tpu.memory_space<vmem>>, vector<16x1xf32>,
      %cst_32 = arith.constant 0.000000e+00 : f32
      %47 = vector.broadcast %cst_32 : f32 to vector<16x1xf32>
      %c0_33 = arith.constant 0 : index
      %c0_34 = arith.constant 0 : index
      %48 = vector.load %arg9[%c0_33, %c0_34] : memref<16x1xf32, #tpu.memory_space<vmem>>, vector<16x1xf32>
      tpu.vector_store %arg9[%c0_33, %c0_34], %47 {strides = array<i32>} : memref<16x1xf32, #tpu.memory_space<vmem>>, vector<16x1xf32>,
    } else {
    }
    %c0 = arith.constant 0 : index
    %c0_1 = arith.constant 0 : index
    %3 = vector.load %arg2[%c0, %c0_1] : memref<16x128xbf16, #tpu.memory_space<vmem>>, vector<16x128xbf16>
    %c0_2 = arith.constant 0 : index
    %c0_3 = arith.constant 0 : index
    %4 = vector.load %arg3[%c0_2, %c0_3] : memref<512x128xbf16, #tpu.memory_space<vmem>>, vector<512x128xbf16>
    %cst = arith.constant dense<0.000000e+00> : vector<16x512xf32>
    %5 = tpu.matmul %3, %4, %cst {dimension_numbers = #tpu.dot_dimension_numbers<[1], [1], [0], [0], [0, 0, 1, 0], [], []>} : vector<16x128xbf16>, vector<512x128xbf16>, vector<16x512xf32> -> vector<16x512xf32>
    %6 = tpu.iota {dimensions = array<i32: 1>} : vector<16x512xi32>
    %c512_i32 = arith.constant 512 : i32
    %7 = arith.muli %arg1, %c512_i32 : i32
    %8 = vector.broadcast %7 : i32 to vector<16x512xi32>
    %9 = arith.addi %6, %8 : vector<16x512xi32>
    %c512_i32_4 = arith.constant 512 : i32
    %10 = vector.broadcast %c512_i32_4 : i32 to vector<16x512xi32>
    %11 = arith.cmpi slt, %9, %10 : vector<16x512xi32>
    %cst_5 = arith.constant -1.000000e+30 : f32
    %12 = vector.broadcast %cst_5 : f32 to vector<16x512xf32>
    %13 = arith.select %11, %5, %12 : vector<16x512xi1>, vector<16x512xf32>
    %c0_6 = arith.constant 0 : index
    %c0_7 = arith.constant 0 : index
    %14 = vector.load %arg7[%c0_6, %c0_7] : memref<16x1xf32, #tpu.memory_space<vmem>>, vector<16x1xf32>
    %cst_8 = arith.constant dense<0xFF800000> : vector<16xf32>
    %15 = vector.multi_reduction <maximumf>, %13, %cst_8 [1] : vector<16x512xf32> to vector<16xf32>
    %16 = vector.shape_cast %15 : vector<16xf32> to vector<16x1xf32>
    %17 = arith.maximumf %14, %16 : vector<16x1xf32>
    %18 = arith.subf %14, %17 : vector<16x1xf32>
    %19 = math.exp %18 : vector<16x1xf32>
    %c0_9 = arith.constant 0 : index
    %c0_10 = arith.constant 0 : index
    %20 = vector.load %arg8[%c0_9, %c0_10] : memref<16x1xf32, #tpu.memory_space<vmem>>, vector<16x1xf32>
    %21 = arith.mulf %19, %20 : vector<16x1xf32>
    %22 = vector.broadcast %17 : vector<16x1xf32> to vector<16x512xf32>
    %23 = arith.subf %13, %22 : vector<16x512xf32>
    %24 = math.exp %23 : vector<16x512xf32>
    %cst_11 = arith.constant dense<0.000000e+00> : vector<16xf32>
    %25 = vector.multi_reduction <add>, %24, %cst_11 [1] : vector<16x512xf32> to vector<16xf32>
    %26 = vector.shape_cast %25 : vector<16xf32> to vector<16x1xf32>
    %27 = arith.addf %21, %26 : vector<16x1xf32>
    %c0_12 = arith.constant 0 : index
    %c0_13 = arith.constant 0 : index
    %28 = vector.load %arg8[%c0_12, %c0_13] : memref<16x1xf32, #tpu.memory_space<vmem>>, vector<16x1xf32>
    tpu.vector_store %arg8[%c0_12, %c0_13], %27 {strides = array<i32>} : memref<16x1xf32, #tpu.memory_space<vmem>>, vector<16x1xf32>,
    %c0_14 = arith.constant 0 : index
    %c0_15 = arith.constant 0 : index
    %29 = vector.load %arg7[%c0_14, %c0_15] : memref<16x1xf32, #tpu.memory_space<vmem>>, vector<16x1xf32>
    tpu.vector_store %arg7[%c0_14, %c0_15], %17 {strides = array<i32>} : memref<16x1xf32, #tpu.memory_space<vmem>>, vector<16x1xf32>,
    %c0_16 = arith.constant 0 : index
    %c0_17 = arith.constant 0 : index
    %30 = vector.load %arg4[%c0_16, %c0_17] : memref<16x1xi32, #tpu.memory_space<vmem>>, vector<16x1xi32>
    %c0_18 = arith.constant 0 : index
    %c0_19 = arith.constant 0 : index
    %31 = vector.load %arg9[%c0_18, %c0_19] : memref<16x1xf32, #tpu.memory_space<vmem>>, vector<16x1xf32>
    %32 = vector.broadcast %30 : vector<16x1xi32> to vector<16x512xi32>
    %33 = arith.cmpi eq, %9, %32 : vector<16x512xi32>
    %cst_20 = arith.constant 0.000000e+00 : f32
    %34 = vector.broadcast %cst_20 : f32 to vector<16x512xf32>
    %35 = arith.select %33, %13, %34 : vector<16x512xi1>, vector<16x512xf32>
    %cst_21 = arith.constant dense<0.000000e+00> : vector<16xf32>
    %36 = vector.multi_reduction <add>, %35, %cst_21 [1] : vector<16x512xf32> to vector<16xf32>
    %37 = vector.shape_cast %36 : vector<16xf32> to vector<16x1xf32>
    %38 = arith.addf %31, %37 : vector<16x1xf32>
    %c0_22 = arith.constant 0 : index
    %c0_23 = arith.constant 0 : index
    %39 = vector.load %arg9[%c0_22, %c0_23] : memref<16x1xf32, #tpu.memory_space<vmem>>, vector<16x1xf32>
    tpu.vector_store %arg9[%c0_22, %c0_23], %38 {strides = array<i32>} : memref<16x1xf32, #tpu.memory_space<vmem>>, vector<16x1xf32>,
    %c0_i32_24 = arith.constant 0 : i32
    %40 = arith.cmpi eq, %arg1, %c0_i32_24 : i32
    %41 = arith.extui %40 : i1 to i32
    %c0_i32_25 = arith.constant 0 : i32
    %42 = arith.cmpi ne, %41, %c0_i32_25 : i32
    scf.if %42 {
      %c0_26 = arith.constant 0 : index
      %c0_27 = arith.constant 0 : index
      %43 = vector.load %arg7[%c0_26, %c0_27] : memref<16x1xf32, #tpu.memory_space<vmem>>, vector<16x1xf32>
      %c0_28 = arith.constant 0 : index
      %c0_29 = arith.constant 0 : index
      %44 = vector.load %arg8[%c0_28, %c0_29] : memref<16x1xf32, #tpu.memory_space<vmem>>, vector<16x1xf32>
      %45 = math.log %44 : vector<16x1xf32>
      %46 = arith.addf %43, %45 : vector<16x1xf32>
      %c0_30 = arith.constant 0 : index
      %c0_31 = arith.constant 0 : index
      %47 = vector.load %arg9[%c0_30, %c0_31] : memref<16x1xf32, #tpu.memory_space<vmem>>, vector<16x1xf32>
      %48 = arith.subf %46, %47 : vector<16x1xf32>
      %c0_32 = arith.constant 0 : index
      %c0_33 = arith.constant 0 : index
      %49 = vector.load %arg5[%c0_32, %c0_33] : memref<16x1xf32, #tpu.memory_space<vmem>>, vector<16x1xf32>
      %50 = arith.mulf %48, %49 : vector<16x1xf32>
      %c0_34 = arith.constant 0 : index
      %c0_35 = arith.constant 0 : index
      %51 = vector.load %arg6[%c0_34, %c0_35] : memref<16x1xf32, #tpu.memory_space<vmem>>, vector<16x1xf32>
      tpu.vector_store %arg6[%c0_34, %c0_35], %50 {strides = array<i32>} : memref<16x1xf32, #tpu.memory_space<vmem>>, vector<16x1xf32>,
    } else {
    }
    return
  }
  func.func @transform_0(%arg0: i32, %arg1: i32) -> (i32, i32) {
    %c0_i32 = arith.constant 0 : i32
    %c0_i32_0 = arith.constant 0 : i32
    return %arg0, %c0_i32 : i32, i32
  }
  func.func @transform_1(%arg0: i32, %arg1: i32) -> (i32, i32) {
    %c0_i32 = arith.constant 0 : i32
    %c0_i32_0 = arith.constant 0 : i32
    return %arg1, %c0_i32 : i32, i32
  }
  func.func @transform_2(%arg0: i32, %arg1: i32) -> (i32, i32) {
    %c0_i32 = arith.constant 0 : i32
    %c0_i32_0 = arith.constant 0 : i32
    return %arg0, %c0_i32 : i32, i32
  }
  func.func @transform_3(%arg0: i32, %arg1: i32) -> (i32, i32) {
    %c0_i32 = arith.constant 0 : i32
    %c0_i32_0 = arith.constant 0 : i32
    return %arg0, %c0_i32 : i32, i32
  }
  func.func @transform_4(%arg0: i32, %arg1: i32) -> (i32, i32) {
    %c0_i32 = arith.constant 0 : i32
    %c0_i32_0 = arith.constant 0 : i32
    return %arg0, %c0_i32 : i32, i32
  }
}

</mosaic_0001>

<bundles_post_ra>
// kernel: codebert_get_loss.15
= control target key start
LH: loop header
LB: loop body
LE: loop exit
PB: predicated region body
PF: predicated region fallthrough
CT: control target
= control target key end

     0   :  { %s124_s0 = inlined_call_operand.vmem [shape: bf16[16,128], index: 0, kind: input, shape index: {}]   ;;  %s125_s1 = inlined_call_operand.vmem [shape: f32[1,128], index: 1, kind: input, shape index: {}]   ;;  %s126_s2 = inlined_call_operand.vmem [shape: f32[1,128], index: 2, kind: input, shape index: {}]   ;;  %s127_s3 = inlined_call_operand.vmem [shape: bf16[16,128], index: 3, kind: output, shape index: {}]  }
   0x1   :  { %v80_v0 = vld [vmem:[%s124_s0] sm:$0xff]  }
   0x2   :  { %v81_v1 = vunpack.c.l.bf16 %v80_v0  ;;  %v82_v2 = vunpack.c.h.bf16 %v80_v0  ;;  %v73_v19 = vld [vmem:[%s125_s1] ss:$0 sm:$0xff] }
   0x3   :  { %v74_v23 = vld [vmem:[%s126_s2] ss:$0 sm:$0xff] }
   0x4   :  { %18 = vadd.xlane.f32.xlu0 %v81_v1 }
   0x8   :  { %20 = vadd.xlane.f32.xlu0 %v82_v2 }
  0x91   :  { %v19_v3 = vpop.xlane.xlu0 %18 }
  0x92   :  { %v23_v4 = vmul.f32 0.0078125, %v19_v3 }
  0x94   :  { %v25_v5 = vsub.f32 %v81_v1, %v23_v4 }
  0x95   :  { %v21_v6 = vpop.xlane.xlu0 %20 }
  0x96   :  { %v24_v7 = vmul.f32 0.0078125, %v21_v6  ;;  %v27_v8 = vmul.f32 %v25_v5, %v25_v5 }
  0x98   :  { %v26_v9 = vsub.f32 %v82_v2, %v24_v7  ;;  %29 = vadd.xlane.f32.xlu1 %v27_v8 }
  0x9a   :  { %v28_v10 = vmul.f32 %v26_v9, %v26_v9 }
  0x9c   :  { %31 = vadd.xlane.f32.xlu1 %v28_v10 }
 0x125   :  { %v30_v11 = vpop.xlane.xlu1 %29 }
 0x126   :  { %v33_v12 = vmul.f32 0.0078125, %v30_v11 }
 0x128   :  { %v35_v13 = vadd.f32 1e-05, %v33_v12 }
 0x129   :  { %v32_v14 = vpop.xlane.xlu1 %31 }
 0x12a   :  { %88 = vrsqrt.f32 %v35_v13  ;;  %v34_v15 = vmul.f32 0.0078125, %v32_v14 }
 0x12c   :  { %v36_v16 = vadd.f32 1e-05, %v34_v15 }
 0x12e   :  { %90 = vrsqrt.f32 %v36_v16 }
 0x134   :  { %v89_v17 = vpop.eup %88 }
 0x135   :  { %v39_v18 = vmul.f32 %v89_v17, %v25_v5 }
 0x137   :  { %v48_v21 = vmul.f32 %v73_v19, %v39_v18 }
 0x138   :  { %v91_v20 = vpop.eup %90 }
 0x139   :  { %v40_v22 = vmul.f32 %v91_v20, %v26_v9  ;;  %v57_v25 = vadd.f32 %v74_v23, %v48_v21 }
 0x13b   :  { %v49_v24 = vmul.f32 %v73_v19, %v40_v22 }
 0x13d   :  { %v58_v26 = vadd.f32 %v74_v23, %v49_v24 }
 0x13f   :  { %v86_v27 = vpack.c.bf16 %v58_v26, %v57_v25 }
 0x141   :  { %87 = vst [vmem:[%s127_s3] sm:$0xff] %v86_v27  }

// kernel: codebert_get_loss.18
= control target key start
LH: loop header
LB: loop body
LE: loop exit
PB: predicated region body
PF: predicated region fallthrough
CT: control target
= control target key end

     0   :  { %v208_v0 = vmov 0.0   ;;  %vm209_vm0 = vmmov 0   ;;  %s263_s1 = inlined_call_operand.vmem [shape: bf16[128,128], index: 1, kind: input, shape index: {}]   ;;  %s264_s0 = inlined_call_operand.vmem [shape: bf16[16,128], index: 0, kind: input, shape index: {}]   ;;  %s265_s2 = inlined_call_operand.vmem [shape: f32[1,128], index: 2, kind: input, shape index: {}]   ;;  %s266_s3 = inlined_call_operand.vmem [shape: bf16[16,128], index: 3, kind: output, shape index: {}]  }
   0x1   :  { %177 = vmatprep.subr.bf16.mxu0 %v208_v0  ;;  %v199_v1 = vld [vmem:[%s263_s1] sm:$0xff]   ;;  %193 = vmatprep.mubr.msk.bf16.mxu0 %vm209_vm0, %v208_v0  ;;  %v200_v2 = vld [vmem:[%s263_s1 + $0x8] sm:$0xff]   ;;  %v201_v3 = vld [vmem:[%s263_s1 + $0x10] sm:$0xff]  }
   0x2   :  { %178 = vmatpush3.bf16.msra.mxu0 %v199_v1  ;;  %v202_v4 = vld [vmem:[%s263_s1 + $0x18] sm:$0xff]   ;;  %v203_v5 = vld [vmem:[%s263_s1 + $0x20] sm:$0xff]   ;;  %v204_v6 = vld [vmem:[%s263_s1 + $0x28] sm:$0xff]  }
   0x3   :  { %179 = vmatprep.subr.bf16.mxu0 %v208_v0  ;;  %v205_v7 = vld [vmem:[%s263_s1 + $0x30] sm:$0xff]   ;;  %v206_v8 = vld [vmem:[%s263_s1 + $0x38] sm:$0xff]   ;;  %v207_v9 = vld [vmem:[%s264_s0] sm:$0xff]  }
   0x4   :  { %v149_v10 = vld [vmem:[%s265_s2] ss:$0 sm:$0xff] }
   0x6   :  { %180 = vmatpush3.bf16.msra.mxu0 %v200_v2 }
   0x7   :  { %181 = vmatprep.subr.bf16.mxu0 %v208_v0 }
   0xa   :  { %182 = vmatpush3.bf16.msra.mxu0 %v201_v3 }
   0xb   :  { %183 = vmatprep.subr.bf16.mxu0 %v208_v0 }
   0xe   :  { %184 = vmatpush3.bf16.msra.mxu0 %v202_v4 }
   0xf   :  { %185 = vmatprep.subr.bf16.mxu0 %v208_v0 }
  0x12   :  { %186 = vmatpush3.bf16.msra.mxu0 %v203_v5 }
  0x13   :  { %187 = vmatprep.subr.bf16.mxu0 %v208_v0 }
  0x16   :  { %188 = vmatpush3.bf16.msra.mxu0 %v204_v6 }
  0x17   :  { %189 = vmatprep.subr.bf16.mxu0 %v208_v0 }
  0x1a   :  { %190 = vmatpush3.bf16.msra.mxu0 %v205_v7 }
  0x1b   :  { %191 = vmatprep.subr.bf16.mxu0 %v208_v0 }
  0x1e   :  { %192 = vmatpush3.bf16.msra.mxu0 %v206_v8 }
  0x21   :  { %194 = vmatmul.mubr.bf16.vlgmr.msra.gmra.mrb[0].mxu0 %v207_v9 }
  0xf4   :  { %v128_v11 = vpop.f32.mrb[0].mxu0 }
  0xf5   :  { %v195_v12 = vpop.f32.mrb[1].mxu0  ;;  %v129_v14 = vadd.f32 %v149_v10, %v128_v11 }
  0xf6   :  { %v131_v13 = vpop.f32.mrb[2].mxu0 }
  0xf7   :  { %v132_v15 = vadd.f32 %v149_v10, %v131_v13  ;;  %v196_v16 = vpop.f32.mrb[3].mxu0 }
  0xf9   :  { %v166_v17 = vpack.c.bf16 %v132_v15, %v129_v14 }
  0xfb   :  { %167 = vst [vmem:[%s266_s3] sm:$0xff] %v166_v17  }

// kernel: codebert_get_loss.16
= control target key start
LH: loop header
LB: loop body
LE: loop exit
PB: predicated region body
PF: predicated region fallthrough
CT: control target
= control target key end

     0   :  { %v410_v0 = vmov 0.0   ;;  %vm411_vm0 = vmmov 0   ;;  %v412_v3 = vmov 0   ;;  %v51_v27 = vlaneseq  ;;  %s523_s1 = inlined_call_operand.vmem [shape: bf16[128,384], index: 1, kind: input, shape index: {}]   ;;  %s524_s0 = inlined_call_operand.vmem [shape: bf16[16,128], index: 0, kind: input, shape index: {}]   ;;  %s525_s2 = inlined_call_operand.vmem [shape: f32[1,384], index: 2, kind: input, shape index: {}]   ;;  %s526_s3 = inlined_call_operand.vmem [shape: bf16[16,384], index: 3, kind: output, shape index: {}]  }
   0x1   :  { %354 = vmatprep.subr.bf16.mxu1 %v410_v0  ;;  %v377_v1 = vld [vmem:[%s523_s1 + $0x4] ss:$12 sps:$4 sm:$0xff]   ;;  %370 = vmatprep.mubr.msk.bf16.mxu1 %vm411_vm0, %v410_v0  ;;  %v379_v2 = vld [vmem:[%s523_s1 + $0x8] ss:$12 sps:$4 sm:$0xff]   ;;  %v380_v4 = vld [vmem:[%s523_s1] ss:$12 sps:$4 sm:$0xff]  }
   0x2   :  { %232 = vmatprep.mubr.bf16.mxu0 %v412_v3  ;;  %200 = vmatprep.subr.bf16.mxu0 %v377_v1  ;;  %v381_v5 = vld [vmem:[%s523_s1 + $0x1c] ss:$12 sps:$4 sm:$0xff]   ;;  %v383_v6 = vld [vmem:[%s523_s1 + $0x20] ss:$12 sps:$4 sm:$0xff]   ;;  %v384_v7 = vld [vmem:[%s523_s1 + $0x18] ss:$12 sps:$4 sm:$0xff]  }
   0x3   :  { %355 = vmatpush3.bf16.msra.mxu1 %v379_v2  ;;  %201 = vmatpush1.bf16.msra.mxu0 %v380_v4  ;;  %v385_v8 = vld [vmem:[%s523_s1 + $0x34] ss:$12 sps:$4 sm:$0xff]   ;;  %v387_v9 = vld [vmem:[%s523_s1 + $0x38] ss:$12 sps:$4 sm:$0xff]   ;;  %v388_v10 = vld [vmem:[%s523_s1 + $0x30] ss:$12 sps:$4 sm:$0xff]  }
   0x4   :  { %356 = vmatprep.subr.bf16.mxu1 %v410_v0  ;;  %202 = vmatprep.subr.bf16.mxu0 %v381_v5  ;;  %v389_v11 = vld [vmem:[%s523_s1 + $0x4c] ss:$12 sps:$4 sm:$0xff]   ;;  %v391_v12 = vld [vmem:[%s523_s1 + $0x50] ss:$12 sps:$4 sm:$0xff]   ;;  %v392_v13 = vld [vmem:[%s523_s1 + $0x48] ss:$12 sps:$4 sm:$0xff]  }
   0x5   :  { %v393_v14 = vld [vmem:[%s523_s1 + $0x64] ss:$12 sps:$4 sm:$0xff]   ;;  %v395_v15 = vld [vmem:[%s523_s1 + $0x68] ss:$12 sps:$4 sm:$0xff]   ;;  %v396_v16 = vld [vmem:[%s523_s1 + $0x60] ss:$12 sps:$4 sm:$0xff]  }
   0x6   :  { %v397_v17 = vld [vmem:[%s523_s1 + $0x7c] ss:$12 sps:$4 sm:$0xff]   ;;  %v399_v18 = vld [vmem:[%s523_s1 + $0x80] ss:$12 sps:$4 sm:$0xff]   ;;  %v400_v19 = vld [vmem:[%s523_s1 + $0x78] ss:$12 sps:$4 sm:$0xff]  }
   0x7   :  { %357 = vmatpush3.bf16.msra.mxu1 %v383_v6  ;;  %203 = vmatpush1.bf16.msra.mxu0 %v384_v7  ;;  %v401_v20 = vld [vmem:[%s523_s1 + $0x94] ss:$12 sps:$4 sm:$0xff]   ;;  %v403_v21 = vld [vmem:[%s523_s1 + $0x98] ss:$12 sps:$4 sm:$0xff]   ;;  %v404_v22 = vld [vmem:[%s523_s1 + $0x90] ss:$12 sps:$4 sm:$0xff]  }
   0x8   :  { %358 = vmatprep.subr.bf16.mxu1 %v410_v0  ;;  %204 = vmatprep.subr.bf16.mxu0 %v385_v8  ;;  %v405_v23 = vld [vmem:[%s523_s1 + $0xac] ss:$12 sps:$4 sm:$0xff]   ;;  %v407_v24 = vld [vmem:[%s523_s1 + $0xb0] ss:$12 sps:$4 sm:$0xff]   ;;  %v408_v25 = vld [vmem:[%s523_s1 + $0xa8] ss:$12 sps:$4 sm:$0xff]  }
   0x9   :  { %v409_v26 = vld [vmem:[%s524_s0] sm:$0xff]   ;;  %v52_v28 = vshrl.u32 %v51_v27, 7 }
   0xa   :  { %v49_v30 = vld [vmem:[%s525_s2] sm:$0x7] }
   0xb   :  { %359 = vmatpush3.bf16.msra.mxu1 %v387_v9  ;;  %205 = vmatpush1.bf16.msra.mxu0 %v388_v10  ;;  %v61_v29 = vsub.s32 2, %v52_v28  ;;  %v53_v31 = vsub.s32 0, %v52_v28  ;;  %v57_v32 = vsub.s32 1, %v52_v28 }
   0xc   :  { %360 = vmatprep.subr.bf16.mxu1 %v410_v0  ;;  %206 = vmatprep.subr.bf16.mxu0 %v389_v11 }
   0xd   :  { %v62_v33 = vrot.slane %v49_v30, %v61_v29  ;;  %v54_v34 = vrot.slane %v49_v30, %v53_v31  ;;  %v58_v35 = vrot.slane %v49_v30, %v57_v32 }
   0xf   :  { %361 = vmatpush3.bf16.msra.mxu1 %v391_v12  ;;  %207 = vmatpush1.bf16.msra.mxu0 %v392_v13 }
  0x10   :  { %362 = vmatprep.subr.bf16.mxu1 %v410_v0  ;;  %208 = vmatprep.subr.bf16.mxu0 %v393_v14 }
  0x13   :  { %363 = vmatpush3.bf16.msra.mxu1 %v395_v15  ;;  %209 = vmatpush1.bf16.msra.mxu0 %v396_v16 }
  0x14   :  { %364 = vmatprep.subr.bf16.mxu1 %v410_v0  ;;  %210 = vmatprep.subr.bf16.mxu0 %v397_v17 }
  0x17   :  { %365 = vmatpush3.bf16.msra.mxu1 %v399_v18  ;;  %211 = vmatpush1.bf16.msra.mxu0 %v400_v19 }
  0x18   :  { %366 = vmatprep.subr.bf16.mxu1 %v410_v0  ;;  %212 = vmatprep.subr.bf16.mxu0 %v401_v20 }
  0x1b   :  { %367 = vmatpush3.bf16.msra.mxu1 %v403_v21  ;;  %213 = vmatpush1.bf16.msra.mxu0 %v404_v22 }
  0x1c   :  { %368 = vmatprep.subr.bf16.mxu1 %v410_v0  ;;  %214 = vmatprep.subr.bf16.mxu0 %v405_v23 }
  0x1f   :  { %369 = vmatpush3.bf16.msra.mxu1 %v407_v24  ;;  %215 = vmatpush1.bf16.msra.mxu0 %v408_v25 }
  0x22   :  { %371 = vmatmul.mubr.bf16.vlgmr.msra.gmra.mrb[0].mxu1 %v409_v26  ;;  %233 = vmatmul.mubr.bf16.vlgmr.msra.gmra.mrb[0].mxu0 %v409_v26 }
  0xf5   :  { %v277_v36 = vpop.f32.mrb[0].mxu1  ;;  %v234_v38 = vpop.f32.mrb[0].mxu0 }
  0xf6   :  { %v278_v37 = vadd.f32 %v277_v36, %v62_v33  ;;  %v372_v39 = vpop.f32.mrb[1].mxu1  ;;  %v235_v40 = vadd.f32 %v234_v38, %v54_v34  ;;  %v236_v41 = vpop.f32.mrb[1].mxu0 }
  0xf7   :  { %v280_v42 = vpop.f32.mrb[2].mxu1  ;;  %v237_v44 = vadd.f32 %v236_v41, %v58_v35  ;;  %v238_v46 = vpop.f32.mrb[2].mxu0 }
  0xf8   :  { %v342_v43 = vpack.c.bf16 %v278_v37, %v278_v37  ;;  %v281_v45 = vadd.f32 %v280_v42, %v62_v33  ;;  %v373_v47 = vpop.f32.mrb[3].mxu1  ;;  %v239_v48 = vadd.f32 %v238_v46, %v54_v34  ;;  %v240_v49 = vpop.f32.mrb[3].mxu0 }
  0xf9   :  { %v341_v50 = vpack.c.bf16 %v237_v44, %v235_v40  ;;  %v241_v52 = vadd.f32 %v240_v49, %v58_v35 }
  0xfa   :  { %305 = vst [vmem:[%s526_s3 + $0x8] sm:$0xf] %v342_v43  ;;  %v344_v51 = vpack.c.bf16 %v281_v45, %v281_v45 }
  0xfb   :  { %304 = vst [vmem:[%s526_s3] sm:$0xff] %v341_v50  ;;  %v343_v53 = vpack.c.bf16 %v241_v52, %v239_v48 }
  0xfc   :  { %307 = vst [vmem:[%s526_s3 + $0x14] sm:$0xf] %v344_v51 }
  0xfd   :  { %306 = vst [vmem:[%s526_s3 + $0xc] sm:$0xff] %v343_v53 }

// kernel: codebert_get_loss.17
= control target key start
LH: loop header
LB: loop body
LE: loop exit
PB: predicated region body
PF: predicated region fallthrough
CT: control target
= control target key end

     0   :  { %s1290_s12 = smov 0   ;;  %s1292_s13 = smov 0   ;;  %s1471_s0 = inlined_call_operand.vmem [shape: bf16[2,8,384], index: 0, kind: input, shape index: {}, may-alias: {0,1,2}]   ;;  %s1472_s1 = inlined_call_operand.vmem [shape: bf16[2,8,384], index: 1, kind: input, shape index: {}, may-alias: {0,1,2}]   ;;  %s1473_s2 = inlined_call_operand.vmem [shape: bf16[2,8,384], index: 2, kind: input, shape index: {}, may-alias: {0,1,2}]   ;;  %s1474_s3 = inlined_call_operand.vmem [shape: bf16[2,8,128], index: 3, kind: output, shape index: {}]  }
   0x1   :  { %s1294_s14 = smov 0  }
   0x2 LB: > { %s32_s15 = sadd.s32 1, %s1256_s13  ;;  %p1087_p0 = scmp.ge.s32.totalorder %s1260_s14, 1  ;;  %s1260_s14 = sphi %s1294_s14, %s13_s14   ;;  %s1256_s13 = sphi %s1292_s13, %s1476_s13   ;;  %s1252_s12 = sphi %s1290_s12, %s1475_s12  }
   0x3   : > { %p34_p1 = scmp.ge.s32.totalorder %s32_s15, 2  ;;  %p198_p2 = scmp.lt.s32.totalorder %s1260_s14, 3 }
   0x5   : > { %s1478_s15 = smov (%p34_p1, %s32_s15), 0  ;;  %p199_p3 = pnand %p1087_p0, %p198_p2 }
   0x6   : > { %p248_p4 = scmp.lt.s32.totalorder (!%p199_p3), %s1252_s12, 1  ;;  %vm298_vm0 = vcmask (!%p199_p3), 261120   ;;  %v1262_v0 = vmov (!%p199_p3), 0.0   ;;  %vm1263_vm1 = vmmov (!%p199_p3), 0   ;;  %vm289_vm2 = vcmask (!%p199_p3), 7168   ;;  %s1267_s23 = smov (!%p199_p3), 96  }
   0x7   : > { %202 = sbr.rel (%p199_p3) target bundleno = 1473 (0x5c1), region = 32  ;;  %1129 = vmatprep.subr.bf16.mxu0 (!%p199_p3), %v1262_v0  ;;  %299 = vst.msk [vmem:[#allocation4] sm:$0xff] (!%p199_p3), %vm298_vm0, %v1262_v0  ;;  %300 = vst.msk [vmem:[#allocation4 + $0x8] sm:$0xff] (!%p199_p3), %vm298_vm0, %v1262_v0  ;;  %1131 = vmatprep.mubr.msk.bf16.mxu0 (!%p199_p3), %vm1263_vm1, %v1262_v0  ;;  %v1264_v4 = vmov (!%p199_p3), -1e+30   ;;  %v306_v5 = vlaneseq (!%p199_p3)  ;;  %v1265_v9 = vmov (!%p199_p3), -10000.0  }
   0x8   : > { %301 = vst.msk [vmem:[#allocation4 + $0x10] sm:$0xff] (!%p199_p3), %vm298_vm0, %v1262_v0  ;;  %302 = vst.msk [vmem:[#allocation4 + $0x18] sm:$0xff] (!%p199_p3), %vm298_vm0, %v1262_v0  ;;  %1135 = vmatprep.subr.bf16.mxu1 (!%p199_p3), %v1262_v0  ;;  %1137 = vmatprep.mubr.msk.bf16.mxu1 (!%p199_p3), %vm1263_vm1, %v1262_v0  ;;  %vm375_vm6 = vcmask (!%p199_p3), 64512   ;;  %v1266_v17 = vmov (!%p199_p3), 0   ;;  %s1268_s24 = smov (!%p199_p3), 64   ;;  %s1269_s25 = smov (!%p199_p3), 32  }
   0x9   : > { %290 = vst.msk [vmem:[#allocation2] sm:$0xff] (!%p199_p3), %vm289_vm2, %v1264_v4  ;;  %291 = vst.msk [vmem:[#allocation2 + $0x8] sm:$0xff] (!%p199_p3), %vm289_vm2, %v1264_v4  ;;  %v307_v6 = vand.u32 (!%p199_p3), 127, %v306_v5  ;;  %v312_v7 = vshrl.u32 (!%p199_p3), %v306_v5, 7  ;;  %1210 = vset.pattern.permute.xlu0 (!%p199_p3), %v1266_v17  ;;  %1211 = vset.pattern.permute.xlu1 (!%p199_p3), %v1266_v17  ;;  %vm410_vm7 = vcmask (!%p199_p3), 1043456   ;;  %vm890_vm8 = vcmask (!%p199_p3), 257024  }
   0xa   : > { %292 = vst.msk [vmem:[#allocation2 + $0x10] sm:$0xff] (!%p199_p3), %vm289_vm2, %v1264_v4  ;;  %293 = vst.msk [vmem:[#allocation2 + $0x18] sm:$0xff] (!%p199_p3), %vm289_vm2, %v1264_v4  ;;  %vm910_vm9 = vcmask (!%p199_p3), 519424   ;;  %vm930_vm10 = vcmask (!%p199_p3), 781824   ;;  %vm950_vm11 = vcmask (!%p199_p3), 1044224  }
   0xb   : > { %294 = vst.msk [vmem:[#allocation3] sm:$0xff] (!%p199_p3), %vm289_vm2, %v1262_v0  ;;  %295 = vst.msk [vmem:[#allocation3 + $0x8] sm:$0xff] (!%p199_p3), %vm289_vm2, %v1262_v0  ;;  %vm316_vm3 = vcmp.le.s32.totalorder (!%p199_p3), %v307_v6, %v312_v7  ;;  %vm317_vm4 = vcmp.lt.s32.totalorder (!%p199_p3), %v307_v6, 8 }
   0xc   : > { %296 = vst.msk [vmem:[#allocation3 + $0x10] sm:$0xff] (!%p199_p3), %vm289_vm2, %v1262_v0  ;;  %297 = vst.msk [vmem:[#allocation3 + $0x18] sm:$0xff] (!%p199_p3), %vm289_vm2, %v1262_v0 }
   0xd   : > { %vm318_vm5 = vmand (!%p199_p3), %vm316_vm3, %vm317_vm4 }
   0xe   : > { %s1480_s12 = smov (!%p248_p4, %s1252_s12), 1  ;;  %v1352_v10 = vsel %vm318_vm5, 0.0, %v1265_v9 }
   0xf   : > { %s1325_s16 = smul.u32 12, %s1480_s12  ;;  %s1091_s29 = sshll.u32 %s1480_s12, 2 }
  0x10   : > { %v1362_v20 = vld [vmem:[#allocation2] sm:$0xff]  ;;  %s1450_s5 = scalar_lea.vmem %s1474_s3, %s1091_s29 }
  0x11   : > { %s1023_s19 = scalar_lea.vmem %s1472_s1, %s1325_s16  ;;  %s256_s22 = scalar_lea.vmem %s1471_s0, %s1325_s16  ;;  %v656_v6 = vld [vmem:[#allocation2 + $0x10] sm:$0xff] }
  0x12   : > { %v1092_v1 = vld [vmem:[%s1023_s19 + $0x4] sm:$0xf]  ;;  %v303_v3 = vld [vmem:[%s256_s22] sm:$0xf]  ;;  %s1029_s28 = scalar_lea.vmem %s1473_s2, %s1325_s16 }
  0x13   : > { %v330_v2 = vsel %vm298_vm0, %v1092_v1, 0  ;;  %v1097_v18 = vcombine.low %v1092_v1, %v1092_v1  ;;  %v1096_v19 = vcombine.low %v303_v3, %v303_v3  ;;  %v1376_v24 = vld [vmem:[%s1029_s28 + $0x8] sm:$0xf] }
  0x14   : > { %1130 = vmatpush3.bf16.xpose.msra.mxu0 %v330_v2  ;;  %v412_v25 = vsel %vm410_vm7, %v1376_v24, 0  ;;  %v1408_v2 = vld [vmem:[#allocation2 + $0x8] sm:$0xff] }
  0x15   : > { %1147 = vmatprep.subr.bf16.mxu0 %v1262_v0  ;;  %465 = vrot.lane.b32.xlu1 %v1097_v18, %s1267_s23 }
  0x16   : > { %1136 = vmatpush3.bf16.msra.mxu1 %v412_v25 }
  0x17   : > { %1141 = vmatprep.subr.bf16.mxu1 %v1262_v0 }
  0x19   : > { %460 = vrot.lane.b32.xlu1 %v1096_v19, %s1267_s23 }
  0x1b   : > { %1132 = vmatmul.mubr.msk.bf16.vlgmr.msra.gmra.mrb[0].mxu0 %vm298_vm0, %v303_v3 }
  0x1c   : > { %1149 = vmatprep.mubr.msk.bf16.mxu0 %vm1263_vm1, %v1262_v0 }
  0x1d   : > { %605 = vrot.lane.b32.xlu1 %v1097_v18, %s1268_s24 }
  0x21   : > { %603 = vrot.lane.b32.xlu1 %v1096_v19, %s1268_s24 }
  0x25   : > { %742 = vrot.lane.b32.xlu1 %v1097_v18, %s1269_s25 }
  0x29   : > { %740 = vrot.lane.b32.xlu1 %v1096_v19, %s1269_s25 }
  0x87   : > { %v466_v29 = vpop.permute.xlu1 %465 }
  0x88   : > { %v471_v32 = vsel %vm298_vm0, %v466_v29, 0 }
  0x8b   : > { %v461_v30 = vpop.permute.xlu1 %460 }
  0x8f   : > { %v606_v34 = vpop.permute.xlu1 %605 }
  0x90   : > { %v611_v36 = vsel %vm298_vm0, %v606_v34, 0 }
  0x93   : > { %v604_v35 = vpop.permute.xlu1 %603 }
  0x97   : > { %v743_v37 = vpop.permute.xlu1 %742 }
  0x98   : > { %v748_v38 = vsel %vm298_vm0, %v743_v37, 0 }
  0x9b   : > { %v741_v39 = vpop.permute.xlu1 %740 }
  0xee   : > { %v366_v8 = vpop.f32.mrb[0].mxu0 }
  0xef   : > { %v372_v11 = vmul.f32 0.17677669, %v366_v8  ;;  %v1133_v12 = vpop.f32.mrb[1].mxu0 }
  0xf0   : > { %v369_v13 = vpop.f32.mrb[2].mxu0 }
  0xf1   : > { %v1134_v14 = vpop.f32.mrb[3].mxu0  ;;  %v373_v15 = vadd.f32 %v372_v11, %v1352_v10  ;;  %v1099_v13 = vcombine.low %v1376_v24, %v1376_v24 }
  0xf3   : > { %v376_v16 = vsel %vm375_vm6, %v373_v15, -inf }
  0xf4   : > { %377 = vmax.xlane.f32.xlu0 %v376_v16 }
 0x181   : > { %v378_v21 = vpop.xlane.xlu0 %377 }
 0x182   : > { %v1365_v22 = vmax.f32 %v1362_v20, %v378_v21 }
 0x184   : > { %v388_v23 = vsub.f32 %v1362_v20, %v1365_v22  ;;  %456 = vst.msk [vmem:[#allocation2] sm:$0xff] %vm289_vm2, %v1365_v22  ;;  %382 = vperm.xlu0 %1210, %v1365_v22  }
 0x203   : > { %v383_v26 = vpop.permute.xlu0 %382 }
 0x204   : > { %v385_v27 = vsub.f32 %v373_v15, %v383_v26 }
 0x206   : > { %v386_v28 = vmul.f32 1.442695, %v385_v27 }
 0x208   : > { %1214 = vpow2.f32 %v386_v28 }
 0x212   : > { %v1381_v31 = vpop.eup %1214 }
 0x213   : > { %v406_v33 = vpack.c.bf16 %v1381_v31, %v1381_v31  ;;  %v393_v15 = vsel %vm375_vm6, %v1381_v31, 0.0 }
 0x215   : > { %1138 = vmatmul.mubr.msk.bf16.vlgmr.msra.gmra.mrb[0].mxu1 %vm375_vm6, %v406_v33 }
 0x216   : > { %1142 = vmatpush3.bf16.xpose.msra.mxu1 %v471_v32  ;;  %1143 = vmatprep.mubr.msk.bf16.mxu1 %vm1263_vm1, %v1262_v0 }
 0x217   : > { %1153 = vmatprep.subr.bf16.mxu1 %v1262_v0 }
 0x21d   : > { %1144 = vmatmul.mubr.msk.bf16.vlgmr.msra.gmra.mrb[4].mxu1 %vm298_vm0, %v461_v30 }
 0x21e   : > { %1154 = vmatpush3.bf16.xpose.msra.mxu1 %v611_v36  ;;  %1155 = vmatprep.mubr.msk.bf16.mxu1 %vm1263_vm1, %v1262_v0 }
 0x21f   : > { %1165 = vmatprep.subr.bf16.mxu1 %v1262_v0 }
 0x225   : > { %1156 = vmatmul.mubr.msk.bf16.vlgmr.msra.gmra.mrb[8].mxu1 %vm298_vm0, %v604_v35 }
 0x226   : > { %1166 = vmatpush3.bf16.xpose.msra.mxu1 %v748_v38  ;;  %1167 = vmatprep.mubr.msk.bf16.mxu1 %vm1263_vm1, %v1262_v0 }
 0x22d   : > { %1168 = vmatmul.mubr.msk.bf16.vlgmr.msra.gmra.mrb[12].mxu1 %vm298_vm0, %v741_v39 }
 0x2e8   : > { %v1400_v40 = vpop.f32.mrb[0].mxu1 }
 0x2e9   : > { %v1139_v41 = vpop.f32.mrb[1].mxu1 }
 0x2ea   : > { %v451_v42 = vpop.f32.mrb[2].mxu1 }
 0x2eb   : > { %v1140_v43 = vpop.f32.mrb[3].mxu1  ;;  %v389_v42 = vmul.f32 1.442695, %v388_v23 }
 0x2f0   : > { %v507_v44 = vpop.f32.mrb[4].mxu1 }
 0x2f1   : > { %v513_v45 = vmul.f32 0.17677669, %v507_v44  ;;  %v1145_v46 = vpop.f32.mrb[5].mxu1 }
 0x2f2   : > { %v510_v47 = vpop.f32.mrb[6].mxu1 }
 0x2f3   : > { %v1146_v48 = vpop.f32.mrb[7].mxu1  ;;  %v514_v49 = vadd.f32 %v513_v45, %v1352_v10 }
 0x2f5   : > { %v517_v50 = vsel %vm375_vm6, %v514_v49, -inf }
 0x2f6   : > { %518 = vmax.xlane.f32.xlu1 %v517_v50 }
 0x2f8   : > { %v647_v51 = vpop.f32.mrb[8].mxu1 }
 0x2f9   : > { %v653_v52 = vmul.f32 0.17677669, %v647_v51  ;;  %v1157_v53 = vpop.f32.mrb[9].mxu1 }
 0x2fa   : > { %v650_v54 = vpop.f32.mrb[10].mxu1 }
 0x2fb   : > { %v1158_v55 = vpop.f32.mrb[11].mxu1  ;;  %v654_v56 = vadd.f32 %v653_v52, %v1352_v10  ;;  %v533_v54 = vld [vmem:[#allocation3 + $0x8] sm:$0xff] }
 0x2fd   : > { %v657_v57 = vsel %vm375_vm6, %v654_v56, -inf }
 0x2fe   : > { %658 = vmax.xlane.f32.xlu0 %v657_v57 }
 0x300   : > { %v784_v58 = vpop.f32.mrb[12].mxu1 }
 0x301   : > { %v790_v59 = vmul.f32 0.17677669, %v784_v58  ;;  %v1169_v60 = vpop.f32.mrb[13].mxu1  ;;  %v673_v58 = vld [vmem:[#allocation3 + $0x10] sm:$0xff] }
 0x302   : > { %v787_v61 = vpop.f32.mrb[14].mxu1 }
 0x303   : > { %v1170_v62 = vpop.f32.mrb[15].mxu1  ;;  %v791_v63 = vadd.f32 %v790_v59, %v1352_v10  ;;  %v793_v10 = vld [vmem:[#allocation2 + $0x18] sm:$0xff] }
 0x305   : > { %v794_v1 = vsel %vm375_vm6, %v791_v63, -inf }
 0x306   : > { %795 = vmax.xlane.f32.xlu1 %v794_v1  ;;  %v399_v1 = vld [vmem:[#allocation4] sm:$0xff] }
 0x383   : > { %v519_v3 = vpop.xlane.xlu1 %518 }
 0x384   : > { %v520_v4 = vmax.f32 %v1408_v2, %v519_v3 }
 0x386   : > { %v529_v5 = vsub.f32 %v1408_v2, %v520_v4  ;;  %602 = vst.msk [vmem:[#allocation2 + $0x8] sm:$0xff] %vm289_vm2, %v520_v4  ;;  %523 = vperm.xlu1 %1211, %v520_v4  }
 0x388   : > { %v530_v44 = vmul.f32 1.442695, %v529_v5 }
 0x38b   : > { %v659_v7 = vpop.xlane.xlu0 %658 }
 0x38c   : > { %v660_v8 = vmax.f32 %v656_v6, %v659_v7 }
 0x38e   : > { %v669_v9 = vsub.f32 %v656_v6, %v660_v8  ;;  %739 = vst.msk [vmem:[#allocation2 + $0x10] sm:$0xff] %vm289_vm2, %v660_v8  ;;  %663 = vperm.xlu0 %1210, %v660_v8  }
 0x390   : > { %v670_v46 = vmul.f32 1.442695, %v669_v9 }
 0x393   : > { %v796_v11 = vpop.xlane.xlu1 %795 }
 0x394   : > { %v797_v12 = vmax.f32 %v793_v10, %v796_v11 }
 0x396   : > { %v806_v14 = vsub.f32 %v793_v10, %v797_v12  ;;  %876 = vst.msk [vmem:[#allocation2 + $0x18] sm:$0xff] %vm289_vm2, %v797_v12  ;;  %800 = vperm.xlu1 %1211, %v797_v12  }
 0x398   : > { %v807_v45 = vmul.f32 1.442695, %v806_v14 }
 0x39a   : > { %552 = vrot.lane.b32.xlu1 %v1099_v13, %s1267_s23 }
 0x39e   : > { %689 = vrot.lane.b32.xlu1 %v1099_v13, %s1268_s24 }
 0x3a2   : > { %826 = vrot.lane.b32.xlu1 %v1099_v13, %s1269_s25 }
 0x3c6   : > { %394 = vadd.xlane.f32.xlu1 %v393_v15 }
 0x405   : > { %v524_v16 = vpop.permute.xlu1 %523 }
 0x406   : > { %v526_v17 = vsub.f32 %v514_v49, %v524_v16  ;;  %v391_v49 = vld [vmem:[#allocation3] sm:$0xff] }
 0x408   : > { %v527_v18 = vmul.f32 1.442695, %v526_v17 }
 0x40a   : > { %1216 = vpow2.f32 %v527_v18  ;;  %v541_v18 = vld [vmem:[#allocation4 + $0x8] sm:$0xff] }
 0x40d   : > { %v664_v19 = vpop.permute.xlu0 %663 }
 0x40e   : > { %v666_v21 = vsub.f32 %v654_v56, %v664_v19 }
 0x410   : > { %v667_v24 = vmul.f32 1.442695, %v666_v21 }
 0x412   : > { %1218 = vpow2.f32 %v667_v24 }
 0x414   : > { %v1217_v25 = vpop.eup %1216 }
 0x415   : > { %v801_v26 = vpop.permute.xlu1 %800  ;;  %v535_v27 = vsel %vm375_vm6, %v1217_v25, 0.0  ;;  %v548_v33 = vpack.c.bf16 %v1217_v25, %v1217_v25 }
 0x416   : > { %v803_v28 = vsub.f32 %v791_v63, %v801_v26  ;;  %536 = vadd.xlane.f32.xlu0 %v535_v27  ;;  %v810_v63 = vld [vmem:[#allocation3 + $0x18] sm:$0xff] }
 0x418   : > { %v804_v29 = vmul.f32 1.442695, %v803_v28  ;;  %v681_v28 = vld [vmem:[#allocation4 + $0x10] sm:$0xff] }
 0x419   : > { %v553_v30 = vpop.permute.xlu1 %552 }
 0x41a   : > { %1220 = vpow2.f32 %v804_v29  ;;  %v558_v31 = vsel %vm410_vm7, %v553_v30, 0 }
 0x41b   : > { %1148 = vmatpush3.bf16.msra.mxu0 %v558_v31  ;;  %1222 = vpow2.f32 %v389_v42 }
 0x41c   : > { %v1219_v32 = vpop.eup %1218  ;;  %1159 = vmatprep.subr.bf16.mxu0 %v1262_v0  ;;  %1224 = vpow2.f32 %v530_v44 }
 0x41d   : > { %v675_v34 = vsel %vm375_vm6, %v1219_v32, 0.0  ;;  %v690_v35 = vpop.permute.xlu1 %689  ;;  %v688_v39 = vpack.c.bf16 %v1219_v32, %v1219_v32  ;;  %1226 = vpow2.f32 %v807_v45 }
 0x41e   : > { %676 = vadd.xlane.f32.xlu0 %v675_v34  ;;  %1150 = vmatmul.mubr.msk.bf16.vlgmr.msra.gmra.mrb[4].mxu0 %vm375_vm6, %v548_v33  ;;  %v695_v36 = vsel %vm410_vm7, %v690_v35, 0  ;;  %1228 = vpow2.f32 %v670_v46  ;;  %v818_v35 = vld [vmem:[#allocation4 + $0x18] sm:$0xff] }
 0x41f   : > { %1160 = vmatpush3.bf16.msra.mxu0 %v695_v36  ;;  %1161 = vmatprep.mubr.msk.bf16.mxu0 %vm1263_vm1, %v1262_v0 }
 0x420   : > { %1171 = vmatprep.subr.bf16.mxu0 %v1262_v0 }
 0x421   : > { %v827_v37 = vpop.permute.xlu1 %826 }
 0x422   : > { %v832_v41 = vsel %vm410_vm7, %v827_v37, 0 }
 0x424   : > { %v1221_v38 = vpop.eup %1220 }
 0x425   : > { %v812_v43 = vsel %vm375_vm6, %v1221_v38, 0.0  ;;  %v825_v47 = vpack.c.bf16 %v1221_v38, %v1221_v38  ;;  %v1223_v20 = vpop.eup %1222 }
 0x426   : > { %1162 = vmatmul.mubr.msk.bf16.vlgmr.msra.gmra.mrb[8].mxu0 %vm375_vm6, %v688_v39  ;;  %813 = vadd.xlane.f32.xlu1 %v812_v43  ;;  %v1225_v22 = vpop.eup %1224 }
 0x427   : > { %1172 = vmatpush3.bf16.msra.mxu0 %v832_v41  ;;  %1173 = vmatprep.mubr.msk.bf16.mxu0 %vm1263_vm1, %v1262_v0  ;;  %v1227_v23 = vpop.eup %1226  ;;  %v392_v0 = vmul.f32 %v1223_v20, %v391_v49  ;;  %v534_v55 = vmul.f32 %v1225_v22, %v533_v54 }
 0x428   : > { %v1229_v48 = vpop.eup %1228  ;;  %v811_v2 = vmul.f32 %v1227_v23, %v810_v63 }
 0x429   : > { %v674_v59 = vmul.f32 %v1229_v48, %v673_v58 }
 0x42e   : > { %1174 = vmatmul.mubr.msk.bf16.vlgmr.msra.gmra.mrb[12].mxu0 %vm375_vm6, %v825_v47 }
 0x434   : > { %402 = vperm.xlu0 %1210, %v1223_v20  }
 0x437   : > { %544 = vperm.xlu1 %1211, %v1225_v22  }
 0x438   : > { %821 = vperm.xlu0 %1210, %v1227_v23  }
 0x43b   : > { %684 = vperm.xlu1 %1211, %v1229_v48  }
 0x453   : > { %v395_v50 = vpop.xlane.xlu1 %394 }
 0x454   : > { %v396_v51 = vadd.f32 %v395_v50, %v392_v0 }
 0x456   : > { %398 = vst.msk [vmem:[#allocation3] sm:$0xff] %vm289_vm2, %v396_v51 }
 0x45d   : > { %v880_v52 = vld [vmem:[#allocation3] sm:$0xff] }
 0x45e   : > { %1230 = vrcp.f32 %v880_v52 }
 0x468   : > { %v1231_v53 = vpop.eup %1230 }
 0x469   : > { %885 = vperm.xlu1 %1211, %v1231_v53  }
 0x4a3   : > { %v537_v56 = vpop.xlane.xlu0 %536 }
 0x4a4   : > { %v538_v57 = vadd.f32 %v537_v56, %v534_v55 }
 0x4a6   : > { %539 = vst.msk [vmem:[#allocation3 + $0x8] sm:$0xff] %vm289_vm2, %v538_v57 }
 0x4ab   : > { %v677_v60 = vpop.xlane.xlu0 %676 }
 0x4ac   : > { %v678_v61 = vadd.f32 %v677_v60, %v674_v59 }
 0x4ad   : > { %v893_v62 = vld [vmem:[#allocation3 + $0x8] sm:$0xff] }
 0x4ae   : > { %679 = vst.msk [vmem:[#allocation3 + $0x10] sm:$0xff] %vm289_vm2, %v678_v61  ;;  %1232 = vrcp.f32 %v893_v62 }
 0x4b3   : > { %v814_v3 = vpop.xlane.xlu1 %813  ;;  %v403_v4 = vpop.permute.xlu0 %402 }
 0x4b4   : > { %v815_v5 = vadd.f32 %v814_v3, %v811_v2  ;;  %v405_v6 = vmul.f32 %v403_v4, %v399_v1 }
 0x4b5   : > { %v913_v7 = vld [vmem:[#allocation3 + $0x10] sm:$0xff] }
 0x4b6   : > { %816 = vst.msk [vmem:[#allocation3 + $0x18] sm:$0xff] %vm289_vm2, %v815_v5  ;;  %v454_v8 = vadd.f32 %v1400_v40, %v405_v6  ;;  %1234 = vrcp.f32 %v913_v7 }
 0x4b7   : > { %v545_v13 = vpop.permute.xlu1 %544  ;;  %v822_v36 = vpop.permute.xlu0 %821 }
 0x4b8   : > { %v1233_v9 = vpop.eup %1232  ;;  %455 = vst.msk [vmem:[#allocation4] sm:$0xff] %vm298_vm0, %v454_v8  ;;  %v547_v19 = vmul.f32 %v545_v13, %v541_v18  ;;  %v824_v37 = vmul.f32 %v822_v36, %v818_v35 }
 0x4b9   : > { %899 = vperm.xlu0 %1210, %v1233_v9  }
 0x4bb   : > { %v685_v14 = vpop.permute.xlu1 %684 }
 0x4bc   : > { %v687_v29 = vmul.f32 %v685_v14, %v681_v28 }
 0x4bd   : > { %v933_v10 = vld [vmem:[#allocation3 + $0x18] sm:$0xff] }
 0x4be   : > { %1236 = vrcp.f32 %v933_v10 }
 0x4bf   : > { %v882_v15 = vld [vmem:[#allocation4] sm:$0xff] }
 0x4c0   : > { %v1235_v11 = vpop.eup %1234 }
 0x4c1   : > { %919 = vperm.xlu0 %1210, %v1235_v11  }
 0x4c8   : > { %v1237_v12 = vpop.eup %1236 }
 0x4c9   : > { %939 = vperm.xlu0 %1210, %v1237_v12  }
 0x4e8   : > { %v886_v16 = vpop.permute.xlu1 %885 }
 0x4e9   : > { %v888_v17 = vmul.f32 %v886_v16, %v882_v15 }
 0x4eb   : > { %v889_v40 = vpack.c.bf16 %v888_v17, %v888_v17 }
 0x4ed   : > { %891 = vst.msk [vmem:[%s1450_s5] sm:$0xf] %vm890_vm8, %v889_v40 }
 0x4f1   : > { %v594_v21 = vpop.f32.mrb[4].mxu0 }
 0x4f2   : > { %v600_v24 = vadd.f32 %v594_v21, %v547_v19  ;;  %v1151_v25 = vpop.f32.mrb[5].mxu0 }
 0x4f3   : > { %v597_v26 = vpop.f32.mrb[6].mxu0 }
 0x4f4   : > { %601 = vst.msk [vmem:[#allocation4 + $0x8] sm:$0xff] %vm298_vm0, %v600_v24  ;;  %v1152_v27 = vpop.f32.mrb[7].mxu0 }
 0x4f9   : > { %v731_v30 = vpop.f32.mrb[8].mxu0 }
 0x4fa   : > { %v737_v31 = vadd.f32 %v731_v30, %v687_v29  ;;  %v1163_v32 = vpop.f32.mrb[9].mxu0 }
 0x4fb   : > { %v734_v33 = vpop.f32.mrb[10].mxu0  ;;  %v896_v45 = vld [vmem:[#allocation4 + $0x8] sm:$0xff] }
 0x4fc   : > { %738 = vst.msk [vmem:[#allocation4 + $0x10] sm:$0xff] %vm298_vm0, %v737_v31  ;;  %v1164_v34 = vpop.f32.mrb[11].mxu0 }
 0x501   : > { %v868_v38 = vpop.f32.mrb[12].mxu0 }
 0x502   : > { %v874_v39 = vadd.f32 %v868_v38, %v824_v37  ;;  %v1175_v41 = vpop.f32.mrb[13].mxu0 }
 0x503   : > { %v871_v42 = vpop.f32.mrb[14].mxu0  ;;  %v916_v22 = vld [vmem:[#allocation4 + $0x10] sm:$0xff] }
 0x504   : > { %875 = vst.msk [vmem:[#allocation4 + $0x18] sm:$0xff] %vm298_vm0, %v874_v39  ;;  %v1176_v43 = vpop.f32.mrb[15].mxu0 }
 0x50b   : > { %v936_v0 = vld [vmem:[#allocation4 + $0x18] sm:$0xff] }
 0x538   : > { %v900_v44 = vpop.permute.xlu0 %899 }
 0x539   : > { %v902_v46 = vmul.f32 %v900_v44, %v896_v45 }
 0x53b   : > { %v1110_v47 = vpack.c.bf16 %v902_v46, %v902_v46 }
 0x53d   : > { %907 = vrot.lane.b32.xlu1 %v1110_v47, %s1269_s25 }
 0x540   : > { %v920_v20 = vpop.permute.xlu0 %919 }
 0x541   : > { %v922_v23 = vmul.f32 %v920_v20, %v916_v22 }
 0x543   : > { %v1111_v48 = vpack.c.bf16 %v922_v23, %v922_v23 }
 0x545   : > { %927 = vrot.lane.b32.xlu1 %v1111_v48, %s1268_s24 }
 0x548   : > { %v940_v49 = vpop.permute.xlu0 %939 }
 0x549   : > { %v942_v50 = vmul.f32 %v940_v49, %v936_v0 }
 0x54b   : > { %v1112_v51 = vpack.c.bf16 %v942_v50, %v942_v50 }
 0x54d   : > { %947 = vrot.lane.b32.xlu1 %v1112_v51, %s1267_s23 }
 0x5af   : > { %v908_v52 = vpop.permute.xlu1 %907 }
 0x5b0   : > { %911 = vst.msk [vmem:[%s1450_s5] sm:$0xf] %vm910_vm9, %v908_v52 }
 0x5b7   : > { %v928_v53 = vpop.permute.xlu1 %927 }
 0x5b8   : > { %931 = vst.msk [vmem:[%s1450_s5] sm:$0xf] %vm930_vm10, %v928_v53 }
 0x5bf   : > { %v948_v54 = vpop.permute.xlu1 %947 }
 0x5c0   : > { %951 = vst.msk [vmem:[%s1450_s5] sm:$0xf] %vm950_vm11, %v948_v54 }
 0x5c1 PF: > { %s13_s14 = sadd.s32 1, %s1260_s14   ;;  %s1475_s12 = smov %s1256_s13 }
 0x5c2   : > { %p10_p5 = scmp.ge.s32.totalorder %s13_s14, 4   ;;  %s1476_s13 = smov %s1478_s15 }
 0x5c4   :  { %12 = sbr.rel (!%p10_p5) target bundleno = 2 (0x2), region = 95 }

// kernel: codebert_get_loss.19
= control target key start
LH: loop header
LB: loop body
LE: loop exit
PB: predicated region body
PF: predicated region fallthrough
CT: control target
= control target key end

     0   :  { %s145_s0 = inlined_call_operand.vmem [shape: bf16[16,128], index: 0, kind: input, shape index: {}]   ;;  %s146_s1 = inlined_call_operand.vmem [shape: bf16[16,128], index: 1, kind: input, shape index: {}]   ;;  %s147_s2 = inlined_call_operand.vmem [shape: f32[1,128], index: 2, kind: input, shape index: {}]   ;;  %s148_s3 = inlined_call_operand.vmem [shape: f32[1,128], index: 3, kind: input, shape index: {}]   ;;  %s149_s4 = inlined_call_operand.vmem [shape: bf16[16,128], index: 4, kind: output, shape index: {}]  }
   0x1   :  { %v89_v0 = vld [vmem:[%s145_s0] sm:$0xff]  }
   0x2   :  { %v93_v1 = vld [vmem:[%s146_s1] sm:$0xff]   ;;  %v90_v2 = vunpack.c.l.bf16 %v89_v0  ;;  %v91_v4 = vunpack.c.h.bf16 %v89_v0 }
   0x3   :  { %v94_v3 = vunpack.c.l.bf16 %v93_v1  ;;  %v95_v5 = vunpack.c.h.bf16 %v93_v1  ;;  %v82_v24 = vld [vmem:[%s147_s2] ss:$0 sm:$0xff] }
   0x4   :  { %v83_v28 = vld [vmem:[%s148_s3] ss:$0 sm:$0xff] }
   0x5   :  { %v25_v6 = vadd.f32 %v94_v3, %v90_v2  ;;  %v26_v7 = vadd.f32 %v95_v5, %v91_v4 }
   0x7   :  { %27 = vadd.xlane.f32.xlu0 %v25_v6 }
   0xb   :  { %29 = vadd.xlane.f32.xlu0 %v26_v7 }
  0x94   :  { %v28_v8 = vpop.xlane.xlu0 %27 }
  0x95   :  { %v32_v9 = vmul.f32 0.0078125, %v28_v8 }
  0x97   :  { %v34_v10 = vsub.f32 %v25_v6, %v32_v9 }
  0x98   :  { %v30_v11 = vpop.xlane.xlu0 %29 }
  0x99   :  { %v33_v12 = vmul.f32 0.0078125, %v30_v11  ;;  %v36_v13 = vmul.f32 %v34_v10, %v34_v10 }
  0x9b   :  { %v35_v14 = vsub.f32 %v26_v7, %v33_v12  ;;  %38 = vadd.xlane.f32.xlu1 %v36_v13 }
  0x9d   :  { %v37_v15 = vmul.f32 %v35_v14, %v35_v14 }
  0x9f   :  { %40 = vadd.xlane.f32.xlu1 %v37_v15 }
 0x128   :  { %v39_v16 = vpop.xlane.xlu1 %38 }
 0x129   :  { %v42_v17 = vmul.f32 0.0078125, %v39_v16 }
 0x12b   :  { %v44_v18 = vadd.f32 1e-05, %v42_v17 }
 0x12c   :  { %v41_v19 = vpop.xlane.xlu1 %40 }
 0x12d   :  { %101 = vrsqrt.f32 %v44_v18  ;;  %v43_v20 = vmul.f32 0.0078125, %v41_v19 }
 0x12f   :  { %v45_v21 = vadd.f32 1e-05, %v43_v20 }
 0x131   :  { %103 = vrsqrt.f32 %v45_v21 }
 0x137   :  { %v102_v22 = vpop.eup %101 }
 0x138   :  { %v48_v23 = vmul.f32 %v102_v22, %v34_v10 }
 0x13a   :  { %v57_v26 = vmul.f32 %v82_v24, %v48_v23 }
 0x13b   :  { %v104_v25 = vpop.eup %103 }
 0x13c   :  { %v49_v27 = vmul.f32 %v104_v25, %v35_v14  ;;  %v66_v30 = vadd.f32 %v83_v28, %v57_v26 }
 0x13e   :  { %v58_v29 = vmul.f32 %v82_v24, %v49_v27 }
 0x140   :  { %v67_v31 = vadd.f32 %v83_v28, %v58_v29 }
 0x142   :  { %v99_v32 = vpack.c.bf16 %v67_v31, %v66_v30 }
 0x144   :  { %100 = vst [vmem:[%s149_s4] sm:$0xff] %v99_v32  }

// kernel: codebert_get_loss.21
= control target key start
LH: loop header
LB: loop body
LE: loop exit
PB: predicated region body
PF: predicated region fallthrough
CT: control target
= control target key end

     0   :  { %v293_v1 = vmov 0   ;;  %v37_v19 = vlaneseq  ;;  %s383_s1 = inlined_call_operand.vmem [shape: bf16[128,256], index: 1, kind: input, shape index: {}]   ;;  %s384_s0 = inlined_call_operand.vmem [shape: bf16[32,128], index: 0, kind: input, shape index: {}]   ;;  %s385_s2 = inlined_call_operand.vmem [shape: f32[1,256], index: 2, kind: input, shape index: {}]   ;;  %s386_s3 = inlined_call_operand.vmem [shape: bf16[32,256], index: 3, kind: output, shape index: {}]  }
   0x1   :  { %v267_v0 = vld [vmem:[%s383_s1 + $0x4] ss:$8 sps:$4 sm:$0xff]   ;;  %171 = vmatprep.mubr.bf16.mxu0 %v293_v1  ;;  %181 = vmatprep.mubr.bf16.mxu1 %v293_v1  ;;  %v269_v2 = vld [vmem:[%s383_s1] ss:$8 sps:$4 sm:$0xff]   ;;  %v270_v3 = vld [vmem:[%s383_s1 + $0x14] ss:$8 sps:$4 sm:$0xff]  }
   0x2   :  { %139 = vmatprep.subr.bf16.mxu0 %v267_v0  ;;  %250 = vmatprep.subr.bf16.mxu1 %v267_v0  ;;  %v272_v4 = vld [vmem:[%s383_s1 + $0x10] ss:$8 sps:$4 sm:$0xff]   ;;  %v273_v5 = vld [vmem:[%s383_s1 + $0x24] ss:$8 sps:$4 sm:$0xff]   ;;  %v275_v6 = vld [vmem:[%s383_s1 + $0x20] ss:$8 sps:$4 sm:$0xff]  }
   0x3   :  { %140 = vmatpush1.bf16.msra.mxu0 %v269_v2  ;;  %258 = vmatpush1.bf16.msra.mxu1 %v269_v2  ;;  %v276_v7 = vld [vmem:[%s383_s1 + $0x34] ss:$8 sps:$4 sm:$0xff]   ;;  %v278_v8 = vld [vmem:[%s383_s1 + $0x30] ss:$8 sps:$4 sm:$0xff]   ;;  %v279_v9 = vld [vmem:[%s383_s1 + $0x44] ss:$8 sps:$4 sm:$0xff]  }
   0x4   :  { %141 = vmatprep.subr.bf16.mxu0 %v270_v3  ;;  %251 = vmatprep.subr.bf16.mxu1 %v270_v3  ;;  %v281_v10 = vld [vmem:[%s383_s1 + $0x40] ss:$8 sps:$4 sm:$0xff]   ;;  %v282_v11 = vld [vmem:[%s383_s1 + $0x54] ss:$8 sps:$4 sm:$0xff]   ;;  %v284_v12 = vld [vmem:[%s383_s1 + $0x50] ss:$8 sps:$4 sm:$0xff]  }
   0x5   :  { %v285_v13 = vld [vmem:[%s383_s1 + $0x64] ss:$8 sps:$4 sm:$0xff]   ;;  %v287_v14 = vld [vmem:[%s383_s1 + $0x60] ss:$8 sps:$4 sm:$0xff]   ;;  %v288_v15 = vld [vmem:[%s383_s1 + $0x74] ss:$8 sps:$4 sm:$0xff]  }
   0x6   :  { %v290_v16 = vld [vmem:[%s383_s1 + $0x70] ss:$8 sps:$4 sm:$0xff]   ;;  %v291_v17 = vld [vmem:[%s384_s0] sm:$0xff]   ;;  %v292_v18 = vld [vmem:[%s384_s0 + $0x8] sm:$0xff]   ;;  %v38_v20 = vshrl.u32 %v37_v19, 7 }
   0x7   :  { %142 = vmatpush1.bf16.msra.mxu0 %v272_v4  ;;  %259 = vmatpush1.bf16.msra.mxu1 %v272_v4  ;;  %v35_v22 = vld [vmem:[%s385_s2] sm:$0x3] }
   0x8   :  { %143 = vmatprep.subr.bf16.mxu0 %v273_v5  ;;  %252 = vmatprep.subr.bf16.mxu1 %v273_v5  ;;  %v39_v21 = vsub.s32 0, %v38_v20  ;;  %v43_v23 = vsub.s32 1, %v38_v20 }
   0xa   :  { %v40_v24 = vrot.slane %v35_v22, %v39_v21  ;;  %v44_v25 = vrot.slane %v35_v22, %v43_v23 }
   0xb   :  { %144 = vmatpush1.bf16.msra.mxu0 %v275_v6  ;;  %260 = vmatpush1.bf16.msra.mxu1 %v275_v6 }
   0xc   :  { %145 = vmatprep.subr.bf16.mxu0 %v276_v7  ;;  %253 = vmatprep.subr.bf16.mxu1 %v276_v7 }
   0xf   :  { %146 = vmatpush1.bf16.msra.mxu0 %v278_v8  ;;  %261 = vmatpush1.bf16.msra.mxu1 %v278_v8 }
  0x10   :  { %147 = vmatprep.subr.bf16.mxu0 %v279_v9  ;;  %254 = vmatprep.subr.bf16.mxu1 %v279_v9 }
  0x13   :  { %148 = vmatpush1.bf16.msra.mxu0 %v281_v10  ;;  %262 = vmatpush1.bf16.msra.mxu1 %v281_v10 }
  0x14   :  { %149 = vmatprep.subr.bf16.mxu0 %v282_v11  ;;  %255 = vmatprep.subr.bf16.mxu1 %v282_v11 }
  0x17   :  { %150 = vmatpush1.bf16.msra.mxu0 %v284_v12  ;;  %263 = vmatpush1.bf16.msra.mxu1 %v284_v12 }
  0x18   :  { %151 = vmatprep.subr.bf16.mxu0 %v285_v13  ;;  %256 = vmatprep.subr.bf16.mxu1 %v285_v13 }
  0x1b   :  { %152 = vmatpush1.bf16.msra.mxu0 %v287_v14  ;;  %264 = vmatpush1.bf16.msra.mxu1 %v287_v14 }
  0x1c   :  { %153 = vmatprep.subr.bf16.mxu0 %v288_v15  ;;  %257 = vmatprep.subr.bf16.mxu1 %v288_v15 }
  0x1f   :  { %154 = vmatpush1.bf16.msra.mxu0 %v290_v16  ;;  %265 = vmatpush1.bf16.msra.mxu1 %v290_v16 }
  0x22   :  { %172 = vmatmul.mubr.bf16.vlgmr.msra.gmra.mrb[0].mxu0 %v291_v17  ;;  %182 = vmatmul.mubr.bf16.vlgmr.msra.gmra.mrb[0].mxu1 %v292_v18 }
  0xf5   :  { %v173_v26 = vpop.f32.mrb[0].mxu0  ;;  %v183_v27 = vpop.f32.mrb[0].mxu1 }
  0xf6   :  { %v174_v28 = vadd.f32 %v173_v26, %v40_v24  ;;  %v184_v29 = vadd.f32 %v183_v27, %v40_v24  ;;  %v175_v30 = vpop.f32.mrb[1].mxu0  ;;  %v185_v31 = vpop.f32.mrb[1].mxu1 }
  0xf7   :  { %v176_v32 = vadd.f32 %v175_v30, %v44_v25  ;;  %v186_v33 = vadd.f32 %v185_v31, %v44_v25  ;;  %v177_v34 = vpop.f32.mrb[2].mxu0  ;;  %v187_v35 = vpop.f32.mrb[2].mxu1 }
  0xf8   :  { %v178_v36 = vadd.f32 %v177_v34, %v40_v24  ;;  %v188_v37 = vadd.f32 %v187_v35, %v40_v24  ;;  %v179_v38 = vpop.f32.mrb[3].mxu0  ;;  %v189_v39 = vpop.f32.mrb[3].mxu1 }
  0xf9   :  { %v246_v40 = vpack.c.bf16 %v176_v32, %v174_v28  ;;  %v248_v41 = vpack.c.bf16 %v186_v33, %v184_v29  ;;  %v180_v42 = vadd.f32 %v179_v38, %v44_v25  ;;  %v190_v43 = vadd.f32 %v189_v39, %v44_v25 }
  0xfb   :  { %216 = vst [vmem:[%s386_s3] sm:$0xff] %v246_v40  ;;  %218 = vst [vmem:[%s386_s3 + $0x10] sm:$0xff] %v248_v41  ;;  %v247_v44 = vpack.c.bf16 %v180_v42, %v178_v36  ;;  %v249_v45 = vpack.c.bf16 %v190_v43, %v188_v37 }
  0xfd   :  { %217 = vst [vmem:[%s386_s3 + $0x8] sm:$0xff] %v247_v44  ;;  %219 = vst [vmem:[%s386_s3 + $0x18] sm:$0xff] %v249_v45 }

// kernel: codebert_get_loss.22
= control target key start
LH: loop header
LB: loop body
LE: loop exit
PB: predicated region body
PF: predicated region fallthrough
CT: control target
= control target key end

     0   :  { %s1440_s15 = smov 0   ;;  %s1442_s16 = smov 0   ;;  %s1665_s0 = inlined_call_operand.vmem [shape: bf16[2,8,128], index: 0, kind: input, shape index: {}]   ;;  %s1666_s1 = inlined_call_operand.vmem [shape: bf16[2,16,256], index: 1, kind: input, shape index: {}, may-alias: {1,2}]   ;;  %s1667_s2 = inlined_call_operand.vmem [shape: bf16[2,16,256], index: 2, kind: input, shape index: {}, may-alias: {1,2}]   ;;  %s1668_s3 = inlined_call_operand.vmem [shape: s32[2,1,16], index: 3, kind: input, shape index: {}]   ;;  %s1669_s4 = inlined_call_operand.vmem [shape: bf16[2,8,128], index: 4, kind: output, shape index: {}]  }
   0x1   :  { %s1444_s17 = smov 0   ;;  %s1446_s18 = smov 0  }
   0x2   :  { %s1448_s19 = smov 0  }
   0x3 LB: > { %s33_s20 = sadd.s32 1, %s1401_s18  ;;  %p77_p1 = scmp.ne.s32.totalorder %s1393_s16, %s1389_s15  ;;  %s1405_s19 = sphi %s1448_s19, %s14_s19   ;;  %s1401_s18 = sphi %s1446_s18, %s1674_s18   ;;  %s1397_s17 = sphi %s1444_s17, %s1673_s17   ;;  %s1393_s16 = sphi %s1442_s16, %s1672_s16   ;;  %s1389_s15 = sphi %s1440_s15, %s1671_s15  }
   0x4   : > { %p35_p0 = scmp.ge.s32.totalorder %s33_s20, 2  ;;  %p78_p2 = scmp.eq.s32.totalorder %s1405_s19, 0 }
   0x5   : > { %s70_s23 = sadd.s32 1, %s1393_s16  ;;  %p1192_p5 = scmp.ge.s32.totalorder %s1405_s19, 2 }
   0x6   : > { %s1676_s20 = smov (%p35_p0, %s33_s20), 0  ;;  %p1471_p3 = por %p78_p2, %p77_p1 }
   0x7   : > { %s65_s22 = ssub.s32 %s1401_s18, %s1676_s20  ;;  %187 = sbr.rel (%p1192_p5) target bundleno = 28 (0x1c), region = 16 }
   0x8   : > { %p68_p4 = scmp.eq.s32.totalorder %s65_s22, 0 }
   0xa   : > { %s1479_s24 = scalar_select %p68_p4, %s1393_s16, %s70_s23  }
   0xe   : > { %200 = sbr.rel (!%p1471_p3) target bundleno = 21 (0x15), region = 24  ;;  %s202_s25 = sand.u32 (%p1471_p3), 1, %s1393_s16  }
   0xf   : > { %s1222_s26 = sshll.u32 (%p1471_p3), %s1401_s18, 4  ;;  %s1193_s27 = sshll.u32 (%p1471_p3), %s202_s25, 3 }
  0x10   : > { %s210_s30 = scalar_lea.vmem (%p1471_p3), %s1666_s1, %s1222_s26  ;;  %s204_s5 = scalar_lea.vmem (%p1471_p3), [#allocation5], %s1193_s27 }
  0x11   : > { %v226_v0 = vld [vmem:[%s210_s30] sm:$0xf] (%p1471_p3)  ;;  %v228_v1 = vld [vmem:[%s210_s30 + $0x8] sm:$0xf] (%p1471_p3) }
  0x12   : > { %227 = vst [vmem:[%s204_s5] sm:$0xf] (%p1471_p3), %v226_v0  ;;  %229 = vst [vmem:[%s204_s5 + $0x4] sm:$0xf] (%p1471_p3), %v228_v1 }
  0x15 PF: > { %256 = sbr.rel (!%p1471_p3) target bundleno = 28 (0x1c), region = 65  ;;  %s258_s6 = sand.u32 (%p1471_p3), 1, %s1393_s16  }
  0x16   : > { %s1223_s7 = sshll.u32 (%p1471_p3), %s1401_s18, 4  ;;  %s1196_s8 = sshll.u32 (%p1471_p3), %s258_s6, 3 }
  0x17   : > { %s1098_s11 = scalar_lea.vmem (%p1471_p3), %s1667_s2, %s1223_s7  ;;  %s260_s12 = scalar_lea.vmem (%p1471_p3), [#allocation6], %s1196_s8 }
  0x18   : > { %v1199_v2 = vld [vmem:[%s1098_s11 + $0x4] sm:$0xf] (%p1471_p3)  ;;  %v1200_v3 = vld [vmem:[%s1098_s11 + $0xc] sm:$0xf] (%p1471_p3) }
  0x19   : > { %284 = vst [vmem:[%s260_s12] sm:$0xf] (%p1471_p3), %v1199_v2  ;;  %286 = vst [vmem:[%s260_s12 + $0x4] sm:$0xf] (%p1471_p3), %v1200_v3 }
  0x1c PF: > { %p1201_p6 = scmp.ge.s32.totalorder %s1405_s19, 1  ;;  %p321_p7 = scmp.lt.s32.totalorder %s1405_s19, 3 }
  0x1e   : > { %p322_p8 = pnand %p1201_p6, %p321_p7 }
  0x1f   : > { %s328_s13 = sand.u32 (!%p322_p8), 1, %s1389_s15   ;;  %vm415_vm0 = vcmask (!%p322_p8), 261120   ;;  %p379_p9 = scmp.lt.s32.totalorder (!%p322_p8), %s1397_s17, 1  ;;  %v1407_v4 = vmov (!%p322_p8), 0.0   ;;  %vm1408_vm1 = vmmov (!%p322_p8), 0   ;;  %v1409_v9 = vmov (!%p322_p8), 0  }
  0x20   : > { %325 = sbr.rel (%p322_p8) target bundleno = 1489 (0x5d1), region = 110  ;;  %1243 = vmatprep.subr.bf16.mxu0 (!%p322_p8), %v1407_v4  ;;  %s1501_s14 = sshll.u32 (!%p322_p8), %s328_s13, 3  ;;  %416 = vst.msk [vmem:[#allocation4] sm:$0xff] (!%p322_p8), %vm415_vm0, %v1407_v4  ;;  %417 = vst.msk [vmem:[#allocation4 + $0x8] sm:$0xff] (!%p322_p8), %vm415_vm0, %v1407_v4  ;;  %1245 = vmatprep.mubr.msk.bf16.mxu0 (!%p322_p8), %vm1408_vm1, %v1407_v4  ;;  %vm406_vm3 = vcmask (!%p322_p8), 7168   ;;  %v425_v12 = vlaneseq (!%p322_p8)  ;;  %v1411_v18 = vmov (!%p322_p8), -10000.0  }
  0x21   : > { %418 = vst.msk [vmem:[#allocation4 + $0x10] sm:$0xff] (!%p322_p8), %vm415_vm0, %v1407_v4  ;;  %419 = vst.msk [vmem:[#allocation4 + $0x18] sm:$0xff] (!%p322_p8), %vm415_vm0, %v1407_v4  ;;  %1249 = vmatprep.subr.bf16.mxu1 (!%p322_p8), %v1407_v4  ;;  %1251 = vmatprep.mubr.msk.bf16.mxu1 (!%p322_p8), %vm1408_vm1, %v1407_v4  ;;  %s330_s15 = scalar_lea.vmem (!%p322_p8), [#allocation5], %s1501_s14  ;;  %v1410_v11 = vmov (!%p322_p8), -1e+30   ;;  %vm496_vm7 = vcmask (!%p322_p8), 130048  }
  0x22   : > { %v1341_v5 = vld [vmem:[%s330_s15] sm:$0xff] (!%p322_p8)   ;;  %1339 = vset.pattern.permute.xlu0 (!%p322_p8), %v1409_v9  ;;  %1340 = vset.pattern.permute.xlu1 (!%p322_p8), %v1409_v9  ;;  %407 = vst.msk [vmem:[#allocation2] sm:$0xff] (!%p322_p8), %vm406_vm3, %v1410_v11  ;;  %408 = vst.msk [vmem:[#allocation2 + $0x8] sm:$0xff] (!%p322_p8), %vm406_vm3, %v1410_v11  ;;  %v435_v13 = vshrl.u32 (!%p322_p8), %v425_v12, 7  ;;  %v426_v15 = vand.u32 (!%p322_p8), 127, %v425_v12  ;;  %s1412_s29 = smov (!%p322_p8), 96  }
  0x23   : > { %v451_v6 = vsel (!%p322_p8), %vm415_vm0, %v1341_v5, 0  ;;  %409 = vst.msk [vmem:[#allocation2 + $0x10] sm:$0xff] (!%p322_p8), %vm406_vm3, %v1410_v11  ;;  %410 = vst.msk [vmem:[#allocation2 + $0x18] sm:$0xff] (!%p322_p8), %vm406_vm3, %v1410_v11  ;;  %585 = vrot.lane.b32.xlu1 (!%p322_p8), %v1341_v5, %s1412_s29  ;;  %s1413_s30 = smov (!%p322_p8), 64   ;;  %s1414_s5 = smov (!%p322_p8), 32   ;;  %vm1001_vm8 = vcmask (!%p322_p8), 257024  }
  0x24   : > { %1244 = vmatpush3.bf16.xpose.msra.mxu0 (!%p322_p8), %v451_v6  ;;  %411 = vst.msk [vmem:[#allocation3] sm:$0xff] (!%p322_p8), %vm406_vm3, %v1407_v4  ;;  %412 = vst.msk [vmem:[#allocation3 + $0x8] sm:$0xff] (!%p322_p8), %vm406_vm3, %v1407_v4  ;;  %v436_v14 = vsub.s32 (!%p322_p8), 0, %v435_v13  ;;  %vm432_vm4 = vcmp.lt.s32.totalorder (!%p322_p8), %v426_v15, 16  ;;  %s337_s6 = scalar_lea.vmem (!%p322_p8), [#allocation6], %s1501_s14  ;;  %vm1019_vm9 = vcmask (!%p322_p8), 519424  }
  0x25   : > { %1261 = vmatprep.subr.bf16.mxu0 (!%p322_p8), %v1407_v4  ;;  %413 = vst.msk [vmem:[#allocation3 + $0x10] sm:$0xff] (!%p322_p8), %vm406_vm3, %v1407_v4  ;;  %414 = vst.msk [vmem:[#allocation3 + $0x18] sm:$0xff] (!%p322_p8), %vm406_vm3, %v1407_v4  ;;  %v1570_v31 = vld [vmem:[%s337_s6] sm:$0xff] (!%p322_p8)   ;;  %vm1037_vm10 = vcmask (!%p322_p8), 781824   ;;  %vm1055_vm11 = vcmask (!%p322_p8), 1044224  }
  0x26   : > { %1250 = vmatpush3.bf16.msra.mxu1 (!%p322_p8), %v1570_v31 }
  0x27   : > { %s1678_s17 = smov (!%p379_p9, %s1397_s17), 1  ;;  %1255 = vmatprep.subr.bf16.mxu1 %v1407_v4 }
  0x28   : > { %s1204_s21 = sshll.u32 %s1678_s17, 2  ;;  %s393_s28 = scalar_lea.vmem %s1668_s3, %s1678_s17 }
  0x29   : > { %s385_s25 = scalar_lea.vmem %s1665_s0, %s1204_s21  ;;  %v430_v8 = vld [vmem:[%s393_s28] sm:$0x1]  ;;  %s1638_s9 = scalar_lea.vmem %s1669_s4, %s1204_s21 }
  0x2a   : > { %v420_v7 = vld [vmem:[%s385_s25] sm:$0xf]  ;;  %vm431_vm2 = vcmp.gt.s32.totalorder %v430_v8, 0  ;;  %v636_v8 = vld [vmem:[#allocation2 + $0x8] sm:$0xff]  ;;  %v771_v12 = vld [vmem:[#allocation2 + $0x10] sm:$0xff] }
  0x2b   : > { %1246 = vmatmul.mubr.msk.bf16.vlgmr.msra.gmra.mrb[0].mxu0 %vm415_vm0, %v420_v7  ;;  %v433_v10 = vsel %vm431_vm2, 1, %v1409_v9  ;;  %v1210_v26 = vcombine.low %v420_v7, %v420_v7  ;;  %v1559_v27 = vld [vmem:[#allocation2] sm:$0xff] }
  0x2c   : > { %1263 = vmatprep.mubr.msk.bf16.mxu0 %vm1408_vm1, %v1407_v4  ;;  %v437_v16 = vrot.slane %v433_v10, %v436_v14 }
  0x2d   : > { %583 = vrot.lane.b32.xlu1 %v1210_v26, %s1412_s29 }
  0x2e   : > { %vm438_vm5 = vcmp.eq.s32.totalorder %v437_v16, 1  ;;  %v906_v16 = vld [vmem:[#allocation2 + $0x18] sm:$0xff] }
  0x2f   : > { %vm439_vm6 = vmand %vm438_vm5, %vm432_vm4 }
  0x30   : > { %v1549_v19 = vsel %vm439_vm6, 0.0, %v1411_v18 }
  0x31   : > { %720 = vrot.lane.b32.xlu1 %v1341_v5, %s1413_s30 }
  0x35   : > { %718 = vrot.lane.b32.xlu1 %v1210_v26, %s1413_s30 }
  0x39   : > { %855 = vrot.lane.b32.xlu1 %v1341_v5, %s1414_s5 }
  0x3d   : > { %853 = vrot.lane.b32.xlu1 %v1210_v26, %s1414_s5 }
  0x95   : > { %v586_v35 = vpop.permute.xlu1 %585 }
  0x96   : > { %v591_v38 = vsel %vm415_vm0, %v586_v35, 0 }
  0x9f   : > { %v584_v36 = vpop.permute.xlu1 %583 }
  0xa3   : > { %v721_v40 = vpop.permute.xlu1 %720 }
  0xa4   : > { %v726_v42 = vsel %vm415_vm0, %v721_v40, 0 }
  0xa7   : > { %v719_v41 = vpop.permute.xlu1 %718 }
  0xab   : > { %v856_v43 = vpop.permute.xlu1 %855 }
  0xac   : > { %v861_v44 = vsel %vm415_vm0, %v856_v43, 0 }
  0xaf   : > { %v854_v45 = vpop.permute.xlu1 %853 }
  0xfe   : > { %v487_v17 = vpop.f32.mrb[0].mxu0 }
  0xff   : > { %v493_v20 = vmul.f32 0.17677669, %v487_v17  ;;  %v1247_v21 = vpop.f32.mrb[1].mxu0 }
 0x100   : > { %v490_v22 = vpop.f32.mrb[2].mxu0 }
 0x101   : > { %v1248_v23 = vpop.f32.mrb[3].mxu0  ;;  %v494_v24 = vadd.f32 %v493_v20, %v1549_v19 }
 0x103   : > { %v497_v25 = vsel %vm496_vm7, %v494_v24, -inf }
 0x104   : > { %498 = vmax.xlane.f32.xlu0 %v497_v25 }
 0x191   : > { %v499_v28 = vpop.xlane.xlu0 %498 }
 0x192   : > { %v1562_v29 = vmax.f32 %v1559_v27, %v499_v28 }
 0x194   : > { %v509_v30 = vsub.f32 %v1559_v27, %v1562_v29  ;;  %579 = vst.msk [vmem:[#allocation2] sm:$0xff] %vm406_vm3, %v1562_v29  ;;  %503 = vperm.xlu0 %1339, %v1562_v29  }
 0x196   : > { %v510_v43 = vmul.f32 1.442695, %v509_v30 }
 0x213   : > { %v504_v32 = vpop.permute.xlu0 %503 }
 0x214   : > { %v506_v33 = vsub.f32 %v494_v24, %v504_v32 }
 0x216   : > { %v507_v34 = vmul.f32 1.442695, %v506_v33 }
 0x218   : > { %1343 = vpow2.f32 %v507_v34 }
 0x222   : > { %v1574_v37 = vpop.eup %1343 }
 0x223   : > { %v527_v39 = vpack.c.bf16 %v1574_v37, %v1574_v37  ;;  %v514_v20 = vsel %vm496_vm7, %v1574_v37, 0.0 }
 0x225   : > { %1252 = vmatmul.mubr.msk.bf16.vlgmr.msra.gmra.mrb[0].mxu1 %vm496_vm7, %v527_v39 }
 0x226   : > { %1256 = vmatpush3.bf16.xpose.msra.mxu1 %v591_v38  ;;  %1257 = vmatprep.mubr.msk.bf16.mxu1 %vm1408_vm1, %v1407_v4 }
 0x227   : > { %1267 = vmatprep.subr.bf16.mxu1 %v1407_v4 }
 0x22d   : > { %1258 = vmatmul.mubr.msk.bf16.vlgmr.msra.gmra.mrb[4].mxu1 %vm415_vm0, %v584_v36 }
 0x22e   : > { %1268 = vmatpush3.bf16.xpose.msra.mxu1 %v726_v42  ;;  %1269 = vmatprep.mubr.msk.bf16.mxu1 %vm1408_vm1, %v1407_v4 }
 0x22f   : > { %1279 = vmatprep.subr.bf16.mxu1 %v1407_v4 }
 0x235   : > { %1270 = vmatmul.mubr.msk.bf16.vlgmr.msra.gmra.mrb[8].mxu1 %vm415_vm0, %v719_v41 }
 0x236   : > { %1280 = vmatpush3.bf16.xpose.msra.mxu1 %v861_v44  ;;  %1281 = vmatprep.mubr.msk.bf16.mxu1 %vm1408_vm1, %v1407_v4 }
 0x23d   : > { %1282 = vmatmul.mubr.msk.bf16.vlgmr.msra.gmra.mrb[12].mxu1 %vm415_vm0, %v854_v45 }
 0x2f8   : > { %v1593_v46 = vpop.f32.mrb[0].mxu1 }
 0x2f9   : > { %v1253_v47 = vpop.f32.mrb[1].mxu1 }
 0x2fa   : > { %v574_v48 = vpop.f32.mrb[2].mxu1 }
 0x2fb   : > { %v1254_v49 = vpop.f32.mrb[3].mxu1 }
 0x300   : > { %v627_v50 = vpop.f32.mrb[4].mxu1 }
 0x301   : > { %v633_v51 = vmul.f32 0.17677669, %v627_v50  ;;  %v1259_v52 = vpop.f32.mrb[5].mxu1 }
 0x302   : > { %v630_v53 = vpop.f32.mrb[6].mxu1 }
 0x303   : > { %v1260_v54 = vpop.f32.mrb[7].mxu1  ;;  %v634_v55 = vadd.f32 %v633_v51, %v1549_v19  ;;  %v512_v51 = vld [vmem:[#allocation3] sm:$0xff] }
 0x305   : > { %v637_v56 = vsel %vm496_vm7, %v634_v55, -inf }
 0x306   : > { %638 = vmax.xlane.f32.xlu1 %v637_v56  ;;  %v653_v56 = vld [vmem:[#allocation3 + $0x8] sm:$0xff] }
 0x308   : > { %v762_v57 = vpop.f32.mrb[8].mxu1 }
 0x309   : > { %v768_v58 = vmul.f32 0.17677669, %v762_v57  ;;  %v1271_v59 = vpop.f32.mrb[9].mxu1 }
 0x30a   : > { %v765_v60 = vpop.f32.mrb[10].mxu1 }
 0x30b   : > { %v1272_v61 = vpop.f32.mrb[11].mxu1  ;;  %v769_v62 = vadd.f32 %v768_v58, %v1549_v19  ;;  %v788_v60 = vld [vmem:[#allocation3 + $0x10] sm:$0xff] }
 0x30d   : > { %v772_v63 = vsel %vm496_vm7, %v769_v62, -inf }
 0x30e   : > { %773 = vmax.xlane.f32.xlu0 %v772_v63 }
 0x310   : > { %v897_v0 = vpop.f32.mrb[12].mxu1 }
 0x311   : > { %v903_v1 = vmul.f32 0.17677669, %v897_v0  ;;  %v1283_v2 = vpop.f32.mrb[13].mxu1 }
 0x312   : > { %v900_v3 = vpop.f32.mrb[14].mxu1  ;;  %v520_v2 = vld [vmem:[#allocation4] sm:$0xff] }
 0x313   : > { %v1284_v5 = vpop.f32.mrb[15].mxu1  ;;  %v904_v6 = vadd.f32 %v903_v1, %v1549_v19  ;;  %v923_v1 = vld [vmem:[#allocation3 + $0x18] sm:$0xff] }
 0x315   : > { %v907_v7 = vsel %vm496_vm7, %v904_v6, -inf }
 0x316   : > { %908 = vmax.xlane.f32.xlu1 %v907_v7 }
 0x393   : > { %v639_v9 = vpop.xlane.xlu1 %638 }
 0x394   : > { %v640_v10 = vmax.f32 %v636_v8, %v639_v9 }
 0x396   : > { %v649_v11 = vsub.f32 %v636_v8, %v640_v10  ;;  %717 = vst.msk [vmem:[#allocation2 + $0x8] sm:$0xff] %vm406_vm3, %v640_v10  ;;  %643 = vperm.xlu1 %1340, %v640_v10  }
 0x398   : > { %v650_v45 = vmul.f32 1.442695, %v649_v11 }
 0x39b   : > { %v774_v13 = vpop.xlane.xlu0 %773 }
 0x39c   : > { %v775_v14 = vmax.f32 %v771_v12, %v774_v13 }
 0x39e   : > { %v784_v15 = vsub.f32 %v771_v12, %v775_v14  ;;  %852 = vst.msk [vmem:[#allocation2 + $0x10] sm:$0xff] %vm406_vm3, %v775_v14  ;;  %778 = vperm.xlu0 %1339, %v775_v14  }
 0x3a0   : > { %v785_v49 = vmul.f32 1.442695, %v784_v15 }
 0x3a3   : > { %v909_v17 = vpop.xlane.xlu1 %908 }
 0x3a4   : > { %v910_v18 = vmax.f32 %v906_v16, %v909_v17 }
 0x3a6   : > { %v919_v19 = vsub.f32 %v906_v16, %v910_v18  ;;  %987 = vst.msk [vmem:[#allocation2 + $0x18] sm:$0xff] %vm406_vm3, %v910_v18  ;;  %913 = vperm.xlu1 %1340, %v910_v18  }
 0x3a8   : > { %v920_v47 = vmul.f32 1.442695, %v919_v19 }
 0x3aa   : > { %669 = vrot.lane.b32.xlu1 %v1570_v31, %s1412_s29 }
 0x3ae   : > { %804 = vrot.lane.b32.xlu1 %v1570_v31, %s1413_s30 }
 0x3b2   : > { %939 = vrot.lane.b32.xlu1 %v1570_v31, %s1414_s5 }
 0x3d6   : > { %515 = vadd.xlane.f32.xlu1 %v514_v20  ;;  %v661_v20 = vld [vmem:[#allocation4 + $0x8] sm:$0xff] }
 0x415   : > { %v644_v21 = vpop.permute.xlu1 %643 }
 0x416   : > { %v646_v22 = vsub.f32 %v634_v55, %v644_v21 }
 0x418   : > { %v647_v23 = vmul.f32 1.442695, %v646_v22 }
 0x41a   : > { %1345 = vpow2.f32 %v647_v23 }
 0x41d   : > { %v779_v24 = vpop.permute.xlu0 %778 }
 0x41e   : > { %v781_v25 = vsub.f32 %v769_v62, %v779_v24 }
 0x420   : > { %v782_v26 = vmul.f32 1.442695, %v781_v25 }
 0x422   : > { %1347 = vpow2.f32 %v782_v26 }
 0x424   : > { %v1346_v28 = vpop.eup %1345 }
 0x425   : > { %v914_v32 = vpop.permute.xlu1 %913  ;;  %v655_v33 = vsel %vm496_vm7, %v1346_v28, 0.0  ;;  %v668_v36 = vpack.c.bf16 %v1346_v28, %v1346_v28  ;;  %v796_v28 = vld [vmem:[#allocation4 + $0x10] sm:$0xff] }
 0x426   : > { %v916_v34 = vsub.f32 %v904_v6, %v914_v32  ;;  %656 = vadd.xlane.f32.xlu0 %v655_v33 }
 0x428   : > { %v917_v35 = vmul.f32 1.442695, %v916_v34 }
 0x429   : > { %v670_v31 = vpop.permute.xlu1 %669 }
 0x42a   : > { %1349 = vpow2.f32 %v917_v35  ;;  %1262 = vmatpush3.bf16.msra.mxu0 %v670_v31 }
 0x42b   : > { %1273 = vmatprep.subr.bf16.mxu0 %v1407_v4  ;;  %1351 = vpow2.f32 %v510_v43 }
 0x42c   : > { %v1348_v37 = vpop.eup %1347  ;;  %1353 = vpow2.f32 %v650_v45 }
 0x42d   : > { %1264 = vmatmul.mubr.msk.bf16.vlgmr.msra.gmra.mrb[4].mxu0 %vm496_vm7, %v668_v36  ;;  %v790_v38 = vsel %vm496_vm7, %v1348_v37, 0.0  ;;  %v805_v39 = vpop.permute.xlu1 %804  ;;  %v803_v40 = vpack.c.bf16 %v1348_v37, %v1348_v37  ;;  %1355 = vpow2.f32 %v920_v47  ;;  %v931_v37 = vld [vmem:[#allocation4 + $0x18] sm:$0xff] }
 0x42e   : > { %791 = vadd.xlane.f32.xlu0 %v790_v38  ;;  %1274 = vmatpush3.bf16.msra.mxu0 %v805_v39  ;;  %1357 = vpow2.f32 %v785_v49 }
 0x42f   : > { %1275 = vmatprep.mubr.msk.bf16.mxu0 %vm1408_vm1, %v1407_v4  ;;  %1285 = vmatprep.subr.bf16.mxu0 %v1407_v4 }
 0x431   : > { %v940_v41 = vpop.permute.xlu1 %939 }
 0x434   : > { %v1350_v42 = vpop.eup %1349 }
 0x435   : > { %1276 = vmatmul.mubr.msk.bf16.vlgmr.msra.gmra.mrb[8].mxu0 %vm496_vm7, %v803_v40  ;;  %v925_v44 = vsel %vm496_vm7, %v1350_v42, 0.0  ;;  %v938_v48 = vpack.c.bf16 %v1350_v42, %v1350_v42  ;;  %v1352_v27 = vpop.eup %1351 }
 0x436   : > { %926 = vadd.xlane.f32.xlu1 %v925_v44  ;;  %1286 = vmatpush3.bf16.msra.mxu0 %v940_v41  ;;  %v1354_v29 = vpop.eup %1353 }
 0x437   : > { %1287 = vmatprep.mubr.msk.bf16.mxu0 %vm1408_vm1, %v1407_v4  ;;  %v1356_v30 = vpop.eup %1355  ;;  %v513_v4 = vmul.f32 %v1352_v27, %v512_v51  ;;  %v654_v57 = vmul.f32 %v1354_v29, %v653_v56 }
 0x438   : > { %v1358_v50 = vpop.eup %1357  ;;  %v924_v3 = vmul.f32 %v1356_v30, %v923_v1 }
 0x439   : > { %v789_v61 = vmul.f32 %v1358_v50, %v788_v60 }
 0x43d   : > { %1288 = vmatmul.mubr.msk.bf16.vlgmr.msra.gmra.mrb[12].mxu0 %vm496_vm7, %v938_v48 }
 0x444   : > { %523 = vperm.xlu0 %1339, %v1352_v27  }
 0x447   : > { %664 = vperm.xlu1 %1340, %v1354_v29  }
 0x448   : > { %934 = vperm.xlu0 %1339, %v1356_v30  }
 0x44b   : > { %799 = vperm.xlu1 %1340, %v1358_v50  }
 0x463   : > { %v516_v52 = vpop.xlane.xlu1 %515 }
 0x464   : > { %v517_v53 = vadd.f32 %v516_v52, %v513_v4 }
 0x466   : > { %519 = vst.msk [vmem:[#allocation3] sm:$0xff] %vm406_vm3, %v517_v53 }
 0x46d   : > { %v991_v54 = vld [vmem:[#allocation3] sm:$0xff] }
 0x46e   : > { %1359 = vrcp.f32 %v991_v54 }
 0x478   : > { %v1360_v55 = vpop.eup %1359 }
 0x479   : > { %996 = vperm.xlu1 %1340, %v1360_v55  }
 0x4b3   : > { %v657_v58 = vpop.xlane.xlu0 %656 }
 0x4b4   : > { %v658_v59 = vadd.f32 %v657_v58, %v654_v57 }
 0x4b6   : > { %659 = vst.msk [vmem:[#allocation3 + $0x8] sm:$0xff] %vm406_vm3, %v658_v59 }
 0x4bb   : > { %v792_v62 = vpop.xlane.xlu0 %791 }
 0x4bc   : > { %v793_v63 = vadd.f32 %v792_v62, %v789_v61 }
 0x4bd   : > { %v1003_v0 = vld [vmem:[#allocation3 + $0x8] sm:$0xff] }
 0x4be   : > { %794 = vst.msk [vmem:[#allocation3 + $0x10] sm:$0xff] %vm406_vm3, %v793_v63  ;;  %1361 = vrcp.f32 %v1003_v0 }
 0x4c3   : > { %v927_v5 = vpop.xlane.xlu1 %926  ;;  %v524_v6 = vpop.permute.xlu0 %523 }
 0x4c4   : > { %v928_v7 = vadd.f32 %v927_v5, %v924_v3  ;;  %v526_v8 = vmul.f32 %v524_v6, %v520_v2 }
 0x4c5   : > { %v1021_v9 = vld [vmem:[#allocation3 + $0x10] sm:$0xff] }
 0x4c6   : > { %929 = vst.msk [vmem:[#allocation3 + $0x18] sm:$0xff] %vm406_vm3, %v928_v7  ;;  %v577_v10 = vadd.f32 %v1593_v46, %v526_v8  ;;  %1363 = vrcp.f32 %v1021_v9 }
 0x4c7   : > { %v665_v15 = vpop.permute.xlu1 %664  ;;  %v935_v38 = vpop.permute.xlu0 %934 }
 0x4c8   : > { %v1362_v11 = vpop.eup %1361  ;;  %578 = vst.msk [vmem:[#allocation4] sm:$0xff] %vm415_vm0, %v577_v10  ;;  %v667_v21 = vmul.f32 %v665_v15, %v661_v20  ;;  %v937_v39 = vmul.f32 %v935_v38, %v931_v37 }
 0x4c9   : > { %1008 = vperm.xlu0 %1339, %v1362_v11  }
 0x4cb   : > { %v800_v16 = vpop.permute.xlu1 %799 }
 0x4cc   : > { %v802_v32 = vmul.f32 %v800_v16, %v796_v28 }
 0x4cd   : > { %v1039_v12 = vld [vmem:[#allocation3 + $0x18] sm:$0xff] }
 0x4ce   : > { %1365 = vrcp.f32 %v1039_v12 }
 0x4cf   : > { %v993_v17 = vld [vmem:[#allocation4] sm:$0xff] }
 0x4d0   : > { %v1364_v13 = vpop.eup %1363 }
 0x4d1   : > { %1026 = vperm.xlu0 %1339, %v1364_v13  }
 0x4d8   : > { %v1366_v14 = vpop.eup %1365 }
 0x4d9   : > { %1044 = vperm.xlu0 %1339, %v1366_v14  }
 0x4f8   : > { %v997_v18 = vpop.permute.xlu1 %996 }
 0x4f9   : > { %v999_v19 = vmul.f32 %v997_v18, %v993_v17 }
 0x4fb   : > { %v1000_v46 = vpack.c.bf16 %v999_v19, %v999_v19 }
 0x4fd   : > { %1002 = vst.msk [vmem:[%s1638_s9] sm:$0xf] %vm1001_vm8, %v1000_v46 }
 0x500   : > { %v709_v22 = vpop.f32.mrb[4].mxu0 }
 0x501   : > { %v715_v23 = vadd.f32 %v709_v22, %v667_v21  ;;  %v1265_v24 = vpop.f32.mrb[5].mxu0 }
 0x502   : > { %v712_v25 = vpop.f32.mrb[6].mxu0 }
 0x503   : > { %716 = vst.msk [vmem:[#allocation4 + $0x8] sm:$0xff] %vm415_vm0, %v715_v23  ;;  %v1266_v26 = vpop.f32.mrb[7].mxu0 }
 0x508   : > { %v844_v33 = vpop.f32.mrb[8].mxu0 }
 0x509   : > { %v850_v34 = vadd.f32 %v844_v33, %v802_v32  ;;  %v1277_v35 = vpop.f32.mrb[9].mxu0 }
 0x50a   : > { %v847_v31 = vpop.f32.mrb[10].mxu0  ;;  %v1005_v47 = vld [vmem:[#allocation4 + $0x8] sm:$0xff] }
 0x50b   : > { %851 = vst.msk [vmem:[#allocation4 + $0x10] sm:$0xff] %vm415_vm0, %v850_v34  ;;  %v1278_v36 = vpop.f32.mrb[11].mxu0 }
 0x510   : > { %v979_v40 = vpop.f32.mrb[12].mxu0 }
 0x511   : > { %v985_v41 = vadd.f32 %v979_v40, %v937_v39  ;;  %v1289_v42 = vpop.f32.mrb[13].mxu0 }
 0x512   : > { %v982_v43 = vpop.f32.mrb[14].mxu0  ;;  %v1023_v29 = vld [vmem:[#allocation4 + $0x10] sm:$0xff] }
 0x513   : > { %986 = vst.msk [vmem:[#allocation4 + $0x18] sm:$0xff] %vm415_vm0, %v985_v41  ;;  %v1290_v44 = vpop.f32.mrb[15].mxu0 }
 0x51a   : > { %v1041_v4 = vld [vmem:[#allocation4 + $0x18] sm:$0xff] }
 0x548   : > { %v1009_v45 = vpop.permute.xlu0 %1008 }
 0x549   : > { %v1011_v48 = vmul.f32 %v1009_v45, %v1005_v47 }
 0x54b   : > { %v1224_v49 = vpack.c.bf16 %v1011_v48, %v1011_v48 }
 0x54d   : > { %1016 = vrot.lane.b32.xlu1 %v1224_v49, %s1414_s5 }
 0x550   : > { %v1027_v27 = vpop.permute.xlu0 %1026 }
 0x551   : > { %v1029_v30 = vmul.f32 %v1027_v27, %v1023_v29 }
 0x553   : > { %v1225_v50 = vpack.c.bf16 %v1029_v30, %v1029_v30 }
 0x555   : > { %1034 = vrot.lane.b32.xlu1 %v1225_v50, %s1413_s30 }
 0x558   : > { %v1045_v51 = vpop.permute.xlu0 %1044 }
 0x559   : > { %v1047_v52 = vmul.f32 %v1045_v51, %v1041_v4 }
 0x55b   : > { %v1226_v53 = vpack.c.bf16 %v1047_v52, %v1047_v52 }
 0x55d   : > { %1052 = vrot.lane.b32.xlu1 %v1226_v53, %s1412_s29 }
 0x5bf   : > { %v1017_v54 = vpop.permute.xlu1 %1016 }
 0x5c0   : > { %1020 = vst.msk [vmem:[%s1638_s9] sm:$0xf] %vm1019_vm9, %v1017_v54 }
 0x5c7   : > { %v1035_v55 = vpop.permute.xlu1 %1034 }
 0x5c8   : > { %1038 = vst.msk [vmem:[%s1638_s9] sm:$0xf] %vm1037_vm10, %v1035_v55 }
 0x5cf   : > { %v1053_v56 = vpop.permute.xlu1 %1052 }
 0x5d0   : > { %1056 = vst.msk [vmem:[%s1638_s9] sm:$0xf] %vm1055_vm11, %v1053_v56 }
 0x5d1 PF: > { %s14_s19 = sadd.s32 1, %s1405_s19   ;;  %s1671_s15 = smov %s1393_s16 }
 0x5d2   : > { %p11_p10 = scmp.ge.s32.totalorder %s14_s19, 4   ;;  %s1672_s16 = smov %s1479_s24 }
 0x5d3   : > { %s1673_s17 = smov %s1401_s18  ;;  %s1674_s18 = smov %s1676_s20 }
 0x5d4   :  { %13 = sbr.rel (!%p11_p10) target bundleno = 3 (0x3), region = 184 }

// kernel: codebert_get_loss.25
= control target key start
LH: loop header
LB: loop body
LE: loop exit
PB: predicated region body
PF: predicated region fallthrough
CT: control target
= control target key end

     0   :  { %v454_v1 = vmov 0   ;;  %v51_v34 = vlaneseq  ;;  %s589_s1 = inlined_call_operand.vmem [shape: bf16[128,512], index: 1, kind: input, shape index: {}]   ;;  %s590_s0 = inlined_call_operand.vmem [shape: bf16[16,128], index: 0, kind: input, shape index: {}]   ;;  %s591_s2 = inlined_call_operand.vmem [shape: f32[1,512], index: 2, kind: input, shape index: {}]   ;;  %s592_s3 = inlined_call_operand.vmem [shape: bf16[16,512], index: 3, kind: output, shape index: {}]  }
   0x1   :  { %v405_v0 = vld [vmem:[%s589_s1 + $0x4] ss:$16 sps:$4 sm:$0xff]   ;;  %269 = vmatprep.mubr.bf16.mxu0 %v454_v1  ;;  %312 = vmatprep.mubr.bf16.mxu1 %v454_v1  ;;  %v407_v2 = vld [vmem:[%s589_s1 + $0xc] ss:$16 sps:$4 sm:$0xff]   ;;  %v409_v3 = vld [vmem:[%s589_s1] ss:$16 sps:$4 sm:$0xff]  }
   0x2   :  { %237 = vmatprep.subr.bf16.mxu0 %v405_v0  ;;  %v410_v4 = vld [vmem:[%s589_s1 + $0x8] ss:$16 sps:$4 sm:$0xff]   ;;  %280 = vmatprep.subr.bf16.mxu1 %v407_v2  ;;  %v411_v5 = vld [vmem:[%s589_s1 + $0x24] ss:$16 sps:$4 sm:$0xff]   ;;  %v413_v6 = vld [vmem:[%s589_s1 + $0x2c] ss:$16 sps:$4 sm:$0xff]  }
   0x3   :  { %238 = vmatpush1.bf16.msra.mxu0 %v409_v3  ;;  %281 = vmatpush1.bf16.msra.mxu1 %v410_v4  ;;  %v415_v7 = vld [vmem:[%s589_s1 + $0x20] ss:$16 sps:$4 sm:$0xff]   ;;  %v416_v8 = vld [vmem:[%s589_s1 + $0x28] ss:$16 sps:$4 sm:$0xff]   ;;  %v417_v9 = vld [vmem:[%s589_s1 + $0x44] ss:$16 sps:$4 sm:$0xff]  }
   0x4   :  { %239 = vmatprep.subr.bf16.mxu0 %v411_v5  ;;  %282 = vmatprep.subr.bf16.mxu1 %v413_v6  ;;  %v419_v10 = vld [vmem:[%s589_s1 + $0x4c] ss:$16 sps:$4 sm:$0xff]   ;;  %v421_v11 = vld [vmem:[%s589_s1 + $0x40] ss:$16 sps:$4 sm:$0xff]   ;;  %v422_v12 = vld [vmem:[%s589_s1 + $0x48] ss:$16 sps:$4 sm:$0xff]  }
   0x5   :  { %v423_v13 = vld [vmem:[%s589_s1 + $0x64] ss:$16 sps:$4 sm:$0xff]   ;;  %v425_v14 = vld [vmem:[%s589_s1 + $0x6c] ss:$16 sps:$4 sm:$0xff]   ;;  %v427_v15 = vld [vmem:[%s589_s1 + $0x60] ss:$16 sps:$4 sm:$0xff]  }
   0x6   :  { %v428_v16 = vld [vmem:[%s589_s1 + $0x68] ss:$16 sps:$4 sm:$0xff]   ;;  %v429_v17 = vld [vmem:[%s589_s1 + $0x84] ss:$16 sps:$4 sm:$0xff]   ;;  %v431_v18 = vld [vmem:[%s589_s1 + $0x8c] ss:$16 sps:$4 sm:$0xff]  }
   0x7   :  { %240 = vmatpush1.bf16.msra.mxu0 %v415_v7  ;;  %283 = vmatpush1.bf16.msra.mxu1 %v416_v8  ;;  %v433_v19 = vld [vmem:[%s589_s1 + $0x80] ss:$16 sps:$4 sm:$0xff]   ;;  %v434_v20 = vld [vmem:[%s589_s1 + $0x88] ss:$16 sps:$4 sm:$0xff]   ;;  %v435_v21 = vld [vmem:[%s589_s1 + $0xa4] ss:$16 sps:$4 sm:$0xff]  }
   0x8   :  { %241 = vmatprep.subr.bf16.mxu0 %v417_v9  ;;  %284 = vmatprep.subr.bf16.mxu1 %v419_v10  ;;  %v437_v22 = vld [vmem:[%s589_s1 + $0xac] ss:$16 sps:$4 sm:$0xff]   ;;  %v439_v23 = vld [vmem:[%s589_s1 + $0xa0] ss:$16 sps:$4 sm:$0xff]   ;;  %v440_v24 = vld [vmem:[%s589_s1 + $0xa8] ss:$16 sps:$4 sm:$0xff]  }
   0x9   :  { %v441_v25 = vld [vmem:[%s589_s1 + $0xc4] ss:$16 sps:$4 sm:$0xff]   ;;  %v443_v26 = vld [vmem:[%s589_s1 + $0xcc] ss:$16 sps:$4 sm:$0xff]   ;;  %v445_v27 = vld [vmem:[%s589_s1 + $0xc0] ss:$16 sps:$4 sm:$0xff]  }
   0xa   :  { %v446_v28 = vld [vmem:[%s589_s1 + $0xc8] ss:$16 sps:$4 sm:$0xff]   ;;  %v447_v29 = vld [vmem:[%s589_s1 + $0xe4] ss:$16 sps:$4 sm:$0xff]   ;;  %v449_v30 = vld [vmem:[%s589_s1 + $0xec] ss:$16 sps:$4 sm:$0xff]  }
   0xb   :  { %242 = vmatpush1.bf16.msra.mxu0 %v421_v11  ;;  %285 = vmatpush1.bf16.msra.mxu1 %v422_v12  ;;  %v451_v31 = vld [vmem:[%s589_s1 + $0xe0] ss:$16 sps:$4 sm:$0xff]   ;;  %v452_v32 = vld [vmem:[%s589_s1 + $0xe8] ss:$16 sps:$4 sm:$0xff]   ;;  %v52_v35 = vshrl.u32 %v51_v34, 7 }
   0xc   :  { %243 = vmatprep.subr.bf16.mxu0 %v423_v13  ;;  %286 = vmatprep.subr.bf16.mxu1 %v425_v14  ;;  %v453_v33 = vld [vmem:[%s590_s0] sm:$0xff]  }
   0xd   :  { %v53_v36 = vsub.s32 0, %v52_v35  ;;  %v61_v37 = vsub.s32 2, %v52_v35  ;;  %v49_v38 = vld [vmem:[%s591_s2] sm:$0xf]  ;;  %v57_v39 = vsub.s32 1, %v52_v35  ;;  %v65_v40 = vsub.s32 3, %v52_v35 }
   0xf   :  { %244 = vmatpush1.bf16.msra.mxu0 %v427_v15  ;;  %287 = vmatpush1.bf16.msra.mxu1 %v428_v16  ;;  %v54_v41 = vrot.slane %v49_v38, %v53_v36  ;;  %v62_v42 = vrot.slane %v49_v38, %v61_v37  ;;  %v58_v43 = vrot.slane %v49_v38, %v57_v39 }
  0x10   :  { %245 = vmatprep.subr.bf16.mxu0 %v429_v17  ;;  %288 = vmatprep.subr.bf16.mxu1 %v431_v18  ;;  %v66_v44 = vrot.slane %v49_v38, %v65_v40 }
  0x13   :  { %246 = vmatpush1.bf16.msra.mxu0 %v433_v19  ;;  %289 = vmatpush1.bf16.msra.mxu1 %v434_v20 }
  0x14   :  { %247 = vmatprep.subr.bf16.mxu0 %v435_v21  ;;  %290 = vmatprep.subr.bf16.mxu1 %v437_v22 }
  0x17   :  { %248 = vmatpush1.bf16.msra.mxu0 %v439_v23  ;;  %291 = vmatpush1.bf16.msra.mxu1 %v440_v24 }
  0x18   :  { %249 = vmatprep.subr.bf16.mxu0 %v441_v25  ;;  %292 = vmatprep.subr.bf16.mxu1 %v443_v26 }
  0x1b   :  { %250 = vmatpush1.bf16.msra.mxu0 %v445_v27  ;;  %293 = vmatpush1.bf16.msra.mxu1 %v446_v28 }
  0x1c   :  { %251 = vmatprep.subr.bf16.mxu0 %v447_v29  ;;  %294 = vmatprep.subr.bf16.mxu1 %v449_v30 }
  0x1f   :  { %252 = vmatpush1.bf16.msra.mxu0 %v451_v31  ;;  %295 = vmatpush1.bf16.msra.mxu1 %v452_v32 }
  0x22   :  { %270 = vmatmul.mubr.bf16.vlgmr.msra.gmra.mrb[0].mxu0 %v453_v33  ;;  %313 = vmatmul.mubr.bf16.vlgmr.msra.gmra.mrb[0].mxu1 %v453_v33 }
  0xf5   :  { %v271_v45 = vpop.f32.mrb[0].mxu0  ;;  %v314_v46 = vpop.f32.mrb[0].mxu1 }
  0xf6   :  { %v272_v47 = vadd.f32 %v271_v45, %v54_v41  ;;  %v315_v48 = vadd.f32 %v314_v46, %v62_v42  ;;  %v273_v49 = vpop.f32.mrb[1].mxu0  ;;  %v316_v50 = vpop.f32.mrb[1].mxu1 }
  0xf7   :  { %v274_v51 = vadd.f32 %v273_v49, %v58_v43  ;;  %v317_v52 = vadd.f32 %v316_v50, %v66_v44  ;;  %v275_v53 = vpop.f32.mrb[2].mxu0  ;;  %v318_v54 = vpop.f32.mrb[2].mxu1 }
  0xf8   :  { %v323_v55 = vmax.f32 %v272_v47, 0.0  ;;  %v325_v56 = vmax.f32 %v315_v48, 0.0  ;;  %v276_v57 = vadd.f32 %v275_v53, %v54_v41  ;;  %v319_v58 = vadd.f32 %v318_v54, %v62_v42  ;;  %v277_v59 = vpop.f32.mrb[3].mxu0  ;;  %v320_v60 = vpop.f32.mrb[3].mxu1 }
  0xf9   :  { %v324_v61 = vmax.f32 %v274_v51, 0.0  ;;  %v326_v62 = vmax.f32 %v317_v52, 0.0  ;;  %v278_v63 = vadd.f32 %v277_v59, %v58_v43  ;;  %v321_v0 = vadd.f32 %v320_v60, %v66_v44 }
  0xfa   :  { %v327_v1 = vmax.f32 %v276_v57, 0.0  ;;  %v329_v2 = vmax.f32 %v319_v58, 0.0 }
  0xfb   :  { %v400_v3 = vpack.c.bf16 %v324_v61, %v323_v55  ;;  %v401_v4 = vpack.c.bf16 %v326_v62, %v325_v56  ;;  %v328_v5 = vmax.f32 %v278_v63, 0.0  ;;  %v330_v6 = vmax.f32 %v321_v0, 0.0 }
  0xfd   :  { %355 = vst [vmem:[%s592_s3] sm:$0xff] %v400_v3  ;;  %356 = vst [vmem:[%s592_s3 + $0x8] sm:$0xff] %v401_v4  ;;  %v402_v7 = vpack.c.bf16 %v328_v5, %v327_v1  ;;  %v403_v8 = vpack.c.bf16 %v330_v6, %v329_v2 }
  0xff   :  { %357 = vst [vmem:[%s592_s3 + $0x10] sm:$0xff] %v402_v7  ;;  %358 = vst [vmem:[%s592_s3 + $0x18] sm:$0xff] %v403_v8 }

// kernel: codebert_get_loss.28
= control target key start
LH: loop header
LB: loop body
LE: loop exit
PB: predicated region body
PF: predicated region fallthrough
CT: control target
= control target key end

     0   :  { %v214_v0 = vmov 0.0   ;;  %vm215_vm0 = vmmov 0   ;;  %s269_s1 = inlined_call_operand.vmem [shape: bf16[128,128], index: 1, kind: input, shape index: {}]   ;;  %s270_s0 = inlined_call_operand.vmem [shape: bf16[16,128], index: 0, kind: input, shape index: {}]   ;;  %s271_s2 = inlined_call_operand.vmem [shape: f32[1,128], index: 2, kind: input, shape index: {}]   ;;  %s272_s3 = inlined_call_operand.vmem [shape: bf16[16,128], index: 3, kind: output, shape index: {}]  }
   0x1   :  { %179 = vmatprep.subr.bf16.mxu0 %v214_v0  ;;  %v201_v1 = vld [vmem:[%s269_s1] sm:$0xff]   ;;  %195 = vmatprep.mubr.msk.bf16.mxu0 %vm215_vm0, %v214_v0  ;;  %v202_v2 = vld [vmem:[%s269_s1 + $0x8] sm:$0xff]   ;;  %v203_v3 = vld [vmem:[%s269_s1 + $0x10] sm:$0xff]  }
   0x2   :  { %180 = vmatpush3.bf16.msra.mxu0 %v201_v1  ;;  %v204_v4 = vld [vmem:[%s269_s1 + $0x18] sm:$0xff]   ;;  %v205_v5 = vld [vmem:[%s269_s1 + $0x20] sm:$0xff]   ;;  %v206_v6 = vld [vmem:[%s269_s1 + $0x28] sm:$0xff]  }
   0x3   :  { %181 = vmatprep.subr.bf16.mxu0 %v214_v0  ;;  %v207_v7 = vld [vmem:[%s269_s1 + $0x30] sm:$0xff]   ;;  %v208_v8 = vld [vmem:[%s269_s1 + $0x38] sm:$0xff]   ;;  %v209_v9 = vld [vmem:[%s270_s0] sm:$0xff]  }
   0x4   :  { %v151_v10 = vld [vmem:[%s271_s2] ss:$0 sm:$0xff] }
   0x6   :  { %182 = vmatpush3.bf16.msra.mxu0 %v202_v2 }
   0x7   :  { %183 = vmatprep.subr.bf16.mxu0 %v214_v0 }
   0xa   :  { %184 = vmatpush3.bf16.msra.mxu0 %v203_v3 }
   0xb   :  { %185 = vmatprep.subr.bf16.mxu0 %v214_v0 }
   0xe   :  { %186 = vmatpush3.bf16.msra.mxu0 %v204_v4 }
   0xf   :  { %187 = vmatprep.subr.bf16.mxu0 %v214_v0 }
  0x12   :  { %188 = vmatpush3.bf16.msra.mxu0 %v205_v5 }
  0x13   :  { %189 = vmatprep.subr.bf16.mxu0 %v214_v0 }
  0x16   :  { %190 = vmatpush3.bf16.msra.mxu0 %v206_v6 }
  0x17   :  { %191 = vmatprep.subr.bf16.mxu0 %v214_v0 }
  0x1a   :  { %192 = vmatpush3.bf16.msra.mxu0 %v207_v7 }
  0x1b   :  { %193 = vmatprep.subr.bf16.mxu0 %v214_v0 }
  0x1e   :  { %194 = vmatpush3.bf16.msra.mxu0 %v208_v8 }
  0x21   :  { %196 = vmatmul.mubr.bf16.vlgmr.msra.gmra.mrb[0].mxu0 %v209_v9 }
  0xf4   :  { %v128_v11 = vpop.f32.mrb[0].mxu0 }
  0xf5   :  { %v129_v12 = vadd.f32 %v151_v10, %v128_v11  ;;  %v197_v13 = vpop.f32.mrb[1].mxu0 }
  0xf6   :  { %v131_v14 = vpop.f32.mrb[2].mxu0 }
  0xf7   :  { %v132_v15 = vadd.f32 %v151_v10, %v131_v14  ;;  %v198_v16 = vpop.f32.mrb[3].mxu0  ;;  %210 = vtanh.f32 %v129_v12 }
  0xf9   :  { %212 = vtanh.f32 %v132_v15 }
 0x101   :  { %v211_v17 = vpop.eup %210 }
 0x103   :  { %v213_v18 = vpop.eup %212 }
 0x104   :  { %v168_v19 = vpack.c.bf16 %v213_v18, %v211_v17 }
 0x106   :  { %169 = vst [vmem:[%s272_s3] sm:$0xff] %v168_v19  }

// kernel: codebert_get_loss.26
= control target key start
LH: loop header
LB: loop body
LE: loop exit
PB: predicated region body
PF: predicated region fallthrough
CT: control target
= control target key end

     0   :  { %s660_s1 = inlined_call_operand.vmem [shape: bf16[512,128], index: 1, kind: input, shape index: {}]   ;;  %s661_s0 = inlined_call_operand.vmem [shape: bf16[16,512], index: 0, kind: input, shape index: {}]   ;;  %s662_s2 = inlined_call_operand.vmem [shape: f32[1,128], index: 2, kind: input, shape index: {}]   ;;  %s663_s3 = inlined_call_operand.vmem [shape: bf16[16,128], index: 3, kind: output, shape index: {}]  }
   0x1   :  { %v488_v0 = vld [vmem:[%s660_s1 + $0x40] sm:$0xff]   ;;  %v492_v4 = vld [vmem:[%s660_s1 + $0x48] sm:$0xff]   ;;  %v496_v8 = vld [vmem:[%s660_s1 + $0x50] sm:$0xff]  }
   0x2   :  { %v489_v1 = vld [vmem:[%s660_s1 + $0xc0] sm:$0xff]   ;;  %444 = vmatprep.subr.bf16.mxu0 %v488_v0  ;;  %v493_v5 = vld [vmem:[%s660_s1 + $0xc8] sm:$0xff]   ;;  %v497_v9 = vld [vmem:[%s660_s1 + $0xd0] sm:$0xff]  }
   0x3   :  { %v490_v2 = vld [vmem:[%s660_s1] sm:$0xff]   ;;  %466 = vmatprep.subr.bf16.mxu1 %v489_v1  ;;  %v494_v6 = vld [vmem:[%s660_s1 + $0x8] sm:$0xff]   ;;  %v498_v10 = vld [vmem:[%s660_s1 + $0x10] sm:$0xff]  }
   0x4   :  { %v491_v3 = vld [vmem:[%s660_s1 + $0x80] sm:$0xff]   ;;  %445 = vmatpush3.bf16.msra.mxu0 %v490_v2  ;;  %v495_v7 = vld [vmem:[%s660_s1 + $0x88] sm:$0xff]   ;;  %v499_v11 = vld [vmem:[%s660_s1 + $0x90] sm:$0xff]  }
   0x5   :  { %467 = vmatpush3.bf16.msra.mxu1 %v491_v3  ;;  %446 = vmatprep.subr.bf16.mxu0 %v492_v4  ;;  %v500_v12 = vld [vmem:[%s660_s1 + $0x58] sm:$0xff]   ;;  %v504_v16 = vld [vmem:[%s660_s1 + $0x60] sm:$0xff]   ;;  %v508_v20 = vld [vmem:[%s660_s1 + $0x68] sm:$0xff]  }
   0x6   :  { %468 = vmatprep.subr.bf16.mxu1 %v493_v5  ;;  %v501_v13 = vld [vmem:[%s660_s1 + $0xd8] sm:$0xff]   ;;  %v505_v17 = vld [vmem:[%s660_s1 + $0xe0] sm:$0xff]   ;;  %v509_v21 = vld [vmem:[%s660_s1 + $0xe8] sm:$0xff]  }
   0x7   :  { %v502_v14 = vld [vmem:[%s660_s1 + $0x18] sm:$0xff]   ;;  %v506_v18 = vld [vmem:[%s660_s1 + $0x20] sm:$0xff]   ;;  %v510_v22 = vld [vmem:[%s660_s1 + $0x28] sm:$0xff]  }
   0x8   :  { %447 = vmatpush3.bf16.msra.mxu0 %v494_v6  ;;  %v503_v15 = vld [vmem:[%s660_s1 + $0x98] sm:$0xff]   ;;  %v507_v19 = vld [vmem:[%s660_s1 + $0xa0] sm:$0xff]   ;;  %v511_v23 = vld [vmem:[%s660_s1 + $0xa8] sm:$0xff]  }
   0x9   :  { %469 = vmatpush3.bf16.msra.mxu1 %v495_v7  ;;  %448 = vmatprep.subr.bf16.mxu0 %v496_v8  ;;  %v512_v24 = vld [vmem:[%s660_s1 + $0x70] sm:$0xff]   ;;  %v516_v28 = vld [vmem:[%s660_s1 + $0x78] sm:$0xff]   ;;  %v398_v38 = vld [vmem:[%s662_s2] ss:$0 sm:$0xff] }
   0xa   :  { %470 = vmatprep.subr.bf16.mxu1 %v497_v9  ;;  %v513_v25 = vld [vmem:[%s660_s1 + $0xf0] sm:$0xff]   ;;  %v517_v29 = vld [vmem:[%s660_s1 + $0xf8] sm:$0xff]  }
   0xb   :  { %v514_v26 = vld [vmem:[%s660_s1 + $0x30] sm:$0xff]   ;;  %v518_v30 = vld [vmem:[%s660_s1 + $0x38] sm:$0xff]  }
   0xc   :  { %449 = vmatpush3.bf16.msra.mxu0 %v498_v10  ;;  %v515_v27 = vld [vmem:[%s660_s1 + $0xb0] sm:$0xff]   ;;  %v519_v31 = vld [vmem:[%s660_s1 + $0xb8] sm:$0xff]  }
   0xd   :  { %471 = vmatpush3.bf16.msra.mxu1 %v499_v11  ;;  %450 = vmatprep.subr.bf16.mxu0 %v500_v12  ;;  %v520_v32 = vld [vmem:[%s661_s0] ss:$16 sps:$4 sm:$0xff]   ;;  %v522_v33 = vld [vmem:[%s661_s0 + $0x4] ss:$16 sps:$4 sm:$0xff]   ;;  %v523_v34 = vld [vmem:[%s661_s0 + $0x8] ss:$16 sps:$4 sm:$0xff]  }
   0xe   :  { %472 = vmatprep.subr.bf16.mxu1 %v501_v13  ;;  %v525_v35 = vld [vmem:[%s661_s0 + $0xc] ss:$16 sps:$4 sm:$0xff]   ;;  %334 = vmatprep.mubr.bf16.mxu0 %v522_v33 }
   0xf   :  { %375 = vmatprep.mubr.bf16.mxu1 %v525_v35 }
  0x10   :  { %451 = vmatpush3.bf16.msra.mxu0 %v502_v14 }
  0x11   :  { %473 = vmatpush3.bf16.msra.mxu1 %v503_v15  ;;  %452 = vmatprep.subr.bf16.mxu0 %v504_v16 }
  0x12   :  { %474 = vmatprep.subr.bf16.mxu1 %v505_v17 }
  0x14   :  { %453 = vmatpush3.bf16.msra.mxu0 %v506_v18 }
  0x15   :  { %475 = vmatpush3.bf16.msra.mxu1 %v507_v19  ;;  %454 = vmatprep.subr.bf16.mxu0 %v508_v20 }
  0x16   :  { %476 = vmatprep.subr.bf16.mxu1 %v509_v21 }
  0x18   :  { %455 = vmatpush3.bf16.msra.mxu0 %v510_v22 }
  0x19   :  { %477 = vmatpush3.bf16.msra.mxu1 %v511_v23  ;;  %456 = vmatprep.subr.bf16.mxu0 %v512_v24 }
  0x1a   :  { %478 = vmatprep.subr.bf16.mxu1 %v513_v25 }
  0x1c   :  { %457 = vmatpush3.bf16.msra.mxu0 %v514_v26 }
  0x1d   :  { %479 = vmatpush3.bf16.msra.mxu1 %v515_v27  ;;  %458 = vmatprep.subr.bf16.mxu0 %v516_v28 }
  0x1e   :  { %480 = vmatprep.subr.bf16.mxu1 %v517_v29 }
  0x20   :  { %459 = vmatpush3.bf16.msra.mxu0 %v518_v30 }
  0x21   :  { %481 = vmatpush3.bf16.msra.mxu1 %v519_v31 }
  0x23   :  { %335 = vmatmul.mubr.bf16.vlgmr.msra.gmra.mrb[0].mxu0 %v520_v32 }
  0x24   :  { %376 = vmatmul.mubr.bf16.vlgmr.msra.gmra.mrb[0].mxu1 %v523_v34 }
  0xf6   :  { %v460_v36 = vpop.f32.mrb[0].mxu0 }
  0xf7   :  { %v482_v37 = vpop.f32.mrb[0].mxu1  ;;  %v461_v39 = vpop.f32.mrb[1].mxu0 }
  0xf8   :  { %v462_v40 = vadd.f32 %v461_v39, %v460_v36  ;;  %v483_v41 = vpop.f32.mrb[1].mxu1  ;;  %v463_v42 = vpop.f32.mrb[2].mxu0 }
  0xf9   :  { %v484_v43 = vadd.f32 %v483_v41, %v482_v37  ;;  %v485_v44 = vpop.f32.mrb[2].mxu1  ;;  %v464_v45 = vpop.f32.mrb[3].mxu0 }
  0xfa   :  { %v337_v46 = vadd.f32 %v462_v40, %v398_v38  ;;  %v465_v47 = vadd.f32 %v464_v45, %v463_v42  ;;  %v486_v48 = vpop.f32.mrb[3].mxu1 }
  0xfb   :  { %v487_v49 = vadd.f32 %v486_v48, %v485_v44 }
  0xfc   :  { %v378_v50 = vadd.f32 %v484_v43, %v337_v46  ;;  %v340_v51 = vadd.f32 %v465_v47, %v398_v38 }
  0xfe   :  { %v381_v52 = vadd.f32 %v487_v49, %v340_v51 }
 0x100   :  { %v442_v53 = vpack.c.bf16 %v381_v52, %v378_v50 }
 0x102   :  { %443 = vst [vmem:[%s663_s3] sm:$0xff] %v442_v53  }

// kernel: codebert_get_loss.29
= control target key start
LH: loop header
LB: loop body
LE: loop exit
PB: predicated region body
PF: predicated region fallthrough
CT: control target
= control target key end

     0   :  { %v675_v33 = vmov 0   ;;  %vm22_vm0 = vcmask 7168   ;;  %v676_v34 = vmov -1e+30   ;;  %v677_v50 = vmov 0.0   ;;  %s878_s1 = inlined_call_operand.vmem [shape: bf16[512,128], index: 1, kind: input, shape index: {}]   ;;  %s879_s0 = inlined_call_operand.vmem [shape: bf16[16,128], index: 0, kind: input, shape index: {}]   ;;  %s880_s2 = inlined_call_operand.vmem [shape: s32[16,1], index: 2, kind: input, shape index: {}]   ;;  %s881_s3 = inlined_call_operand.vmem [shape: f32[16,1], index: 3, kind: input, shape index: {}]   ;;  %s882_s4 = inlined_call_operand.vmem [shape: f32[16,1], index: 4, kind: output, shape index: {}]  }
   0x1   :  { %v618_v0 = vld [vmem:[%s878_s1 + $0x40] sm:$0xff]   ;;  %v622_v4 = vld [vmem:[%s878_s1 + $0x48] sm:$0xff]   ;;  %v626_v8 = vld [vmem:[%s878_s1 + $0x50] sm:$0xff]   ;;  %617 = vset.pattern.permute.xlu0 %v675_v33  ;;  %616 = vset.pattern.permute.xlu1 %v675_v33  ;;  %23 = vst.msk [vmem:[#allocation2] sm:$0xff] %vm22_vm0, %v676_v34  ;;  %v379_v54 = vlaneseq }
   0x2   :  { %v619_v1 = vld [vmem:[%s878_s1 + $0xc0] sm:$0xff]   ;;  %577 = vmatprep.subr.bf16.mxu0 %v618_v0  ;;  %v623_v5 = vld [vmem:[%s878_s1 + $0xc8] sm:$0xff]   ;;  %v627_v9 = vld [vmem:[%s878_s1 + $0xd0] sm:$0xff]   ;;  %24 = vst.msk [vmem:[#allocation2 + $0x8] sm:$0xff] %vm22_vm0, %v676_v34 }
   0x3   :  { %v620_v2 = vld [vmem:[%s878_s1] sm:$0xff]   ;;  %595 = vmatprep.subr.bf16.mxu1 %v619_v1  ;;  %v624_v6 = vld [vmem:[%s878_s1 + $0x8] sm:$0xff]   ;;  %v628_v10 = vld [vmem:[%s878_s1 + $0x10] sm:$0xff]   ;;  %27 = vst.msk [vmem:[#allocation4] sm:$0xff] %vm22_vm0, %v677_v50  ;;  %v380_v59 = vand.u32 127, %v379_v54 }
   0x4   :  { %v621_v3 = vld [vmem:[%s878_s1 + $0x80] sm:$0xff]   ;;  %578 = vmatpush3.bf16.xpose.msra.mxu0 %v620_v2  ;;  %v625_v7 = vld [vmem:[%s878_s1 + $0x88] sm:$0xff]   ;;  %v629_v11 = vld [vmem:[%s878_s1 + $0x90] sm:$0xff]   ;;  %25 = vst.msk [vmem:[#allocation3] sm:$0xff] %vm22_vm0, %v677_v50 }
   0x5   :  { %596 = vmatpush3.bf16.xpose.msra.mxu1 %v621_v3  ;;  %579 = vmatprep.subr.bf16.mxu0 %v622_v4  ;;  %v630_v12 = vld [vmem:[%s878_s1 + $0x58] sm:$0xff]   ;;  %v634_v16 = vld [vmem:[%s878_s1 + $0x60] sm:$0xff]   ;;  %v638_v21 = vld [vmem:[%s878_s1 + $0x68] sm:$0xff]   ;;  %26 = vst.msk [vmem:[#allocation3 + $0x8] sm:$0xff] %vm22_vm0, %v677_v50  ;;  %v381_v62 = vadd.s32 128, %v380_v59  ;;  %v382_v63 = vadd.s32 256, %v380_v59 }
   0x6   :  { %597 = vmatprep.subr.bf16.mxu1 %v623_v5  ;;  %v631_v13 = vld [vmem:[%s878_s1 + $0xd8] sm:$0xff]   ;;  %v635_v17 = vld [vmem:[%s878_s1 + $0xe0] sm:$0xff]   ;;  %v639_v22 = vld [vmem:[%s878_s1 + $0xe8] sm:$0xff]   ;;  %28 = vst.msk [vmem:[#allocation4 + $0x8] sm:$0xff] %vm22_vm0, %v677_v50  ;;  %v383_v0 = vadd.s32 384, %v380_v59 }
   0x7   :  { %v632_v14 = vld [vmem:[%s878_s1 + $0x18] sm:$0xff]   ;;  %v636_v18 = vld [vmem:[%s878_s1 + $0x20] sm:$0xff]   ;;  %v640_v23 = vld [vmem:[%s878_s1 + $0x28] sm:$0xff]  }
   0x8   :  { %v633_v15 = vld [vmem:[%s878_s1 + $0x98] sm:$0xff]   ;;  %v650_v19 = vld [vmem:[%s879_s0] sm:$0xff]   ;;  %v641_v24 = vld [vmem:[%s878_s1 + $0xa8] sm:$0xff]  }
   0x9   :  { %v637_v20 = vld [vmem:[%s878_s1 + $0xa0] sm:$0xff]   ;;  %593 = vmatprep.mubr.bf16.mxu0 %v650_v19  ;;  %611 = vmatprep.mubr.bf16.mxu1 %v650_v19  ;;  %v642_v25 = vld [vmem:[%s878_s1 + $0x70] sm:$0xff]   ;;  %v646_v29 = vld [vmem:[%s878_s1 + $0x78] sm:$0xff]  }
   0xa   :  { %v643_v26 = vld [vmem:[%s878_s1 + $0xf0] sm:$0xff]   ;;  %v647_v30 = vld [vmem:[%s878_s1 + $0xf8] sm:$0xff]   ;;  %v477_v49 = vld [vmem:[%s880_s2] sm:$0xff] }
   0xb   :  { %v644_v27 = vld [vmem:[%s878_s1 + $0x30] sm:$0xff]   ;;  %v648_v31 = vld [vmem:[%s878_s1 + $0x38] sm:$0xff]   ;;  %v823_v51 = vld [vmem:[#allocation2] sm:$0xff] }
   0xc   :  { %580 = vmatpush3.bf16.xpose.msra.mxu0 %v624_v6  ;;  %v645_v28 = vld [vmem:[%s878_s1 + $0xb0] sm:$0xff]   ;;  %v649_v32 = vld [vmem:[%s878_s1 + $0xb8] sm:$0xff]   ;;  %v828_v55 = vld [vmem:[#allocation2 + $0x8] sm:$0xff] }
   0xd   :  { %598 = vmatpush3.bf16.xpose.msra.mxu1 %v625_v7  ;;  %581 = vmatprep.subr.bf16.mxu0 %v626_v8  ;;  %v478_v61 = vld [vmem:[%s880_s2 + $0x8] sm:$0xff]  ;;  %v479_v50 = vld [vmem:[#allocation4] sm:$0xff] }
   0xe   :  { %599 = vmatprep.subr.bf16.mxu1 %v627_v9 }
  0x14   :  { %582 = vmatpush3.bf16.xpose.msra.mxu0 %v628_v10 }
  0x15   :  { %600 = vmatpush3.bf16.xpose.msra.mxu1 %v629_v11  ;;  %583 = vmatprep.subr.bf16.mxu0 %v630_v12 }
  0x16   :  { %601 = vmatprep.subr.bf16.mxu1 %v631_v13 }
  0x1c   :  { %584 = vmatpush3.bf16.xpose.msra.mxu0 %v632_v14 }
  0x1d   :  { %602 = vmatpush3.bf16.xpose.msra.mxu1 %v633_v15  ;;  %585 = vmatprep.subr.bf16.mxu0 %v634_v16 }
  0x1e   :  { %603 = vmatprep.subr.bf16.mxu1 %v635_v17 }
  0x24   :  { %586 = vmatpush3.bf16.xpose.msra.mxu0 %v636_v18 }
  0x25   :  { %604 = vmatpush3.bf16.xpose.msra.mxu1 %v637_v20  ;;  %587 = vmatprep.subr.bf16.mxu0 %v638_v21 }
  0x26   :  { %605 = vmatprep.subr.bf16.mxu1 %v639_v22 }
  0x2c   :  { %588 = vmatpush3.bf16.xpose.msra.mxu0 %v640_v23 }
  0x2d   :  { %606 = vmatpush3.bf16.xpose.msra.mxu1 %v641_v24  ;;  %589 = vmatprep.subr.bf16.mxu0 %v642_v25 }
  0x2e   :  { %607 = vmatprep.subr.bf16.mxu1 %v643_v26 }
  0x34   :  { %590 = vmatpush3.bf16.xpose.msra.mxu0 %v644_v27 }
  0x35   :  { %608 = vmatpush3.bf16.xpose.msra.mxu1 %v645_v28  ;;  %591 = vmatprep.subr.bf16.mxu0 %v646_v29 }
  0x36   :  { %609 = vmatprep.subr.bf16.mxu1 %v647_v30 }
  0x3c   :  { %592 = vmatpush3.bf16.xpose.msra.mxu0 %v648_v31 }
  0x3d   :  { %610 = vmatpush3.bf16.xpose.msra.mxu1 %v649_v32 }
  0x43   :  { %594 = vmatmul.mubr.bf16.vlgmr.msra.gmra.mrb[0].mxu0 %v650_v19 }
  0x44   :  { %612 = vmatmul.mubr.bf16.vlgmr.msra.gmra.mrb[0].mxu1 %v650_v19 }
 0x116   :  { %v327_v35 = vpop.f32.mrb[0].mxu0 }
 0x117   :  { %v370_v36 = vpop.f32.mrb[0].mxu1  ;;  %v329_v37 = vpop.f32.mrb[1].mxu0 }
 0x118   :  { %v372_v38 = vpop.f32.mrb[1].mxu1  ;;  %v804_v39 = vpop.f32.mrb[2].mxu0  ;;  %v404_v40 = vmax.f32 %v327_v35, %v370_v36 }
 0x119   :  { %v806_v41 = vpop.f32.mrb[2].mxu1  ;;  %v808_v42 = vpop.f32.mrb[3].mxu0  ;;  %v405_v43 = vmax.f32 %v329_v37, %v372_v38 }
 0x11a   :  { %v810_v44 = vpop.f32.mrb[3].mxu1  ;;  %v409_v45 = vmax.f32 %v804_v39, %v806_v41 }
 0x11b   :  { %v410_v46 = vmax.f32 %v808_v42, %v810_v44  ;;  %v406_v47 = vmax.f32 %v404_v40, %v405_v43 }
 0x11d   :  { %407 = vmax.xlane.f32.xlu0 %v406_v47  ;;  %v411_v48 = vmax.f32 %v409_v45, %v410_v46 }
 0x121   :  { %412 = vmax.xlane.f32.xlu0 %v411_v48 }
 0x137   :  { %482 = vperm.xlu0 %617, %v477_v49  }
 0x1aa   :  { %v408_v52 = vpop.xlane.xlu0 %407 }
 0x1ab   :  { %v826_v53 = vmax.f32 %v823_v51, %v408_v52 }
 0x1ad   :  { %v416_v56 = vsub.f32 %v823_v51, %v826_v53  ;;  %475 = vst.msk [vmem:[#allocation2] sm:$0xff] %vm22_vm0, %v826_v53  ;;  %428 = vperm.xlu1 %616, %v826_v53   ;;  %v480_v51 = vld [vmem:[#allocation4 + $0x8] sm:$0xff] }
 0x1ae   :  { %v413_v57 = vpop.xlane.xlu0 %412 }
 0x1af   :  { %v836_v58 = vmax.f32 %v828_v55, %v413_v57  ;;  %v418_v54 = vmul.f32 1.442695, %v416_v56 }
 0x1b1   :  { %v417_v60 = vsub.f32 %v828_v55, %v836_v58  ;;  %476 = vst.msk [vmem:[#allocation2 + $0x8] sm:$0xff] %vm22_vm0, %v836_v58  ;;  %433 = vperm.xlu1 %616, %v836_v58  }
 0x1b3   :  { %v420_v57 = vmul.f32 1.442695, %v417_v60 }
 0x1b5   :  { %485 = vperm.xlu1 %616, %v478_v61   ;;  %v422_v61 = vld [vmem:[#allocation3] sm:$0xff] }
 0x1b6   :  { %v483_v1 = vpop.permute.xlu0 %482 }
 0x1b7   :  { %vm487_vm1 = vcmp.eq.s32.totalorder %v380_v59, %v483_v1  ;;  %vm488_vm2 = vcmp.eq.s32.totalorder %v381_v62, %v483_v1  ;;  %vm489_vm3 = vcmp.eq.s32.totalorder %v382_v63, %v483_v1  ;;  %vm490_vm4 = vcmp.eq.s32.totalorder %v383_v0, %v483_v1  ;;  %v423_v1 = vld [vmem:[#allocation3 + $0x8] sm:$0xff] }
 0x1b8   :  { %v495_v2 = vsel %vm487_vm1, %v327_v35, 0.0  ;;  %v496_v3 = vsel %vm488_vm2, %v329_v37, 0.0  ;;  %v497_v5 = vsel %vm489_vm3, %v370_v36, 0.0  ;;  %v498_v7 = vsel %vm490_vm4, %v372_v38, 0.0 }
 0x1b9   :  { %v503_v4 = vadd.f32 %v496_v3, %v495_v2 }
 0x1bb   :  { %v504_v6 = vadd.f32 %v503_v4, %v497_v5 }
 0x1bd   :  { %v505_v8 = vadd.f32 %v504_v6, %v498_v7  ;;  %v520_v7 = vld [vmem:[#allocation2] sm:$0xff] }
 0x1bf   :  { %506 = vadd.xlane.f32.xlu0 %v505_v8 }
 0x22c   :  { %v429_v9 = vpop.permute.xlu1 %428 }
 0x22d   :  { %v436_v10 = vsub.f32 %v327_v35, %v429_v9  ;;  %v437_v11 = vsub.f32 %v329_v37, %v429_v9  ;;  %v438_v12 = vsub.f32 %v370_v36, %v429_v9  ;;  %v439_v13 = vsub.f32 %v372_v38, %v429_v9 }
 0x22f   :  { %v444_v14 = vmul.f32 1.442695, %v436_v10  ;;  %v446_v15 = vmul.f32 1.442695, %v437_v11  ;;  %v448_v16 = vmul.f32 1.442695, %v438_v12 }
 0x230   :  { %v450_v17 = vmul.f32 1.442695, %v439_v13  ;;  %v434_v18 = vpop.permute.xlu1 %433  ;;  %v534_v11 = vld [vmem:[%s881_s3] sm:$0xff] }
 0x231   :  { %651 = vpow2.f32 %v444_v14  ;;  %v440_v19 = vsub.f32 %v804_v39, %v434_v18  ;;  %v441_v20 = vsub.f32 %v808_v42, %v434_v18  ;;  %v442_v21 = vsub.f32 %v806_v41, %v434_v18  ;;  %v521_v14 = vld [vmem:[#allocation2 + $0x8] sm:$0xff] }
 0x232   :  { %653 = vpow2.f32 %v446_v15  ;;  %v443_v22 = vsub.f32 %v810_v44, %v434_v18 }
 0x233   :  { %655 = vpow2.f32 %v448_v16  ;;  %v452_v23 = vmul.f32 1.442695, %v440_v19  ;;  %v454_v24 = vmul.f32 1.442695, %v441_v20  ;;  %v456_v25 = vmul.f32 1.442695, %v442_v21 }
 0x234   :  { %657 = vpow2.f32 %v450_v17  ;;  %v486_v26 = vpop.permute.xlu1 %485  ;;  %v458_v27 = vmul.f32 1.442695, %v443_v22  ;;  %v535_v17 = vld [vmem:[%s881_s3 + $0x8] sm:$0xff] }
 0x235   :  { %659 = vpow2.f32 %v452_v23  ;;  %vm491_vm5 = vcmp.eq.s32.totalorder %v380_v59, %v486_v26  ;;  %vm492_vm6 = vcmp.eq.s32.totalorder %v381_v62, %v486_v26  ;;  %vm493_vm7 = vcmp.eq.s32.totalorder %v382_v63, %v486_v26 }
 0x236   :  { %661 = vpow2.f32 %v454_v24  ;;  %v499_v28 = vsel %vm491_vm5, %v804_v39, 0.0  ;;  %v500_v29 = vsel %vm492_vm6, %v808_v42, 0.0  ;;  %vm494_vm8 = vcmp.eq.s32.totalorder %v383_v0, %v486_v26 }
 0x237   :  { %v508_v30 = vadd.f32 %v500_v29, %v499_v28  ;;  %663 = vpow2.f32 %v456_v25  ;;  %v501_v31 = vsel %vm493_vm7, %v806_v41, 0.0  ;;  %v502_v33 = vsel %vm494_vm8, %v810_v44, 0.0 }
 0x238   :  { %665 = vpow2.f32 %v458_v27 }
 0x239   :  { %v509_v32 = vadd.f32 %v508_v30, %v501_v31  ;;  %667 = vpow2.f32 %v418_v54 }
 0x23a   :  { %669 = vpow2.f32 %v420_v57 }
 0x23b   :  { %v652_v34 = vpop.eup %651  ;;  %v510_v35 = vadd.f32 %v509_v32, %v502_v33 }
 0x23c   :  { %v654_v36 = vpop.eup %653 }
 0x23d   :  { %v656_v37 = vpop.eup %655  ;;  %v460_v38 = vadd.f32 %v654_v36, %v652_v34 }
 0x23e   :  { %v658_v40 = vpop.eup %657 }
 0x23f   :  { %v660_v43 = vpop.eup %659  ;;  %v461_v45 = vadd.f32 %v656_v37, %v460_v38 }
 0x240   :  { %v662_v39 = vpop.eup %661 }
 0x241   :  { %v462_v46 = vadd.f32 %v658_v40, %v461_v45  ;;  %v465_v42 = vadd.f32 %v662_v39, %v660_v43  ;;  %v664_v47 = vpop.eup %663 }
 0x242   :  { %v666_v49 = vpop.eup %665 }
 0x243   :  { %463 = vadd.xlane.f32.xlu1 %v462_v46  ;;  %v466_v48 = vadd.f32 %v664_v47, %v465_v42  ;;  %v668_v59 = vpop.eup %667 }
 0x244   :  { %v424_v62 = vmul.f32 %v668_v59, %v422_v61  ;;  %v670_v63 = vpop.eup %669 }
 0x245   :  { %v467_v41 = vadd.f32 %v666_v49, %v466_v48  ;;  %v425_v3 = vmul.f32 %v670_v63, %v423_v1 }
 0x247   :  { %468 = vadd.xlane.f32.xlu1 %v467_v41 }
 0x24b   :  { %511 = vadd.xlane.f32.xlu1 %v510_v35 }
 0x24c   :  { %v507_v44 = vpop.xlane.xlu0 %506 }
 0x24d   :  { %v513_v52 = vadd.f32 %v507_v44, %v479_v50 }
 0x24f   :  { %515 = vst.msk [vmem:[#allocation4] sm:$0xff] %vm22_vm0, %v513_v52 }
 0x256   :  { %v530_v10 = vld [vmem:[#allocation4] sm:$0xff] }
 0x2d0   :  { %v464_v0 = vpop.xlane.xlu1 %463 }
 0x2d1   :  { %v470_v2 = vadd.f32 %v464_v0, %v424_v62 }
 0x2d3   :  { %473 = vst.msk [vmem:[#allocation3] sm:$0xff] %vm22_vm0, %v470_v2 }
 0x2d4   :  { %v469_v4 = vpop.xlane.xlu1 %468 }
 0x2d5   :  { %v471_v5 = vadd.f32 %v469_v4, %v425_v3 }
 0x2d7   :  { %474 = vst.msk [vmem:[#allocation3 + $0x8] sm:$0xff] %vm22_vm0, %v471_v5 }
 0x2d8   :  { %v512_v53 = vpop.xlane.xlu1 %511 }
 0x2d9   :  { %v514_v56 = vadd.f32 %v512_v53, %v480_v51 }
 0x2da   :  { %v522_v55 = vld [vmem:[#allocation3] sm:$0xff] }
 0x2db   :  { %671 = vlog2.f32 %v522_v55  ;;  %516 = vst.msk [vmem:[#allocation4 + $0x8] sm:$0xff] %vm22_vm0, %v514_v56 }
 0x2de   :  { %v523_v58 = vld [vmem:[#allocation3 + $0x8] sm:$0xff] }
 0x2df   :  { %673 = vlog2.f32 %v523_v58 }
 0x2e2   :  { %v531_v18 = vld [vmem:[#allocation4 + $0x8] sm:$0xff] }
 0x2e5   :  { %v672_v60 = vpop.eup %671 }
 0x2e6   :  { %v525_v6 = vmul.f32 0.6931472, %v672_v60 }
 0x2e8   :  { %v528_v8 = vadd.f32 %v525_v6, %v520_v7 }
 0x2e9   :  { %v674_v9 = vpop.eup %673 }
 0x2ea   :  { %v527_v12 = vmul.f32 0.6931472, %v674_v9  ;;  %v532_v13 = vsub.f32 %v528_v8, %v530_v10 }
 0x2ec   :  { %v529_v15 = vadd.f32 %v527_v12, %v521_v14  ;;  %v536_v16 = vmul.f32 %v534_v11, %v532_v13 }
 0x2ee   :  { %v533_v19 = vsub.f32 %v529_v15, %v531_v18  ;;  %538 = vst.msk [vmem:[%s882_s4] sm:$0xff] %vm22_vm0, %v536_v16 }
 0x2f0   :  { %v537_v20 = vmul.f32 %v535_v17, %v533_v19 }
 0x2f2   :  { %539 = vst.msk [vmem:[%s882_s4 + $0x8] sm:$0xff] %vm22_vm0, %v537_v20 }

</bundles_post_ra>
